<compile_context>
chip_gen: v7x
topology: tpu7x:2x2x1
jax: 0.10.0
libtpu: 0.0.40
codegen_flags: <defaults>
</compile_context>

<pallas_src>
import jax
import jax.numpy as jnp
from jax import lax
from jax.experimental import pallas as pl
from jax.experimental.pallas import tpu as pltpu


def _pad8(n):
    return ((n + 7) // 8) * 8


# ----------------------------------------------------------------------------
# Host-side parameter preparation: fold BN, stack sub-pixel weights, pack.
# ----------------------------------------------------------------------------
def _fold_bn(weight, bias, bn):
    gamma, beta, run_mean, run_var, eps = bn
    scale = gamma / jnp.sqrt(run_var + eps)            # (Cout,)
    shift = (bias - run_mean) * scale + beta           # (Cout,)
    w = weight * scale[None, :, None, None]            # (Cin, Cout, 2, 2)
    return w, shift


def _prep_operands(params):
    """Fold BN and pack the 6 layers into 4 slabs (+ the input)."""
    assert len(params) == 6
    folded = [_fold_bn(w, b, bn) for (w, b, bn) in params]
    chans = [params[0][0].shape[0]] + [p[0].shape[1] for p in params]
    C0, C1, C2, C3, C4, C5, CI = chans

    # ---- layer 1 weight: (Cin, 4*Cout), lane index = d*Cout + c ------------
    w1f, s1 = folded[0]
    w1 = jnp.transpose(w1f, (0, 2, 3, 1)).reshape(C0, 4 * C1).astype(jnp.bfloat16)

    # ---- column-major weight slab for layers 2..6 (lanes = C2) -------------
    def cm_stack(wf):   # (Cin, Cout, 2, 2) -> (4*Cout, Cin), row = d*Cout + c
        cin, cout = wf.shape[0], wf.shape[1]
        return jnp.transpose(wf, (2, 3, 1, 0)).reshape(4 * cout, cin)

    def rm_by_row(wf):  # (Cin, Cout, 2, 2) -> (4*Cin, Cout), row = d*Cin + ci
        cin, cout = wf.shape[0], wf.shape[1]
        return jnp.transpose(wf, (2, 3, 0, 1)).reshape(4 * cin, cout)

    lanes = C2
    blocks = [rm_by_row(folded[1][0]),   # W2: (4*C1, C2)  (per-d row blocks)
              cm_stack(folded[2][0]),    # W3: (4*C3, C2)
              cm_stack(folded[3][0]),    # W4: (4*C4, C3)
              cm_stack(folded[4][0]),    # W5: (4*C5, C4)
              cm_stack(folded[5][0])]    # W6: (4*CI, C5)
    w_offs, rows, padded = [], 0, []
    for blk in blocks:
        w_offs.append(rows)
        r = _pad8(blk.shape[0])
        buf = jnp.zeros((r, lanes), jnp.float32)
        buf = buf.at[:blk.shape[0], :blk.shape[1]].set(blk)
        padded.append(buf)
        rows += r
    w_cm = jnp.concatenate(padded, axis=0).astype(jnp.bfloat16)

    # ---- row-form shifts (layers 1-2), f32 ----------------------------------
    s2 = folded[1][1]
    s_rm = jnp.zeros((8, 4 * C1), jnp.float32)
    s_rm = s_rm.at[0, :].set(jnp.tile(s1, (4,)))       # lane = d*C1 + c
    s_rm = s_rm.at[1, :C2].set(s2)

    # ---- column-form shifts (layers 3-6), tiled x4, f32 ---------------------
    s_offs, srows, spadded = [], 0, []
    for i in (2, 3, 4, 5):
        sb = jnp.tile(folded[i][1], (4,))              # row = d*Cout + c
        s_offs.append(srows)
        r = _pad8(sb.shape[0])
        spadded.append(jnp.zeros((r,), jnp.float32).at[:sb.shape[0]].set(sb))
        srows += r
    s_cm = jnp.concatenate(spadded)[:, None]           # (rows, 1)

    dims = dict(C0=C0, C1=C1, C2=C2, C3=C3, C4=C4, C5=C5, CI=CI,
                w_offs=tuple(w_offs), s_offs=tuple(s_offs))
    return (w1, w_cm, s_rm, s_cm), dims


# ----------------------------------------------------------------------------
# Fused decoder kernel: 6 x (ConvT k2s2 + folded BN + activation) per block.
# Pixel ordering: after layer l the pixel index is pi_{l+1} = d_l*P_l + pi_l,
# d_l = di_l*2 + dj_l, pi_1 = sample index within the block.
# ----------------------------------------------------------------------------
def _make_decoder_kernel(dims, b_blk):
    C0, C1, C2, C3, C4, C5, CI = (dims[k] for k in
                                  ("C0", "C1", "C2", "C3", "C4", "C5", "CI"))
    ow2, ow3, ow4, ow5, ow6 = dims["w_offs"]
    os3, os4, os5, os6 = dims["s_offs"]
    B = b_blk
    P0, P1, P2, P3, P4, P5 = B, 4 * B, 16 * B, 64 * B, 256 * B, 1024 * B
    f32, bf16 = jnp.float32, jnp.bfloat16

    def kernel(x_ref, w1_ref, wcm_ref, srm_ref, scm_ref, o_ref,
               s1_ref, s2_ref, s3_ref, s4_ref, s5_ref):
        # ---- layer 1: pixels on sublanes, one stacked matmul ----------------
        a0 = x_ref[...].astype(bf16)                               # (B, C0)
        y1 = jnp.dot(a0, w1_ref[...], preferred_element_type=f32)  # (B, 4*C1)
        z1 = jnp.maximum(y1 + srm_ref[0:1, :], 0.0)
        for d in range(4):                                         # aligned slices
            s1_ref[d * P0:(d + 1) * P0, :] = z1[:, d * C1:(d + 1) * C1]

        # ---- layer 2: pixels on sublanes, 4 per-sub-pixel matmuls -----------
        a1 = s1_ref[...].astype(bf16)                              # (P1, C1)
        s2row = srm_ref[1:2, 0:C2]
        for d in range(4):
            w2d = wcm_ref[ow2 + d * C1: ow2 + (d + 1) * C1, 0:C2]  # (C1, C2)
            y = jnp.dot(a1, w2d, preferred_element_type=f32)       # (P1, C2)
            s2_ref[d * P1:(d + 1) * P1, :] = jnp.maximum(y + s2row, 0.0)

        # ---- layer 3: switch pixels to lanes (NT contraction on channels) ---
        a2 = s2_ref[...].astype(bf16)                              # (P2, C2)
        w3 = wcm_ref[ow3: ow3 + 4 * C3, 0:C2]                      # (4*C3, C2)
        y3 = lax.dot_general(w3, a2, (((1,), (1,)), ((), ())),
                             preferred_element_type=f32)           # (4*C3, P2)
        z3 = jnp.maximum(y3 + scm_ref[os3: os3 + 4 * C3, :], 0.0)
        for d in range(4):
            s3_ref[:, d * P2:(d + 1) * P2] = z3[d * C3:(d + 1) * C3, :]

        # ---- layer 4: one stacked matmul, pixels on lanes --------------------
        a3 = s3_ref[...].astype(bf16)                              # (C3, P3)
        w4 = wcm_ref[ow4: ow4 + 4 * C4, 0:C3]                      # (4*C4, C3)
        y4 = jnp.dot(w4, a3, preferred_element_type=f32)           # (4*C4, P3)
        z4 = jnp.maximum(y4 + scm_ref[os4: os4 + 4 * C4, :], 0.0)
        for d in range(4):
            s4_ref[:, d * P3:(d + 1) * P3] = z4[d * C4:(d + 1) * C4, :]

        # ---- layer 5: one stacked matmul -------------------------------------
        a4 = s4_ref[...].astype(bf16)                              # (C4, P4)
        w5 = wcm_ref[ow5: ow5 + 4 * C5, 0:C4]                      # (4*C5, C4)
        y5 = jnp.dot(w5, a4, preferred_element_type=f32)           # (4*C5, P4)
        z5 = jnp.maximum(y5 + scm_ref[os5: os5 + 4 * C5, :], 0.0)
        for d in range(4):
            s5_ref[:, d * P4:(d + 1) * P4] = z5[d * C5:(d + 1) * C5, :]

        # ---- layer 6: sigmoid, two lane-halves -> 8*CI lane-dense output -----
        w6 = wcm_ref[ow6: ow6 + 4 * CI, 0:C5]                      # (4*CI, C5)
        s6 = scm_ref[os6: os6 + 4 * CI, :]
        half = P5 // 2
        for h in range(2):
            a5h = s5_ref[:, h * half:(h + 1) * half].astype(bf16)  # (C5, half)
            y6 = jnp.dot(w6, a5h, preferred_element_type=f32)      # (4*CI, half)
            e = jnp.exp(-(y6 + s6))
            sig = pl.reciprocal(1.0 + e, approx=True)              # EUP path
            o_ref[h * 4 * CI:(h + 1) * 4 * CI, :] = jnp.clip(sig, 0.0, 1.0)

    return kernel


# ----------------------------------------------------------------------------
# Forward pass wrapper: (B, latent, 1, 1) NCHW -> (B, input_channels, 64, 64).
# ----------------------------------------------------------------------------
def variational_decoder(x_nchw, params, *, block_batch=8):
    assert block_batch % 8 == 0
    B = x_nchw.shape[0]
    c0 = x_nchw.shape[1]
    c_img = params[-1][0].shape[1]

    (w1, w_cm, s_rm, s_cm), dims = _prep_operands(params)

    # (B, C0, 1, 1) -> (B, C0); pad batch to a multiple of the block size.
    # ConvT k2s2 has no cross-pixel mixing, so padding rows never contaminate
    # real outputs (they are sliced off at the end).
    x2d = x_nchw.reshape(B, c0)
    b_pad = ((B + block_batch - 1) // block_batch) * block_batch
    if b_pad != B:
        x2d = jnp.pad(x2d, ((0, b_pad - B), (0, 0)))
    n_blk = b_pad // block_batch

    out_rows = 8 * c_img                     # >= one full sublane tile
    out_lanes = 512 * block_batch            # = P5 // 2, lane-dense
    kernel = _make_decoder_kernel(dims, block_batch)

    scratch = [
        pltpu.VMEM((4 * block_batch, dims["C1"]), jnp.float32),     # layer-1 out
        pltpu.VMEM((16 * block_batch, dims["C2"]), jnp.float32),    # layer-2 out
        pltpu.VMEM((dims["C3"], 64 * block_batch), jnp.float32),    # layer-3 out
        pltpu.VMEM((dims["C4"], 256 * block_batch), jnp.float32),   # layer-4 out
        pltpu.VMEM((dims["C5"], 1024 * block_batch), jnp.float32),  # layer-5 out
    ]

    out = pl.pallas_call(
        kernel,
        out_shape=jax.ShapeDtypeStruct((out_rows, n_blk * out_lanes), jnp.float32),
        grid_spec=pltpu.PrefetchScalarGridSpec(
            num_scalar_prefetch=0,
            grid=(n_blk,),
            in_specs=[
                pl.BlockSpec((block_batch, c0), lambda i: (i, 0)),   # x block
                pl.BlockSpec(w1.shape, lambda i: (0, 0)),            # W1
                pl.BlockSpec(w_cm.shape, lambda i: (0, 0)),          # W2..W6 slab
                pl.BlockSpec(s_rm.shape, lambda i: (0, 0)),          # row shifts
                pl.BlockSpec(s_cm.shape, lambda i: (0, 0)),          # col shifts
            ],
            out_specs=pl.BlockSpec((out_rows, out_lanes), lambda i: (0, i)),
            scratch_shapes=scratch,
        ),
        compiler_params=pltpu.CompilerParams(
            dimension_semantics=("parallel",),
            vmem_limit_bytes=32 * 1024 * 1024,
        ),
    )(x2d, w1, w_cm, s_rm, s_cm)

    # One final pixel un-scramble (the only data reorder in the whole forward).
    # out[row, lane]:
    #   row  = di5*(4*CI) + (di6*2+dj6)*CI + c
    #   lane = blk*512B + dj5*256B + d4*64B + d3*16B + d2*4B + d1*B + b
    bb = block_batch
    o = out.reshape(2, 2, 2, c_img, n_blk, 2, 2, 2, 2, 2, 2, 2, 2, 2, bb)
    #           (di5, di6, dj6, c, blk, dj5, di4, dj4, di3, dj3, di2, dj2, di1, dj1, b)
    o = jnp.transpose(o, (4, 14, 3, 12, 10, 8, 6, 0, 1, 13, 11, 9, 7, 5, 2))
    #           -> (blk, b, c, di1..di6, dj1..dj6)
    o = o.reshape(b_pad, c_img, 64, 64)
    return o[:B]


# ----------------------------------------------------------------------------
# Pure-JAX reference (same math as the PyTorch module, eval-mode BN).
# ----------------------------------------------------------------------------
def _reference_decoder(x_nchw, params):
    def bshape(v):
        return v.reshape(1, 1, 1, -1, 1, 1)

    x = jnp.transpose(x_nchw, (0, 2, 3, 1))            # NHWC
    acts = ["relu"] * 5 + ["sigmoid"]
    for (w, b, (gamma, beta, mean, var, eps)), act in zip(params, acts):
        bsz, h, wd, _ = x.shape
        cout = w.shape[1]
        t = jnp.einsum("bhwc,coij->bhwoij", x, w) + bshape(b)
        t = (t - bshape(mean)) * (bshape(gamma) / jnp.sqrt(bshape(var) + eps))
        t = t + bshape(beta)
        t = jnp.maximum(t, 0.0) if act == "relu" else jax.nn.sigmoid(t)
        t = jnp.transpose(t, (0, 1, 4, 2, 5, 3))       # (b, h, di, w, dj, o)
        x = t.reshape(bsz, 2 * h, 2 * wd, cout)
    return jnp.transpose(x, (0, 3, 1, 2))              # NCHW


# ----------------------------------------------------------------------------
# Deterministic parameter construction (mirrors the PyTorch module's shapes).
# ----------------------------------------------------------------------------
def init_decoder_params(key, latent_dimensions, decoder_base_channels, input_channels):
    c = decoder_base_channels
    channels = [latent_dimensions, c * 16, c * 8, c * 4, c * 2, c, input_channels]
    params = []
    for i in range(6):
        cin, cout = channels[i], channels[i + 1]
        key, wk, bk, gk, btk, mk, vk = jax.random.split(key, 7)
        # ConvTranspose2d weight layout: (in_channels, out_channels, kH, kW).
        w = jax.random.normal(wk, (cin, cout, 2, 2), jnp.float32) * jnp.sqrt(2.0 / cin)
        b = jax.random.uniform(bk, (cout,), jnp.float32, -0.1, 0.1)
        # Non-trivial eval-mode BatchNorm statistics (exercise the folding).
        gamma = jax.random.uniform(gk, (cout,), jnp.float32, 0.8, 1.2)
        beta = jax.random.uniform(btk, (cout,), jnp.float32, -0.1, 0.1)
        run_mean = jax.random.uniform(mk, (cout,), jnp.float32, -0.1, 0.1)
        run_var = jax.random.uniform(vk, (cout,), jnp.float32, 0.5, 1.5)
        params.append((w, b, (gamma, beta, run_mean, run_var, 1e-5)))
    return params


# ----------------------------------------------------------------------------
if __name__ == "__main__":
    B = 2
    latent_dimensions = 8
    decoder_base_channels = 8
    input_channels = 1

    root = jax.random.PRNGKey(0)
    pkey, xkey = jax.random.split(root)
    params = init_decoder_params(pkey, latent_dimensions, decoder_base_channels,
                                 input_channels)

    # Decoder input: latent code reshaped to (B, latent, 1, 1), NCHW.
    x = jax.random.normal(xkey, (B, latent_dimensions, 1, 1), jnp.float32)

    y = jax.jit(variational_decoder)(x, params)
    y = jax.block_until_ready(y)

    assert y.shape == (B, input_channels, 64, 64), y.shape
    assert bool(jnp.all(jnp.isfinite(y)))
    assert bool(jnp.all((y >= 0.0) & (y <= 1.0)))      # sigmoid output activation

    # Correctness vs. a pure-JAX reference of the original module's math.
    y_ref = jax.block_until_ready(_reference_decoder(x, params))
    max_err = float(jnp.max(jnp.abs(y - y_ref)))
    assert max_err < 2e-2, f"max abs err vs reference: {max_err}"

    print("KERNEL_OK")
</pallas_src>

<mosaic_0001>
module attributes {stable_mosaic.version = 11 : i64} {
  func.func @kernel(%arg0: i32, %arg1: memref<8x8xf32, #tpu.memory_space<vmem>>, %arg2: memref<8x512xbf16, #tpu.memory_space<vmem>>, %arg3: memref<744x64xbf16, #tpu.memory_space<vmem>>, %arg4: memref<8x512xf32, #tpu.memory_space<vmem>>, %arg5: memref<232x1xf32, #tpu.memory_space<vmem>>, %arg6: memref<8x4096xf32, #tpu.memory_space<vmem>>, %arg7: memref<32x128xf32, #tpu.memory_space<vmem>>, %arg8: memref<128x64xf32, #tpu.memory_space<vmem>>, %arg9: memref<32x512xf32, #tpu.memory_space<vmem>>, %arg10: memref<16x2048xf32, #tpu.memory_space<vmem>>, %arg11: memref<8x8192xf32, #tpu.memory_space<vmem>>) attributes {dimension_semantics = [#tpu.dimension_semantics<parallel>], iteration_bounds = array<i64: 1>, scalar_prefetch = 0 : i64, scratch_operands = 5 : i64, tpu.core_type = #tpu.core_type<tc>, window_params = [{transform_indices = @transform_0, window_bounds = array<i64: 8, 8>}, {pipeline_mode = #tpu.pipeline_mode<synchronous>, transform_indices = @transform_1, window_bounds = array<i64: 8, 512>}, {pipeline_mode = #tpu.pipeline_mode<synchronous>, transform_indices = @transform_2, window_bounds = array<i64: 744, 64>}, {pipeline_mode = #tpu.pipeline_mode<synchronous>, transform_indices = @transform_3, window_bounds = array<i64: 8, 512>}, {pipeline_mode = #tpu.pipeline_mode<synchronous>, transform_indices = @transform_4, window_bounds = array<i64: 232, 1>}, {transform_indices = @transform_5, window_bounds = array<i64: 8, 4096>}]} {
    %c0 = arith.constant 0 : index
    %c0_0 = arith.constant 0 : index
    %0 = vector.load %arg1[%c0, %c0_0] : memref<8x8xf32, #tpu.memory_space<vmem>>, vector<8x8xf32>
    %1 = arith.truncf %0 : vector<8x8xf32> to vector<8x8xbf16>
    %c0_1 = arith.constant 0 : index
    %c0_2 = arith.constant 0 : index
    %2 = vector.load %arg2[%c0_1, %c0_2] : memref<8x512xbf16, #tpu.memory_space<vmem>>, vector<8x512xbf16>
    %cst = arith.constant dense<0.000000e+00> : vector<8x512xf32>
    %3 = tpu.matmul %1, %2, %cst {dimension_numbers = #tpu.dot_dimension_numbers<[1], [0], [0], [1], [0, 0, 1, 1], [], []>} : vector<8x8xbf16>, vector<8x512xbf16>, vector<8x512xf32> -> vector<8x512xf32>
    %c0_3 = arith.constant 0 : index
    %c0_4 = arith.constant 0 : index
    %4 = vector.load %arg4[%c0_3, %c0_4] : memref<8x512xf32, #tpu.memory_space<vmem>>, vector<1x512xf32>
    %5 = vector.broadcast %4 : vector<1x512xf32> to vector<8x512xf32>
    %6 = arith.addf %3, %5 : vector<8x512xf32>
    %cst_5 = arith.constant 0.000000e+00 : f32
    %7 = vector.broadcast %cst_5 : f32 to vector<8x512xf32>
    %8 = arith.maximumf %6, %7 : vector<8x512xf32>
    %9 = vector.extract_strided_slice %8 {offsets = [0, 0], sizes = [8, 128], strides = [1, 1]} : vector<8x512xf32> to vector<8x128xf32>
    %c0_6 = arith.constant 0 : index
    %c0_7 = arith.constant 0 : index
    %10 = vector.load %arg7[%c0_6, %c0_7] : memref<32x128xf32, #tpu.memory_space<vmem>>, vector<8x128xf32>
    tpu.vector_store %arg7[%c0_6, %c0_7], %9 {strides = array<i32>} : memref<32x128xf32, #tpu.memory_space<vmem>>, vector<8x128xf32>,
    %11 = vector.extract_strided_slice %8 {offsets = [0, 128], sizes = [8, 128], strides = [1, 1]} : vector<8x512xf32> to vector<8x128xf32>
    %c8 = arith.constant 8 : index
    %c0_8 = arith.constant 0 : index
    %12 = vector.load %arg7[%c8, %c0_8] : memref<32x128xf32, #tpu.memory_space<vmem>>, vector<8x128xf32>
    tpu.vector_store %arg7[%c8, %c0_8], %11 {strides = array<i32>} : memref<32x128xf32, #tpu.memory_space<vmem>>, vector<8x128xf32>,
    %13 = vector.extract_strided_slice %8 {offsets = [0, 256], sizes = [8, 128], strides = [1, 1]} : vector<8x512xf32> to vector<8x128xf32>
    %c16 = arith.constant 16 : index
    %c0_9 = arith.constant 0 : index
    %14 = vector.load %arg7[%c16, %c0_9] : memref<32x128xf32, #tpu.memory_space<vmem>>, vector<8x128xf32>
    tpu.vector_store %arg7[%c16, %c0_9], %13 {strides = array<i32>} : memref<32x128xf32, #tpu.memory_space<vmem>>, vector<8x128xf32>,
    %15 = vector.extract_strided_slice %8 {offsets = [0, 384], sizes = [8, 128], strides = [1, 1]} : vector<8x512xf32> to vector<8x128xf32>
    %c24 = arith.constant 24 : index
    %c0_10 = arith.constant 0 : index
    %16 = vector.load %arg7[%c24, %c0_10] : memref<32x128xf32, #tpu.memory_space<vmem>>, vector<8x128xf32>
    tpu.vector_store %arg7[%c24, %c0_10], %15 {strides = array<i32>} : memref<32x128xf32, #tpu.memory_space<vmem>>, vector<8x128xf32>,
    %c0_11 = arith.constant 0 : index
    %c0_12 = arith.constant 0 : index
    %17 = vector.load %arg7[%c0_11, %c0_12] : memref<32x128xf32, #tpu.memory_space<vmem>>, vector<32x128xf32>
    %18 = arith.truncf %17 : vector<32x128xf32> to vector<32x128xbf16>
    %c1 = arith.constant 1 : index
    %c0_13 = arith.constant 0 : index
    %19 = vector.load %arg4[%c1, %c0_13] : memref<8x512xf32, #tpu.memory_space<vmem>>, vector<1x64xf32>
    %c0_14 = arith.constant 0 : index
    %c0_15 = arith.constant 0 : index
    %20 = vector.load %arg3[%c0_14, %c0_15] : memref<744x64xbf16, #tpu.memory_space<vmem>>, vector<128x64xbf16>
    %cst_16 = arith.constant dense<0.000000e+00> : vector<32x64xf32>
    %21 = tpu.matmul %18, %20, %cst_16 {dimension_numbers = #tpu.dot_dimension_numbers<[1], [0], [0], [1], [0, 0, 1, 1], [], []>} : vector<32x128xbf16>, vector<128x64xbf16>, vector<32x64xf32> -> vector<32x64xf32>
    %22 = vector.broadcast %19 : vector<1x64xf32> to vector<32x64xf32>
    %23 = arith.addf %21, %22 : vector<32x64xf32>
    %cst_17 = arith.constant 0.000000e+00 : f32
    %24 = vector.broadcast %cst_17 : f32 to vector<32x64xf32>
    %25 = arith.maximumf %23, %24 : vector<32x64xf32>
    %c0_18 = arith.constant 0 : index
    %c0_19 = arith.constant 0 : index
    %26 = vector.load %arg8[%c0_18, %c0_19] : memref<128x64xf32, #tpu.memory_space<vmem>>, vector<32x64xf32>
    tpu.vector_store %arg8[%c0_18, %c0_19], %25 {strides = array<i32>} : memref<128x64xf32, #tpu.memory_space<vmem>>, vector<32x64xf32>,
    %c128 = arith.constant 128 : index
    %c0_20 = arith.constant 0 : index
    %27 = vector.load %arg3[%c128, %c0_20] : memref<744x64xbf16, #tpu.memory_space<vmem>>, vector<128x64xbf16>
    %cst_21 = arith.constant dense<0.000000e+00> : vector<32x64xf32>
    %28 = tpu.matmul %18, %27, %cst_21 {dimension_numbers = #tpu.dot_dimension_numbers<[1], [0], [0], [1], [0, 0, 1, 1], [], []>} : vector<32x128xbf16>, vector<128x64xbf16>, vector<32x64xf32> -> vector<32x64xf32>
    %29 = vector.broadcast %19 : vector<1x64xf32> to vector<32x64xf32>
    %30 = arith.addf %28, %29 : vector<32x64xf32>
    %cst_22 = arith.constant 0.000000e+00 : f32
    %31 = vector.broadcast %cst_22 : f32 to vector<32x64xf32>
    %32 = arith.maximumf %30, %31 : vector<32x64xf32>
    %c32 = arith.constant 32 : index
    %c0_23 = arith.constant 0 : index
    %33 = vector.load %arg8[%c32, %c0_23] : memref<128x64xf32, #tpu.memory_space<vmem>>, vector<32x64xf32>
    tpu.vector_store %arg8[%c32, %c0_23], %32 {strides = array<i32>} : memref<128x64xf32, #tpu.memory_space<vmem>>, vector<32x64xf32>,
    %c256 = arith.constant 256 : index
    %c0_24 = arith.constant 0 : index
    %34 = vector.load %arg3[%c256, %c0_24] : memref<744x64xbf16, #tpu.memory_space<vmem>>, vector<128x64xbf16>
    %cst_25 = arith.constant dense<0.000000e+00> : vector<32x64xf32>
    %35 = tpu.matmul %18, %34, %cst_25 {dimension_numbers = #tpu.dot_dimension_numbers<[1], [0], [0], [1], [0, 0, 1, 1], [], []>} : vector<32x128xbf16>, vector<128x64xbf16>, vector<32x64xf32> -> vector<32x64xf32>
    %36 = vector.broadcast %19 : vector<1x64xf32> to vector<32x64xf32>
    %37 = arith.addf %35, %36 : vector<32x64xf32>
    %cst_26 = arith.constant 0.000000e+00 : f32
    %38 = vector.broadcast %cst_26 : f32 to vector<32x64xf32>
    %39 = arith.maximumf %37, %38 : vector<32x64xf32>
    %c64 = arith.constant 64 : index
    %c0_27 = arith.constant 0 : index
    %40 = vector.load %arg8[%c64, %c0_27] : memref<128x64xf32, #tpu.memory_space<vmem>>, vector<32x64xf32>
    tpu.vector_store %arg8[%c64, %c0_27], %39 {strides = array<i32>} : memref<128x64xf32, #tpu.memory_space<vmem>>, vector<32x64xf32>,
    %c384 = arith.constant 384 : index
    %c0_28 = arith.constant 0 : index
    %41 = vector.load %arg3[%c384, %c0_28] : memref<744x64xbf16, #tpu.memory_space<vmem>>, vector<128x64xbf16>
    %cst_29 = arith.constant dense<0.000000e+00> : vector<32x64xf32>
    %42 = tpu.matmul %18, %41, %cst_29 {dimension_numbers = #tpu.dot_dimension_numbers<[1], [0], [0], [1], [0, 0, 1, 1], [], []>} : vector<32x128xbf16>, vector<128x64xbf16>, vector<32x64xf32> -> vector<32x64xf32>
    %43 = vector.broadcast %19 : vector<1x64xf32> to vector<32x64xf32>
    %44 = arith.addf %42, %43 : vector<32x64xf32>
    %cst_30 = arith.constant 0.000000e+00 : f32
    %45 = vector.broadcast %cst_30 : f32 to vector<32x64xf32>
    %46 = arith.maximumf %44, %45 : vector<32x64xf32>
    %c96 = arith.constant 96 : index
    %c0_31 = arith.constant 0 : index
    %47 = vector.load %arg8[%c96, %c0_31] : memref<128x64xf32, #tpu.memory_space<vmem>>, vector<32x64xf32>
    tpu.vector_store %arg8[%c96, %c0_31], %46 {strides = array<i32>} : memref<128x64xf32, #tpu.memory_space<vmem>>, vector<32x64xf32>,
    %c0_32 = arith.constant 0 : index
    %c0_33 = arith.constant 0 : index
    %48 = vector.load %arg8[%c0_32, %c0_33] : memref<128x64xf32, #tpu.memory_space<vmem>>, vector<128x64xf32>
    %49 = arith.truncf %48 : vector<128x64xf32> to vector<128x64xbf16>
    %c512 = arith.constant 512 : index
    %c0_34 = arith.constant 0 : index
    %50 = vector.load %arg3[%c512, %c0_34] : memref<744x64xbf16, #tpu.memory_space<vmem>>, vector<128x64xbf16>
    %cst_35 = arith.constant dense<0.000000e+00> : vector<128x128xf32>
    %51 = tpu.matmul %50, %49, %cst_35 {dimension_numbers = #tpu.dot_dimension_numbers<[1], [1], [0], [0], [0, 0, 1, 0], [], []>} : vector<128x64xbf16>, vector<128x64xbf16>, vector<128x128xf32> -> vector<128x128xf32>
    %c0_36 = arith.constant 0 : index
    %c0_37 = arith.constant 0 : index
    %52 = vector.load %arg5[%c0_36, %c0_37] : memref<232x1xf32, #tpu.memory_space<vmem>>, vector<128x1xf32>
    %53 = vector.broadcast %52 : vector<128x1xf32> to vector<128x128xf32>
    %54 = arith.addf %51, %53 : vector<128x128xf32>
    %cst_38 = arith.constant 0.000000e+00 : f32
    %55 = vector.broadcast %cst_38 : f32 to vector<128x128xf32>
    %56 = arith.maximumf %54, %55 : vector<128x128xf32>
    %57 = vector.extract_strided_slice %56 {offsets = [0, 0], sizes = [32, 128], strides = [1, 1]} : vector<128x128xf32> to vector<32x128xf32>
    %c0_39 = arith.constant 0 : index
    %c0_40 = arith.constant 0 : index
    %58 = vector.load %arg9[%c0_39, %c0_40] : memref<32x512xf32, #tpu.memory_space<vmem>>, vector<32x128xf32>
    tpu.vector_store %arg9[%c0_39, %c0_40], %57 {strides = array<i32>} : memref<32x512xf32, #tpu.memory_space<vmem>>, vector<32x128xf32>,
    %59 = vector.extract_strided_slice %56 {offsets = [32, 0], sizes = [32, 128], strides = [1, 1]} : vector<128x128xf32> to vector<32x128xf32>
    %c0_41 = arith.constant 0 : index
    %c128_42 = arith.constant 128 : index
    %60 = vector.load %arg9[%c0_41, %c128_42] : memref<32x512xf32, #tpu.memory_space<vmem>>, vector<32x128xf32>
    tpu.vector_store %arg9[%c0_41, %c128_42], %59 {strides = array<i32>} : memref<32x512xf32, #tpu.memory_space<vmem>>, vector<32x128xf32>,
    %61 = vector.extract_strided_slice %56 {offsets = [64, 0], sizes = [32, 128], strides = [1, 1]} : vector<128x128xf32> to vector<32x128xf32>
    %c0_43 = arith.constant 0 : index
    %c256_44 = arith.constant 256 : index
    %62 = vector.load %arg9[%c0_43, %c256_44] : memref<32x512xf32, #tpu.memory_space<vmem>>, vector<32x128xf32>
    tpu.vector_store %arg9[%c0_43, %c256_44], %61 {strides = array<i32>} : memref<32x512xf32, #tpu.memory_space<vmem>>, vector<32x128xf32>,
    %63 = vector.extract_strided_slice %56 {offsets = [96, 0], sizes = [32, 128], strides = [1, 1]} : vector<128x128xf32> to vector<32x128xf32>
    %c0_45 = arith.constant 0 : index
    %c384_46 = arith.constant 384 : index
    %64 = vector.load %arg9[%c0_45, %c384_46] : memref<32x512xf32, #tpu.memory_space<vmem>>, vector<32x128xf32>
    tpu.vector_store %arg9[%c0_45, %c384_46], %63 {strides = array<i32>} : memref<32x512xf32, #tpu.memory_space<vmem>>, vector<32x128xf32>,
    %c0_47 = arith.constant 0 : index
    %c0_48 = arith.constant 0 : index
    %65 = vector.load %arg9[%c0_47, %c0_48] : memref<32x512xf32, #tpu.memory_space<vmem>>, vector<32x512xf32>
    %66 = arith.truncf %65 : vector<32x512xf32> to vector<32x512xbf16>
    %c640 = arith.constant 640 : index
    %c0_49 = arith.constant 0 : index
    %67 = vector.load %arg3[%c640, %c0_49] : memref<744x64xbf16, #tpu.memory_space<vmem>>, vector<64x32xbf16>
    %cst_50 = arith.constant dense<0.000000e+00> : vector<64x512xf32>
    %68 = tpu.matmul %67, %66, %cst_50 {dimension_numbers = #tpu.dot_dimension_numbers<[1], [0], [0], [1], [0, 0, 1, 1], [], []>} : vector<64x32xbf16>, vector<32x512xbf16>, vector<64x512xf32> -> vector<64x512xf32>
    %c128_51 = arith.constant 128 : index
    %c0_52 = arith.constant 0 : index
    %69 = vector.load %arg5[%c128_51, %c0_52] : memref<232x1xf32, #tpu.memory_space<vmem>>, vector<64x1xf32>
    %70 = vector.broadcast %69 : vector<64x1xf32> to vector<64x512xf32>
    %71 = arith.addf %68, %70 : vector<64x512xf32>
    %cst_53 = arith.constant 0.000000e+00 : f32
    %72 = vector.broadcast %cst_53 : f32 to vector<64x512xf32>
    %73 = arith.maximumf %71, %72 : vector<64x512xf32>
    %74 = vector.extract_strided_slice %73 {offsets = [0, 0], sizes = [16, 512], strides = [1, 1]} : vector<64x512xf32> to vector<16x512xf32>
    %c0_54 = arith.constant 0 : index
    %c0_55 = arith.constant 0 : index
    %75 = vector.load %arg10[%c0_54, %c0_55] : memref<16x2048xf32, #tpu.memory_space<vmem>>, vector<16x512xf32>
    tpu.vector_store %arg10[%c0_54, %c0_55], %74 {strides = array<i32>} : memref<16x2048xf32, #tpu.memory_space<vmem>>, vector<16x512xf32>,
    %76 = vector.extract_strided_slice %73 {offsets = [16, 0], sizes = [16, 512], strides = [1, 1]} : vector<64x512xf32> to vector<16x512xf32>
    %c0_56 = arith.constant 0 : index
    %c512_57 = arith.constant 512 : index
    %77 = vector.load %arg10[%c0_56, %c512_57] : memref<16x2048xf32, #tpu.memory_space<vmem>>, vector<16x512xf32>
    tpu.vector_store %arg10[%c0_56, %c512_57], %76 {strides = array<i32>} : memref<16x2048xf32, #tpu.memory_space<vmem>>, vector<16x512xf32>,
    %78 = vector.extract_strided_slice %73 {offsets = [32, 0], sizes = [16, 512], strides = [1, 1]} : vector<64x512xf32> to vector<16x512xf32>
    %c0_58 = arith.constant 0 : index
    %c1024 = arith.constant 1024 : index
    %79 = vector.load %arg10[%c0_58, %c1024] : memref<16x2048xf32, #tpu.memory_space<vmem>>, vector<16x512xf32>
    tpu.vector_store %arg10[%c0_58, %c1024], %78 {strides = array<i32>} : memref<16x2048xf32, #tpu.memory_space<vmem>>, vector<16x512xf32>,
    %80 = vector.extract_strided_slice %73 {offsets = [48, 0], sizes = [16, 512], strides = [1, 1]} : vector<64x512xf32> to vector<16x512xf32>
    %c0_59 = arith.constant 0 : index
    %c1536 = arith.constant 1536 : index
    %81 = vector.load %arg10[%c0_59, %c1536] : memref<16x2048xf32, #tpu.memory_space<vmem>>, vector<16x512xf32>
    tpu.vector_store %arg10[%c0_59, %c1536], %80 {strides = array<i32>} : memref<16x2048xf32, #tpu.memory_space<vmem>>, vector<16x512xf32>,
    %c0_60 = arith.constant 0 : index
    %c0_61 = arith.constant 0 : index
    %82 = vector.load %arg10[%c0_60, %c0_61] : memref<16x2048xf32, #tpu.memory_space<vmem>>, vector<16x2048xf32>
    %83 = arith.truncf %82 : vector<16x2048xf32> to vector<16x2048xbf16>
    %c704 = arith.constant 704 : index
    %c0_62 = arith.constant 0 : index
    %84 = vector.load %arg3[%c704, %c0_62] : memref<744x64xbf16, #tpu.memory_space<vmem>>, vector<32x16xbf16>
    %cst_63 = arith.constant dense<0.000000e+00> : vector<32x2048xf32>
    %85 = tpu.matmul %84, %83, %cst_63 {dimension_numbers = #tpu.dot_dimension_numbers<[1], [0], [0], [1], [0, 0, 1, 1], [], []>} : vector<32x16xbf16>, vector<16x2048xbf16>, vector<32x2048xf32> -> vector<32x2048xf32>
    %c192 = arith.constant 192 : index
    %c0_64 = arith.constant 0 : index
    %86 = vector.load %arg5[%c192, %c0_64] : memref<232x1xf32, #tpu.memory_space<vmem>>, vector<32x1xf32>
    %87 = vector.broadcast %86 : vector<32x1xf32> to vector<32x2048xf32>
    %88 = arith.addf %85, %87 : vector<32x2048xf32>
    %cst_65 = arith.constant 0.000000e+00 : f32
    %89 = vector.broadcast %cst_65 : f32 to vector<32x2048xf32>
    %90 = arith.maximumf %88, %89 : vector<32x2048xf32>
    %91 = vector.extract_strided_slice %90 {offsets = [0, 0], sizes = [8, 2048], strides = [1, 1]} : vector<32x2048xf32> to vector<8x2048xf32>
    %c0_66 = arith.constant 0 : index
    %c0_67 = arith.constant 0 : index
    %92 = vector.load %arg11[%c0_66, %c0_67] : memref<8x8192xf32, #tpu.memory_space<vmem>>, vector<8x2048xf32>
    tpu.vector_store %arg11[%c0_66, %c0_67], %91 {strides = array<i32>} : memref<8x8192xf32, #tpu.memory_space<vmem>>, vector<8x2048xf32>,
    %93 = vector.extract_strided_slice %90 {offsets = [8, 0], sizes = [8, 2048], strides = [1, 1]} : vector<32x2048xf32> to vector<8x2048xf32>
    %c0_68 = arith.constant 0 : index
    %c2048 = arith.constant 2048 : index
    %94 = vector.load %arg11[%c0_68, %c2048] : memref<8x8192xf32, #tpu.memory_space<vmem>>, vector<8x2048xf32>
    tpu.vector_store %arg11[%c0_68, %c2048], %93 {strides = array<i32>} : memref<8x8192xf32, #tpu.memory_space<vmem>>, vector<8x2048xf32>,
    %95 = vector.extract_strided_slice %90 {offsets = [16, 0], sizes = [8, 2048], strides = [1, 1]} : vector<32x2048xf32> to vector<8x2048xf32>
    %c0_69 = arith.constant 0 : index
    %c4096 = arith.constant 4096 : index
    %96 = vector.load %arg11[%c0_69, %c4096] : memref<8x8192xf32, #tpu.memory_space<vmem>>, vector<8x2048xf32>
    tpu.vector_store %arg11[%c0_69, %c4096], %95 {strides = array<i32>} : memref<8x8192xf32, #tpu.memory_space<vmem>>, vector<8x2048xf32>,
    %97 = vector.extract_strided_slice %90 {offsets = [24, 0], sizes = [8, 2048], strides = [1, 1]} : vector<32x2048xf32> to vector<8x2048xf32>
    %c0_70 = arith.constant 0 : index
    %c6144 = arith.constant 6144 : index
    %98 = vector.load %arg11[%c0_70, %c6144] : memref<8x8192xf32, #tpu.memory_space<vmem>>, vector<8x2048xf32>
    tpu.vector_store %arg11[%c0_70, %c6144], %97 {strides = array<i32>} : memref<8x8192xf32, #tpu.memory_space<vmem>>, vector<8x2048xf32>,
    %c736 = arith.constant 736 : index
    %c0_71 = arith.constant 0 : index
    %99 = vector.load %arg3[%c736, %c0_71] : memref<744x64xbf16, #tpu.memory_space<vmem>>, vector<4x8xbf16>
    %c224 = arith.constant 224 : index
    %c0_72 = arith.constant 0 : index
    %100 = vector.load %arg5[%c224, %c0_72] : memref<232x1xf32, #tpu.memory_space<vmem>>, vector<4x1xf32>
    %c0_73 = arith.constant 0 : index
    %c0_74 = arith.constant 0 : index
    %101 = vector.load %arg11[%c0_73, %c0_74] : memref<8x8192xf32, #tpu.memory_space<vmem>>, vector<8x4096xf32>
    %102 = arith.truncf %101 : vector<8x4096xf32> to vector<8x4096xbf16>
    %cst_75 = arith.constant dense<0.000000e+00> : vector<4x4096xf32>
    %103 = tpu.matmul %99, %102, %cst_75 {dimension_numbers = #tpu.dot_dimension_numbers<[1], [0], [0], [1], [0, 0, 1, 1], [], []>} : vector<4x8xbf16>, vector<8x4096xbf16>, vector<4x4096xf32> -> vector<4x4096xf32>
    %104 = vector.broadcast %100 : vector<4x1xf32> to vector<4x4096xf32>
    %105 = arith.addf %103, %104 : vector<4x4096xf32>
    %cst_76 = arith.constant 0.000000e+00 : f32
    %106 = vector.broadcast %cst_76 : f32 to vector<4x4096xf32>
    %107 = arith.subf %106, %105 : vector<4x4096xf32>
    %108 = math.exp %107 : vector<4x4096xf32>
    %cst_77 = arith.constant 1.000000e+00 : f32
    %109 = vector.broadcast %cst_77 : f32 to vector<4x4096xf32>
    %110 = arith.addf %109, %108 : vector<4x4096xf32>
    %111 = tpu.reciprocal %110 {approx = true} : vector<4x4096xf32> -> vector<4x4096xf32>
    %cst_78 = arith.constant 0.000000e+00 : f32
    %cst_79 = arith.constant 1.000000e+00 : f32
    %112 = vector.broadcast %cst_78 : f32 to vector<4x4096xf32>
    %113 = arith.maximumf %112, %111 : vector<4x4096xf32>
    %114 = vector.broadcast %cst_79 : f32 to vector<4x4096xf32>
    %115 = arith.minimumf %114, %113 : vector<4x4096xf32>
    %c0_80 = arith.constant 0 : index
    %c0_81 = arith.constant 0 : index
    %116 = vector.load %arg6[%c0_80, %c0_81] : memref<8x4096xf32, #tpu.memory_space<vmem>>, vector<4x4096xf32>
    tpu.vector_store %arg6[%c0_80, %c0_81], %115 {strides = array<i32>} : memref<8x4096xf32, #tpu.memory_space<vmem>>, vector<4x4096xf32>,
    %c0_82 = arith.constant 0 : index
    %c4096_83 = arith.constant 4096 : index
    %117 = vector.load %arg11[%c0_82, %c4096_83] : memref<8x8192xf32, #tpu.memory_space<vmem>>, vector<8x4096xf32>
    %118 = arith.truncf %117 : vector<8x4096xf32> to vector<8x4096xbf16>
    %cst_84 = arith.constant dense<0.000000e+00> : vector<4x4096xf32>
    %119 = tpu.matmul %99, %118, %cst_84 {dimension_numbers = #tpu.dot_dimension_numbers<[1], [0], [0], [1], [0, 0, 1, 1], [], []>} : vector<4x8xbf16>, vector<8x4096xbf16>, vector<4x4096xf32> -> vector<4x4096xf32>
    %120 = vector.broadcast %100 : vector<4x1xf32> to vector<4x4096xf32>
    %121 = arith.addf %119, %120 : vector<4x4096xf32>
    %cst_85 = arith.constant 0.000000e+00 : f32
    %122 = vector.broadcast %cst_85 : f32 to vector<4x4096xf32>
    %123 = arith.subf %122, %121 : vector<4x4096xf32>
    %124 = math.exp %123 : vector<4x4096xf32>
    %cst_86 = arith.constant 1.000000e+00 : f32
    %125 = vector.broadcast %cst_86 : f32 to vector<4x4096xf32>
    %126 = arith.addf %125, %124 : vector<4x4096xf32>
    %127 = tpu.reciprocal %126 {approx = true} : vector<4x4096xf32> -> vector<4x4096xf32>
    %cst_87 = arith.constant 0.000000e+00 : f32
    %cst_88 = arith.constant 1.000000e+00 : f32
    %128 = vector.broadcast %cst_87 : f32 to vector<4x4096xf32>
    %129 = arith.maximumf %128, %127 : vector<4x4096xf32>
    %130 = vector.broadcast %cst_88 : f32 to vector<4x4096xf32>
    %131 = arith.minimumf %130, %129 : vector<4x4096xf32>
    %c4 = arith.constant 4 : index
    %c0_89 = arith.constant 0 : index
    %132 = vector.load %arg6[%c4, %c0_89] : memref<8x4096xf32, #tpu.memory_space<vmem>>, vector<4x4096xf32>
    tpu.vector_store %arg6[%c4, %c0_89], %131 {strides = array<i32>} : memref<8x4096xf32, #tpu.memory_space<vmem>>, vector<4x4096xf32>,
    return
  }
  func.func @transform_0(%arg0: i32) -> (i32, i32) {
    %c0_i32 = arith.constant 0 : i32
    %c0_i32_0 = arith.constant 0 : i32
    return %arg0, %c0_i32 : i32, i32
  }
  func.func @transform_1(%arg0: i32) -> (i32, i32) {
    %c0_i32 = arith.constant 0 : i32
    %c0_i32_0 = arith.constant 0 : i32
    %c0_i32_1 = arith.constant 0 : i32
    return %c0_i32, %c0_i32_0 : i32, i32
  }
  func.func @transform_2(%arg0: i32) -> (i32, i32) {
    %c0_i32 = arith.constant 0 : i32
    %c0_i32_0 = arith.constant 0 : i32
    %c0_i32_1 = arith.constant 0 : i32
    return %c0_i32, %c0_i32_0 : i32, i32
  }
  func.func @transform_3(%arg0: i32) -> (i32, i32) {
    %c0_i32 = arith.constant 0 : i32
    %c0_i32_0 = arith.constant 0 : i32
    %c0_i32_1 = arith.constant 0 : i32
    return %c0_i32, %c0_i32_0 : i32, i32
  }
  func.func @transform_4(%arg0: i32) -> (i32, i32) {
    %c0_i32 = arith.constant 0 : i32
    %c0_i32_0 = arith.constant 0 : i32
    %c0_i32_1 = arith.constant 0 : i32
    return %c0_i32, %c0_i32_0 : i32, i32
  }
  func.func @transform_5(%arg0: i32) -> (i32, i32) {
    %c0_i32 = arith.constant 0 : i32
    %c0_i32_0 = arith.constant 0 : i32
    return %c0_i32, %arg0 : i32, i32
  }
}

</mosaic_0001>

<bundles_post_ra>
// kernel: tile.43
= control target key start
LH: loop header
LB: loop body
LE: loop exit
PB: predicated region body
PF: predicated region fallthrough
CT: control target
= control target key end

     0   :  { %s22_s0 = inlined_call_operand.vmem [shape: f32[8], index: 0, kind: input, shape index: {}]   ;;  %s23_s1 = inlined_call_operand.vmem [shape: f32[4,8], index: 1, kind: output, shape index: {}]  }
   0x1   :  { %v4_v0 = vld [vmem:[%s22_s0] ss:$0 sm:$0xff] }
   0x2   :  { %5 = vst [vmem:[%s23_s1] sm:$0xf] %v4_v0 }

// kernel: tile.38
= control target key start
LH: loop header
LB: loop body
LE: loop exit
PB: predicated region body
PF: predicated region fallthrough
CT: control target
= control target key end

     0   :  { %s22_s0 = inlined_call_operand.vmem [shape: f32[16], index: 0, kind: input, shape index: {}]   ;;  %s23_s1 = inlined_call_operand.vmem [shape: f32[4,16], index: 1, kind: output, shape index: {}]  }
   0x1   :  { %v4_v0 = vld [vmem:[%s22_s0] ss:$0 sm:$0xff] }
   0x2   :  { %5 = vst [vmem:[%s23_s1] sm:$0xf] %v4_v0 }

// kernel: tile.33
= control target key start
LH: loop header
LB: loop body
LE: loop exit
PB: predicated region body
PF: predicated region fallthrough
CT: control target
= control target key end

     0   :  { %s22_s0 = inlined_call_operand.vmem [shape: f32[32], index: 0, kind: input, shape index: {}]   ;;  %s23_s1 = inlined_call_operand.vmem [shape: f32[4,32], index: 1, kind: output, shape index: {}]  }
   0x1   :  { %v4_v0 = vld [vmem:[%s22_s0] ss:$0 sm:$0xff] }
   0x2   :  { %5 = vst [vmem:[%s23_s1] sm:$0xf] %v4_v0 }

// kernel: tile.28
= control target key start
LH: loop header
LB: loop body
LE: loop exit
PB: predicated region body
PF: predicated region fallthrough
CT: control target
= control target key end

     0   :  { %s22_s0 = inlined_call_operand.vmem [shape: f32[128], index: 0, kind: input, shape index: {}]   ;;  %s23_s1 = inlined_call_operand.vmem [shape: f32[4,128], index: 1, kind: output, shape index: {}]  }
   0x1   :  { %v4_v0 = vld [vmem:[%s22_s0] ss:$0 sm:$0xff] }
   0x2   :  { %5 = vst [vmem:[%s23_s1] sm:$0xf] %v4_v0 }

// kernel: variational_decoder.1
= control target key start
LH: loop header
LB: loop body
LE: loop exit
PB: predicated region body
PF: predicated region fallthrough
CT: control target
= control target key end

     0   :  { %vm61_vm0 = vcmask 1043456   ;;  %v4866_v2 = vmov 0   ;;  %vm57_vm1 = vcmask 64512   ;;  %v27_v29 = vlaneseq  ;;  %s5957_s1 = inlined_call_operand.vmem [shape: bf16[8,512], index: 1, kind: input, shape index: {}]   ;;  %s5958_s0 = inlined_call_operand.vmem [shape: f32[8,8], index: 0, kind: input, shape index: {}]   ;;  %s5959_s2 = inlined_call_operand.vmem [shape: bf16[744,64], index: 2, kind: input, shape index: {}]   ;;  %s5960_s3 = inlined_call_operand.vmem [shape: f32[8,512], index: 3, kind: input, shape index: {}]   ;;  %s5961_s4 = inlined_call_operand.vmem [shape: f32[232,1], index: 4, kind: input, shape index: {}]   ;;  %s5962_s5 = inlined_call_operand.vmem [shape: f32[8,4096], index: 5, kind: output, shape index: {}]  }
   0x1   :  { %v23_v0 = vld [vmem:[%s5957_s1] sm:$0xff]  ;;  %v24_v1 = vld [vmem:[%s5957_s1 + $0x8] sm:$0xff]  ;;  %106 = vmatprep.mubr.bf16.mxu0 %v4866_v2  ;;  %147 = vmatprep.mubr.bf16.mxu1 %v4866_v2  ;;  %v4568_v15 = vld [vmem:[%s5959_s2 + $0x10] sm:$0xff]   ;;  %vm288_vm2 = vcmask 523264   ;;  %vm1109_vm3 = vcmask 261120   ;;  %vm1418_vm4 = vcmask 130048  }
   0x2   :  { %v21_v3 = vld [vmem:[%s5958_s0] sm:$0xff]  ;;  %v4232_v4 = vcombine.high %v23_v0, %v23_v0  ;;  %v4234_v5 = vcombine.high %v24_v1, %v24_v1  ;;  %v4231_v6 = vcombine.low %v23_v0, %v23_v0  ;;  %v4233_v7 = vcombine.low %v24_v1, %v24_v1  ;;  %4558 = vset.pattern.permute.xlu0 %v4866_v2  ;;  %v4566_v13 = vld [vmem:[%s5959_s2 + $0x8] sm:$0xff]   ;;  %v4569_v16 = vld [vmem:[%s5959_s2 + $0x50] sm:$0xff]  }
   0x3   :  { %v4564_v8 = vld [vmem:[%s5959_s2] sm:$0xff]   ;;  %4559 = vset.pattern.permute.xlu1 %v4866_v2  ;;  %v22_v12 = vpack.c.bf16 %v21_v3, %v21_v3  ;;  %v4567_v14 = vld [vmem:[%s5959_s2 + $0x48] sm:$0xff]   ;;  %v4570_v17 = vld [vmem:[%s5959_s2 + $0x18] sm:$0xff]   ;;  %v28_v30 = vshrl.u32 %v27_v29, 7 }
   0x4   :  { %v4565_v9 = vld [vmem:[%s5959_s2 + $0x40] sm:$0xff]   ;;  %4235 = vmatprep.subr.msk.bf16.mxu0 %vm61_vm0, %v4232_v4  ;;  %4237 = vmatprep.subr.msk.bf16.mxu1 %vm61_vm0, %v4234_v5  ;;  %v63_v10 = vsel %vm61_vm0, %v4231_v6, 0  ;;  %v69_v11 = vsel %vm61_vm0, %v4233_v7, 0  ;;  %v4571_v18 = vld [vmem:[%s5959_s2 + $0x58] sm:$0xff]   ;;  %v4574_v21 = vld [vmem:[%s5959_s2 + $0x28] sm:$0xff]  }
   0x5   :  { %75 = vmatpush1.bf16.msra.mxu0 %v63_v10  ;;  %116 = vmatpush1.bf16.msra.mxu1 %v69_v11  ;;  %v4572_v19 = vld [vmem:[%s5959_s2 + $0x20] sm:$0xff]   ;;  %v4575_v22 = vld [vmem:[%s5959_s2 + $0x68] sm:$0xff]   ;;  %v4576_v23 = vld [vmem:[%s5959_s2 + $0x30] sm:$0xff]   ;;  %v29_v31 = vsub.s32 0, %v28_v30  ;;  %v37_v32 = vsub.s32 2, %v28_v30  ;;  %v33_v34 = vsub.s32 1, %v28_v30 }
   0x6   :  { %4437 = vmatprep.subr.bf16.mxu0 %v4564_v8  ;;  %4457 = vmatprep.subr.bf16.mxu1 %v4565_v9  ;;  %v4573_v20 = vld [vmem:[%s5959_s2 + $0x60] sm:$0xff]   ;;  %v4577_v24 = vld [vmem:[%s5959_s2 + $0x70] sm:$0xff]   ;;  %v4578_v25 = vld [vmem:[%s5959_s2 + $0x38] sm:$0xff]   ;;  %v41_v35 = vsub.s32 3, %v28_v30 }
   0x7   :  { %v4579_v26 = vld [vmem:[%s5959_s2 + $0x78] sm:$0xff]   ;;  %v4580_v27 = vld [vmem:[%s5959_s2 + $0x80] sm:$0xff]   ;;  %v4582_v58 = vld [vmem:[%s5959_s2 + $0x88] sm:$0xff]  }
   0x8   :  { %4236 = vmatmul.mubr.msk.bf16.vlgmr.msra.gmra.mrb[0].mxu0 %vm57_vm1, %v22_v12  ;;  %4238 = vmatmul.mubr.msk.bf16.vlgmr.msra.gmra.mrb[0].mxu1 %vm57_vm1, %v22_v12  ;;  %v4581_v28 = vld [vmem:[%s5959_s2 + $0xc0] sm:$0xff]   ;;  %v4583_v59 = vld [vmem:[%s5959_s2 + $0xc8] sm:$0xff]   ;;  %v4584_v60 = vld [vmem:[%s5959_s2 + $0x90] sm:$0xff]  }
   0x9   :  { %4438 = vmatpush3.bf16.msra.mxu0 %v4564_v8  ;;  %4458 = vmatpush3.bf16.msra.mxu1 %v4565_v9  ;;  %v25_v33 = vld [vmem:[%s5960_s3] ss:$8 sm:$0xf] }
   0xa   :  { %4439 = vmatprep.subr.bf16.mxu0 %v4566_v13  ;;  %4459 = vmatprep.subr.bf16.mxu1 %v4567_v14  ;;  %v30_v36 = vrot.slane %v25_v33, %v29_v31  ;;  %v38_v37 = vrot.slane %v25_v33, %v37_v32  ;;  %v34_v38 = vrot.slane %v25_v33, %v33_v34  ;;  %v4585_v61 = vld [vmem:[%s5959_s2 + $0xd0] sm:$0xff]   ;;  %v4586_v62 = vld [vmem:[%s5959_s2 + $0x98] sm:$0xff]   ;;  %v4588_v0 = vld [vmem:[%s5959_s2 + $0xa0] sm:$0xff]  }
   0xb   :  { %v42_v39 = vrot.slane %v25_v33, %v41_v35  ;;  %v4587_v63 = vld [vmem:[%s5959_s2 + $0xd8] sm:$0xff]   ;;  %v4589_v1 = vld [vmem:[%s5959_s2 + $0xe0] sm:$0xff]   ;;  %v4590_v3 = vld [vmem:[%s5959_s2 + $0xa8] sm:$0xff]  }
   0xc   :  { %v4591_v4 = vld [vmem:[%s5959_s2 + $0xe8] sm:$0xff]   ;;  %v4592_v5 = vld [vmem:[%s5959_s2 + $0xb0] sm:$0xff]   ;;  %v4594_v7 = vld [vmem:[%s5959_s2 + $0xb8] sm:$0xff]  }
   0xd   :  { %4440 = vmatpush3.bf16.msra.mxu0 %v4566_v13  ;;  %4460 = vmatpush3.bf16.msra.mxu1 %v4567_v14  ;;  %v4593_v6 = vld [vmem:[%s5959_s2 + $0xf0] sm:$0xff]   ;;  %v4595_v8 = vld [vmem:[%s5959_s2 + $0xf8] sm:$0xff]   ;;  %v4596_v9 = vld [vmem:[%s5959_s2 + $0x100] sm:$0xff]  }
   0xe   :  { %4441 = vmatprep.subr.bf16.mxu0 %v4568_v15  ;;  %4461 = vmatprep.subr.bf16.mxu1 %v4569_v16  ;;  %v700_v10 = vld [vmem:[%s5961_s4 + $0x20] sm:$0xff]  ;;  %v701_v12 = vld [vmem:[%s5961_s4 + $0x28] sm:$0xff]  ;;  %v702_v14 = vld [vmem:[%s5961_s4 + $0x30] sm:$0xff] }
   0xf   :  { %v696_v11 = vld [vmem:[%s5961_s4] sm:$0xff]  ;;  %734 = vperm.xlu0 %4558, %v700_v10   ;;  %v697_v13 = vld [vmem:[%s5961_s4 + $0x8] sm:$0xff]  ;;  %v710_v29 = vld [vmem:[%s5961_s4 + $0x70] sm:$0xff] }
  0x10   :  { %714 = vperm.xlu1 %4559, %v696_v11   ;;  %v711_v30 = vld [vmem:[%s5961_s4 + $0x78] sm:$0xff] }
  0x11   :  { %4442 = vmatpush3.bf16.msra.mxu0 %v4568_v15  ;;  %4462 = vmatpush3.bf16.msra.mxu1 %v4569_v16  ;;  %v703_v15 = vld [vmem:[%s5961_s4 + $0x38] sm:$0xff]  ;;  %v698_v16 = vld [vmem:[%s5961_s4 + $0x10] sm:$0xff] }
  0x12   :  { %4443 = vmatprep.subr.bf16.mxu0 %v4570_v17  ;;  %4463 = vmatprep.subr.bf16.mxu1 %v4571_v18  ;;  %v1387_v10 = vld [vmem:[%s5961_s4 + $0xd8] sm:$0xff] }
  0x13   :  { %739 = vperm.xlu0 %4558, %v701_v12  }
  0x14   :  { %719 = vperm.xlu1 %4559, %v697_v13  }
  0x15   :  { %4444 = vmatpush3.bf16.msra.mxu0 %v4570_v17  ;;  %4464 = vmatpush3.bf16.msra.mxu1 %v4571_v18  ;;  %v699_v17 = vld [vmem:[%s5961_s4 + $0x18] sm:$0xff]  ;;  %v708_v18 = vld [vmem:[%s5961_s4 + $0x60] sm:$0xff] }
  0x16   :  { %4445 = vmatprep.subr.bf16.mxu0 %v4572_v19  ;;  %4465 = vmatprep.subr.bf16.mxu1 %v4573_v20 }
  0x17   :  { %744 = vperm.xlu0 %4558, %v702_v14  }
  0x18   :  { %749 = vperm.xlu1 %4559, %v703_v15  }
  0x19   :  { %4446 = vmatpush3.bf16.msra.mxu0 %v4572_v19  ;;  %4466 = vmatpush3.bf16.msra.mxu1 %v4573_v20  ;;  %v709_v19 = vld [vmem:[%s5961_s4 + $0x68] sm:$0xff]  ;;  %v704_v20 = vld [vmem:[%s5961_s4 + $0x40] sm:$0xff] }
  0x1a   :  { %4447 = vmatprep.subr.bf16.mxu0 %v4574_v21  ;;  %4467 = vmatprep.subr.bf16.mxu1 %v4575_v22 }
  0x1b   :  { %724 = vperm.xlu0 %4558, %v698_v16  }
  0x1c   :  { %729 = vperm.xlu1 %4559, %v699_v17  }
  0x1d   :  { %4448 = vmatpush3.bf16.msra.mxu0 %v4574_v21  ;;  %4468 = vmatpush3.bf16.msra.mxu1 %v4575_v22  ;;  %v705_v21 = vld [vmem:[%s5961_s4 + $0x48] sm:$0xff]  ;;  %v5059_v22 = vld [vmem:[%s5960_s3 + $0x1] ss:$0 sm:$0xff] }
  0x1e   :  { %4449 = vmatprep.subr.bf16.mxu0 %v4576_v23  ;;  %4469 = vmatprep.subr.bf16.mxu1 %v4577_v24 }
  0x1f   :  { %774 = vperm.xlu0 %4558, %v708_v18  }
  0x20   :  { %779 = vperm.xlu1 %4559, %v709_v19   ;;  %v1978_v19 = vld [vmem:[%s5961_s4 + $0xe0] sm:$0xf] }
  0x21   :  { %4450 = vmatpush3.bf16.msra.mxu0 %v4576_v23  ;;  %4470 = vmatpush3.bf16.msra.mxu1 %v4577_v24 }
  0x22   :  { %4451 = vmatprep.subr.bf16.mxu0 %v4578_v25  ;;  %4471 = vmatprep.subr.bf16.mxu1 %v4579_v26 }
  0x23   :  { %754 = vperm.xlu0 %4558, %v704_v20  }
  0x24   :  { %759 = vperm.xlu1 %4559, %v705_v21  }
  0x25   :  { %4452 = vmatpush3.bf16.msra.mxu0 %v4578_v25  ;;  %4472 = vmatpush3.bf16.msra.mxu1 %v4579_v26 }
  0x26   :  { %4477 = vmatprep.subr.bf16.mxu0 %v4580_v27  ;;  %4497 = vmatprep.subr.bf16.mxu1 %v4581_v28 }
  0x27   :  { %784 = vperm.xlu0 %4558, %v710_v29  }
  0x28   :  { %789 = vperm.xlu1 %4559, %v711_v30  }
  0xdb   :  { %v108_v40 = vpop.f32.mrb[0].mxu0  ;;  %v149_v41 = vpop.f32.mrb[0].mxu1 }
  0xdc   :  { %v109_v42 = vadd.f32 %v108_v40, %v30_v36  ;;  %v150_v43 = vadd.f32 %v149_v41, %v38_v37  ;;  %v110_v44 = vpop.f32.mrb[1].mxu0  ;;  %v151_v45 = vpop.f32.mrb[1].mxu1 }
  0xdd   :  { %v111_v46 = vadd.f32 %v110_v44, %v34_v38  ;;  %v152_v47 = vadd.f32 %v151_v45, %v42_v39  ;;  %v112_v48 = vpop.f32.mrb[2].mxu0  ;;  %v153_v49 = vpop.f32.mrb[2].mxu1 }
  0xde   :  { %v156_v50 = vmax.f32 %v109_v42, 0.0  ;;  %v158_v51 = vmax.f32 %v150_v43, 0.0  ;;  %v113_v52 = vpop.f32.mrb[3].mxu0  ;;  %v154_v53 = vpop.f32.mrb[3].mxu1  ;;  %v707_v48 = vld [vmem:[%s5961_s4 + $0x58] sm:$0xff] }
  0xdf   :  { %v157_v54 = vmax.f32 %v111_v46, 0.0  ;;  %v159_v55 = vmax.f32 %v152_v47, 0.0  ;;  %v706_v47 = vld [vmem:[%s5961_s4 + $0x50] sm:$0xff]  ;;  %769 = vperm.xlu1 %4559, %v707_v48   ;;  %v1042_v52 = vld [vmem:[%s5961_s4 + $0x88] sm:$0xff] }
  0xe0   :  { %764 = vperm.xlu0 %4558, %v706_v47   ;;  %v1043_v53 = vld [vmem:[%s5961_s4 + $0x90] sm:$0xff] }
  0xe1   :  { %v168_v56 = vpack.c.bf16 %v157_v54, %v156_v50  ;;  %v169_v57 = vpack.c.bf16 %v159_v55, %v158_v51  ;;  %v1041_v51 = vld [vmem:[%s5961_s4 + $0x80] sm:$0xff]  ;;  %v1044_v54 = vld [vmem:[%s5961_s4 + $0x98] sm:$0xff] }
  0xe3   :  { %4453 = vmatprep.mubr.bf16.mxu0 %v168_v56  ;;  %4473 = vmatprep.mubr.bf16.mxu1 %v168_v56 }
  0xe4   :  { %4454 = vmatmul.mubr.bf16.vlgmr.msra.gmra.mrb[4].mxu0 %v169_v57  ;;  %4474 = vmatmul.mubr.bf16.vlgmr.msra.gmra.mrb[4].mxu1 %v169_v57 }
  0xe5   :  { %4478 = vmatpush3.bf16.msra.mxu0 %v4580_v27  ;;  %4498 = vmatpush3.bf16.msra.mxu1 %v4581_v28 }
  0xe6   :  { %4493 = vmatprep.mubr.bf16.mxu0 %v168_v56  ;;  %4513 = vmatprep.mubr.bf16.mxu1 %v168_v56 }
  0xe7   :  { %4479 = vmatprep.subr.bf16.mxu0 %v4582_v58  ;;  %4499 = vmatprep.subr.bf16.mxu1 %v4583_v59 }
  0xe8   :  { %1051 = vperm.xlu0 %4558, %v1041_v51   ;;  %1056 = vperm.xlu1 %4559, %v1042_v52  }
  0xe9   :  { %4480 = vmatpush3.bf16.msra.mxu0 %v4582_v58  ;;  %4500 = vmatpush3.bf16.msra.mxu1 %v4583_v59 }
  0xea   :  { %4481 = vmatprep.subr.bf16.mxu0 %v4584_v60  ;;  %4501 = vmatprep.subr.bf16.mxu1 %v4585_v61 }
  0xec   :  { %1061 = vperm.xlu0 %4558, %v1043_v53   ;;  %1066 = vperm.xlu1 %4559, %v1044_v54  }
  0xed   :  { %4482 = vmatpush3.bf16.msra.mxu0 %v4584_v60  ;;  %4502 = vmatpush3.bf16.msra.mxu1 %v4585_v61  ;;  %v1045_v60 = vld [vmem:[%s5961_s4 + $0xa0] sm:$0xff] }
  0xee   :  { %4483 = vmatprep.subr.bf16.mxu0 %v4586_v62  ;;  %4503 = vmatprep.subr.bf16.mxu1 %v4587_v63 }
  0xf0   :  { %1071 = vperm.xlu0 %4558, %v1045_v60   ;;  %v4600_v60 = vld [vmem:[%s5959_s2 + $0x120] sm:$0xff]  }
  0xf1   :  { %4484 = vmatpush3.bf16.msra.mxu0 %v4586_v62  ;;  %4504 = vmatpush3.bf16.msra.mxu1 %v4587_v63  ;;  %v1046_v63 = vld [vmem:[%s5961_s4 + $0xa8] sm:$0xff] }
  0xf2   :  { %4485 = vmatprep.subr.bf16.mxu0 %v4588_v0  ;;  %4505 = vmatprep.subr.bf16.mxu1 %v4589_v1 }
  0xf3   :  { %1076 = vperm.xlu1 %4559, %v1046_v63   ;;  %v4603_v63 = vld [vmem:[%s5959_s2 + $0x138] sm:$0xff]  }
  0xf5   :  { %4486 = vmatpush3.bf16.msra.mxu0 %v4588_v0  ;;  %4506 = vmatpush3.bf16.msra.mxu1 %v4589_v1  ;;  %v1047_v0 = vld [vmem:[%s5961_s4 + $0xb0] sm:$0xff]  ;;  %v1048_v1 = vld [vmem:[%s5961_s4 + $0xb8] sm:$0xff] }
  0xf6   :  { %4487 = vmatprep.subr.bf16.mxu0 %v4590_v3  ;;  %4507 = vmatprep.subr.bf16.mxu1 %v4591_v4 }
  0xf7   :  { %1081 = vperm.xlu0 %4558, %v1047_v0   ;;  %1086 = vperm.xlu1 %4559, %v1048_v1   ;;  %v735_v0 = vpop.permute.xlu0 %734  ;;  %v715_v1 = vpop.permute.xlu1 %714 }
  0xf9   :  { %4488 = vmatpush3.bf16.msra.mxu0 %v4590_v3  ;;  %4508 = vmatpush3.bf16.msra.mxu1 %v4591_v4 }
  0xfa   :  { %4489 = vmatprep.subr.bf16.mxu0 %v4592_v5  ;;  %4509 = vmatprep.subr.bf16.mxu1 %v4593_v6 }
  0xfd   :  { %4490 = vmatpush3.bf16.msra.mxu0 %v4592_v5  ;;  %4510 = vmatpush3.bf16.msra.mxu1 %v4593_v6  ;;  %v1384_v5 = vld [vmem:[%s5961_s4 + $0xc0] sm:$0xff] }
  0xfe   :  { %4491 = vmatprep.subr.bf16.mxu0 %v4594_v7  ;;  %4511 = vmatprep.subr.bf16.mxu1 %v4595_v8 }
  0xff   :  { %1390 = vperm.xlu0 %4558, %v1384_v5  }
 0x101   :  { %4492 = vmatpush3.bf16.msra.mxu0 %v4594_v7  ;;  %4512 = vmatpush3.bf16.msra.mxu1 %v4595_v8  ;;  %v1385_v8 = vld [vmem:[%s5961_s4 + $0xc8] sm:$0xff] }
 0x102   :  { %1395 = vperm.xlu1 %4559, %v1385_v8  }
 0x104   :  { %4494 = vmatmul.mubr.bf16.vlgmr.msra.gmra.mrb[8].mxu0 %v169_v57  ;;  %4514 = vmatmul.mubr.bf16.vlgmr.msra.gmra.mrb[8].mxu1 %v169_v57 }
 0x105   :  { %1154 = vmatprep.mubr.bf16.mxu1 %v4866_v2  ;;  %4533 = vmatprep.mubr.msk.bf16.mxu0 %vm288_vm2, %v4596_v9  ;;  %v1386_v9 = vld [vmem:[%s5961_s4 + $0xd0] sm:$0xff] }
 0x106   :  { %1400 = vperm.xlu0 %4558, %v1386_v9   ;;  %1405 = vperm.xlu1 %4559, %v1387_v10  }
 0x10a   :  { %2045 = vperm.xlu0 %4558, %v1978_v19  }
 0x1b7   :  { %v4455_v23 = vpop.f32.mrb[4].mxu0  ;;  %v4475_v24 = vpop.f32.mrb[4].mxu1 }
 0x1b8   :  { %v278_v25 = vadd.f32 %v4455_v23, %v5059_v22  ;;  %v400_v26 = vadd.f32 %v4475_v24, %v5059_v22  ;;  %v269_v27 = vpop.f32.mrb[5].mxu0  ;;  %v391_v28 = vpop.f32.mrb[5].mxu1 }
 0x1b9   :  { %v270_v31 = vadd.f32 %v269_v27, %v5059_v22  ;;  %v392_v32 = vadd.f32 %v391_v28, %v5059_v22  ;;  %v4456_v33 = vpop.f32.mrb[6].mxu0  ;;  %v4476_v34 = vpop.f32.mrb[6].mxu1 }
 0x1ba   :  { %v286_v35 = vmax.f32 %v278_v25, 0.0  ;;  %v408_v36 = vmax.f32 %v400_v26, 0.0  ;;  %v281_v37 = vadd.f32 %v4456_v33, %v5059_v22  ;;  %v403_v38 = vadd.f32 %v4476_v34, %v5059_v22  ;;  %v272_v39 = vpop.f32.mrb[7].mxu0  ;;  %v394_v40 = vpop.f32.mrb[7].mxu1 }
 0x1bb   :  { %v284_v41 = vmax.f32 %v270_v31, 0.0  ;;  %v406_v42 = vmax.f32 %v392_v32, 0.0  ;;  %v273_v43 = vadd.f32 %v272_v39, %v5059_v22  ;;  %v395_v44 = vadd.f32 %v394_v40, %v5059_v22 }
 0x1bc   :  { %291 = vst.msk [vmem:[#allocation3 + $0x10] sm:$0xff] %vm288_vm2, %v286_v35  ;;  %412 = vst.msk [vmem:[#allocation3 + $0x30] sm:$0xff] %vm288_vm2, %v408_v36  ;;  %v287_v45 = vmax.f32 %v281_v37, 0.0  ;;  %v409_v46 = vmax.f32 %v403_v38, 0.0 }
 0x1bd   :  { %289 = vst.msk [vmem:[#allocation3] sm:$0xff] %vm288_vm2, %v284_v41  ;;  %410 = vst.msk [vmem:[#allocation3 + $0x20] sm:$0xff] %vm288_vm2, %v406_v42  ;;  %v285_v49 = vmax.f32 %v273_v43, 0.0  ;;  %v407_v50 = vmax.f32 %v395_v44, 0.0 }
 0x1be   :  { %292 = vst.msk [vmem:[#allocation3 + $0x18] sm:$0xff] %vm288_vm2, %v287_v45  ;;  %413 = vst.msk [vmem:[#allocation3 + $0x38] sm:$0xff] %vm288_vm2, %v409_v46 }
 0x1bf   :  { %290 = vst.msk [vmem:[#allocation3 + $0x8] sm:$0xff] %vm288_vm2, %v285_v49  ;;  %411 = vst.msk [vmem:[#allocation3 + $0x28] sm:$0xff] %vm288_vm2, %v407_v50 }
 0x1c3   :  { %v658_v59 = vld [vmem:[#allocation3 + $0x10] sm:$0xff] }
 0x1c4   :  { %v656_v55 = vld [vmem:[#allocation3] sm:$0xff]  ;;  %v662_v18 = vld [vmem:[#allocation3 + $0x30] sm:$0xff] }
 0x1c5   :  { %v659_v57 = vld [vmem:[#allocation3 + $0x18] sm:$0xff]  ;;  %v660_v4 = vld [vmem:[#allocation3 + $0x20] sm:$0xff] }
 0x1c6   :  { %v657_v56 = vld [vmem:[#allocation3 + $0x8] sm:$0xff]  ;;  %v673_v62 = vpack.c.bf16 %v659_v57, %v658_v59  ;;  %v663_v11 = vld [vmem:[#allocation3 + $0x38] sm:$0xff] }
 0x1c7   :  { %v672_v58 = vpack.c.bf16 %v657_v56, %v656_v55  ;;  %v661_v3 = vld [vmem:[#allocation3 + $0x28] sm:$0xff]  ;;  %v675_v26 = vpack.c.bf16 %v663_v11, %v662_v18  ;;  %v4599_v59 = vld [vmem:[%s5959_s2 + $0x118] sm:$0xff]  }
 0x1c8   :  { %v860_v6 = vsel %vm288_vm2, %v673_v62, 0  ;;  %v674_v7 = vpack.c.bf16 %v661_v3, %v660_v4  ;;  %v4597_v57 = vld [vmem:[%s5959_s2 + $0x108] sm:$0xff]   ;;  %v740_v3 = vpop.permute.xlu0 %739  ;;  %v720_v4 = vpop.permute.xlu1 %719 }
 0x1c9   :  { %4549 = vmatprep.subr.msk.bf16.mxu0 %vm288_vm2, %v672_v58  ;;  %v857_v61 = vsel %vm288_vm2, %v672_v58, 0  ;;  %v4598_v58 = vld [vmem:[%s5959_s2 + $0x110] sm:$0xff]  }
 0x1ca   :  { %4518 = vmatpush3.bf16.xpose.msra.mxu0 %v857_v61  ;;  %v863_v25 = vsel %vm288_vm2, %v674_v7, 0  ;;  %v4601_v61 = vld [vmem:[%s5959_s2 + $0x128] sm:$0xff]  }
 0x1cb   :  { %4550 = vmatprep.subr.msk.bf16.mxu0 %vm288_vm2, %v673_v62  ;;  %v4602_v62 = vld [vmem:[%s5959_s2 + $0x130] sm:$0xff]  }
 0x1cc   :  { %v745_v5 = vpop.permute.xlu0 %744 }
 0x1d2   :  { %4520 = vmatpush3.bf16.xpose.msra.mxu0 %v860_v6  ;;  %v750_v6 = vpop.permute.xlu1 %749 }
 0x1d3   :  { %4551 = vmatprep.subr.msk.bf16.mxu0 %vm288_vm2, %v674_v7  ;;  %v725_v7 = vpop.permute.xlu0 %724 }
 0x1d6   :  { %v730_v8 = vpop.permute.xlu1 %729 }
 0x1d7   :  { %v4495_v12 = vpop.f32.mrb[8].mxu0  ;;  %v4515_v13 = vpop.f32.mrb[8].mxu1 }
 0x1d8   :  { %v521_v14 = vadd.f32 %v4495_v12, %v5059_v22  ;;  %v642_v15 = vadd.f32 %v4515_v13, %v5059_v22  ;;  %v512_v16 = vpop.f32.mrb[9].mxu0  ;;  %v633_v17 = vpop.f32.mrb[9].mxu1 }
 0x1d9   :  { %v513_v20 = vadd.f32 %v512_v16, %v5059_v22  ;;  %v634_v21 = vadd.f32 %v633_v17, %v5059_v22  ;;  %v4496_v23 = vpop.f32.mrb[10].mxu0  ;;  %v4516_v24 = vpop.f32.mrb[10].mxu1 }
 0x1da   :  { %v529_v27 = vmax.f32 %v521_v14, 0.0  ;;  %v650_v28 = vmax.f32 %v642_v15, 0.0  ;;  %v524_v29 = vadd.f32 %v4496_v23, %v5059_v22  ;;  %v645_v30 = vadd.f32 %v4516_v24, %v5059_v22  ;;  %v515_v31 = vpop.f32.mrb[11].mxu0  ;;  %v636_v32 = vpop.f32.mrb[11].mxu1  ;;  %4522 = vmatpush3.bf16.xpose.msra.mxu0 %v863_v25 }
 0x1db   :  { %v527_v33 = vmax.f32 %v513_v20, 0.0  ;;  %v648_v34 = vmax.f32 %v634_v21, 0.0  ;;  %v516_v35 = vadd.f32 %v515_v31, %v5059_v22  ;;  %v637_v36 = vadd.f32 %v636_v32, %v5059_v22  ;;  %4552 = vmatprep.subr.msk.bf16.mxu0 %vm288_vm2, %v675_v26  ;;  %v775_v9 = vpop.permute.xlu0 %774  ;;  %v5189_v10 = vpop.permute.xlu1 %779 }
 0x1dc   :  { %533 = vst.msk [vmem:[#allocation3 + $0x50] sm:$0xff] %vm288_vm2, %v529_v27  ;;  %654 = vst.msk [vmem:[#allocation3 + $0x70] sm:$0xff] %vm288_vm2, %v650_v28  ;;  %v530_v37 = vmax.f32 %v524_v29, 0.0  ;;  %v651_v38 = vmax.f32 %v645_v30, 0.0  ;;  %v866_v22 = vsel %vm288_vm2, %v675_v26, 0 }
 0x1dd   :  { %531 = vst.msk [vmem:[#allocation3 + $0x40] sm:$0xff] %vm288_vm2, %v527_v33  ;;  %652 = vst.msk [vmem:[#allocation3 + $0x60] sm:$0xff] %vm288_vm2, %v648_v34  ;;  %v528_v39 = vmax.f32 %v516_v35, 0.0  ;;  %v649_v40 = vmax.f32 %v637_v36, 0.0 }
 0x1de   :  { %534 = vst.msk [vmem:[#allocation3 + $0x58] sm:$0xff] %vm288_vm2, %v530_v37  ;;  %655 = vst.msk [vmem:[#allocation3 + $0x78] sm:$0xff] %vm288_vm2, %v651_v38 }
 0x1df   :  { %532 = vst.msk [vmem:[#allocation3 + $0x48] sm:$0xff] %vm288_vm2, %v528_v39  ;;  %653 = vst.msk [vmem:[#allocation3 + $0x68] sm:$0xff] %vm288_vm2, %v649_v40  ;;  %v755_v18 = vpop.permute.xlu0 %754  ;;  %v760_v23 = vpop.permute.xlu1 %759 }
 0x1e2   :  { %4524 = vmatpush3.bf16.xpose.msra.mxu0 %v866_v22 }
 0x1e3   :  { %v666_v45 = vld [vmem:[#allocation3 + $0x50] sm:$0xff]  ;;  %v785_v31 = vpop.permute.xlu0 %784  ;;  %v790_v36 = vpop.permute.xlu1 %789 }
 0x1e4   :  { %v664_v41 = vld [vmem:[#allocation3 + $0x40] sm:$0xff]  ;;  %v670_v53 = vld [vmem:[#allocation3 + $0x70] sm:$0xff] }
 0x1e5   :  { %v667_v43 = vld [vmem:[#allocation3 + $0x58] sm:$0xff]  ;;  %v668_v49 = vld [vmem:[#allocation3 + $0x60] sm:$0xff] }
 0x1e6   :  { %v665_v42 = vld [vmem:[#allocation3 + $0x48] sm:$0xff]  ;;  %v677_v47 = vpack.c.bf16 %v667_v43, %v666_v45  ;;  %v671_v52 = vld [vmem:[#allocation3 + $0x78] sm:$0xff] }
 0x1e7   :  { %v676_v44 = vpack.c.bf16 %v665_v42, %v664_v41  ;;  %v669_v48 = vld [vmem:[#allocation3 + $0x68] sm:$0xff]  ;;  %v679_v55 = vpack.c.bf16 %v671_v52, %v670_v53  ;;  %v765_v42 = vpop.permute.xlu0 %764 }
 0x1e8   :  { %v872_v50 = vsel %vm288_vm2, %v677_v47, 0  ;;  %v678_v51 = vpack.c.bf16 %v669_v48, %v668_v49 }
 0x1e9   :  { %4553 = vmatprep.subr.msk.bf16.mxu0 %vm288_vm2, %v676_v44  ;;  %v869_v46 = vsel %vm288_vm2, %v676_v44, 0  ;;  %v878_v56 = vsel %vm288_vm2, %v679_v55, 0 }
 0x1ea   :  { %4526 = vmatpush3.bf16.xpose.msra.mxu0 %v869_v46  ;;  %v875_v54 = vsel %vm288_vm2, %v678_v51, 0 }
 0x1eb   :  { %4554 = vmatprep.subr.msk.bf16.mxu0 %vm288_vm2, %v677_v47  ;;  %v770_v47 = vpop.permute.xlu1 %769 }
 0x1f2   :  { %4528 = vmatpush3.bf16.xpose.msra.mxu0 %v872_v50 }
 0x1f3   :  { %4555 = vmatprep.subr.msk.bf16.mxu0 %vm288_vm2, %v678_v51 }
 0x1fa   :  { %4530 = vmatpush3.bf16.xpose.msra.mxu0 %v875_v54 }
 0x1fb   :  { %4556 = vmatprep.subr.msk.bf16.mxu0 %vm288_vm2, %v679_v55 }
 0x202   :  { %4532 = vmatpush3.bf16.xpose.msra.mxu0 %v878_v56 }
 0x209   :  { %4534 = vmatmul.mubr.msk.bf16.vlgmr.msra.gmra.mrb[12].mxu0 %vm288_vm2, %v4597_v57  ;;  %v4604_v57 = vld [vmem:[%s5959_s2 + $0x140] sm:$0xff]  }
 0x20a   :  { %4537 = vmatprep.mubr.msk.bf16.mxu0 %vm288_vm2, %v4598_v58 }
 0x211   :  { %4538 = vmatmul.mubr.msk.bf16.gmra.mrb[16].mxu0 %vm288_vm2, %v4599_v59 }
 0x212   :  { %4541 = vmatprep.mubr.msk.bf16.mxu0 %vm288_vm2, %v4600_v60 }
 0x219   :  { %4542 = vmatmul.mubr.msk.bf16.gmra.mrb[20].mxu0 %vm288_vm2, %v4601_v61 }
 0x21a   :  { %4545 = vmatprep.mubr.msk.bf16.mxu0 %vm288_vm2, %v4602_v62 }
 0x221   :  { %4546 = vmatmul.mubr.msk.bf16.gmra.mrb[24].mxu0 %vm288_vm2, %v4603_v63 }
 0x222   :  { %1563 = vmatprep.mubr.bf16.mxu0 %v4866_v2 }
 0x2dc   :  { %v4535_v11 = vpop.f32.mrb[12].mxu0 }
 0x2dd   :  { %v923_v12 = vadd.f32 %v4535_v11, %v725_v7  ;;  %v914_v13 = vpop.f32.mrb[13].mxu0  ;;  %v4605_v11 = vld [vmem:[%s5959_s2 + $0x148] sm:$0xff]  }
 0x2de   :  { %v915_v14 = vadd.f32 %v914_v13, %v715_v1  ;;  %v4536_v15 = vpop.f32.mrb[14].mxu0 }
 0x2df   :  { %v926_v16 = vadd.f32 %v4536_v15, %v730_v8  ;;  %v917_v17 = vpop.f32.mrb[15].mxu0  ;;  %v979_v20 = vmax.f32 %v923_v12, 0.0 }
 0x2e0   :  { %v918_v19 = vadd.f32 %v917_v17, %v720_v4  ;;  %v977_v24 = vmax.f32 %v915_v14, 0.0  ;;  %v5220_v14 = vpop.permute.xlu0 %1051 }
 0x2e1   :  { %v980_v21 = vmax.f32 %v926_v16, 0.0 }
 0x2e2   :  { %v978_v25 = vmax.f32 %v918_v19, 0.0 }
 0x2e3   :  { %v1029_v26 = vpack.c.bf16 %v980_v21, %v979_v20 }
 0x2e4   :  { %v1025_v27 = vpack.c.bf16 %v978_v25, %v977_v24  ;;  %v4539_v28 = vpop.f32.mrb[16].mxu0 }
 0x2e5   :  { %v939_v29 = vadd.f32 %v4539_v28, %v745_v5  ;;  %v930_v30 = vpop.f32.mrb[17].mxu0 }
 0x2e6   :  { %v931_v32 = vadd.f32 %v930_v30, %v735_v0  ;;  %v4540_v33 = vpop.f32.mrb[18].mxu0  ;;  %v5228_v30 = vpop.permute.xlu0 %1061 }
 0x2e7   :  { %v942_v34 = vadd.f32 %v4540_v33, %v750_v6  ;;  %v933_v35 = vpop.f32.mrb[19].mxu0  ;;  %v983_v38 = vmax.f32 %v939_v29, 0.0 }
 0x2e8   :  { %v934_v37 = vadd.f32 %v933_v35, %v740_v3  ;;  %v981_v40 = vmax.f32 %v931_v32, 0.0 }
 0x2e9   :  { %v984_v39 = vmax.f32 %v942_v34, 0.0 }
 0x2ea   :  { %v982_v22 = vmax.f32 %v934_v37, 0.0 }
 0x2eb   :  { %v1030_v41 = vpack.c.bf16 %v984_v39, %v983_v38  ;;  %v5237_v38 = vld [vmem:[%s5959_s2 + $0x160] sm:$0xff]  }
 0x2ec   :  { %v1026_v43 = vpack.c.bf16 %v982_v22, %v981_v40  ;;  %v4543_v44 = vpop.f32.mrb[20].mxu0 }
 0x2ed   :  { %v955_v45 = vadd.f32 %v4543_v44, %v765_v42  ;;  %v946_v46 = vpop.f32.mrb[21].mxu0 }
 0x2ee   :  { %v947_v48 = vadd.f32 %v946_v46, %v755_v18  ;;  %v4544_v49 = vpop.f32.mrb[22].mxu0  ;;  %1122 = vmatprep.subr.bf16.mxu1 %v1026_v43  ;;  %v5223_v18 = vpop.permute.xlu1 %1056 }
 0x2ef   :  { %v958_v50 = vadd.f32 %v4544_v49, %v770_v47  ;;  %v949_v51 = vpop.f32.mrb[23].mxu0  ;;  %1123 = vmatpush1.bf16.msra.mxu1 %v1025_v27  ;;  %v987_v53 = vmax.f32 %v955_v45, 0.0  ;;  %v5244_v46 = vpop.permute.xlu0 %1071 }
 0x2f0   :  { %v950_v52 = vadd.f32 %v949_v51, %v760_v23  ;;  %1124 = vmatprep.subr.bf16.mxu1 %v1030_v41  ;;  %v985_v55 = vmax.f32 %v947_v48, 0.0 }
 0x2f1   :  { %v988_v54 = vmax.f32 %v958_v50, 0.0 }
 0x2f2   :  { %v986_v56 = vmax.f32 %v950_v52, 0.0  ;;  %v5231_v35 = vpop.permute.xlu1 %1066 }
 0x2f3   :  { %v1031_v58 = vpack.c.bf16 %v988_v54, %v987_v53  ;;  %1125 = vmatpush1.bf16.msra.mxu1 %v1029_v26  ;;  %v5253_v54 = vld [vmem:[%s5959_s2 + $0x168] sm:$0xff]  }
 0x2f4   :  { %v1027_v59 = vpack.c.bf16 %v986_v56, %v985_v55  ;;  %v4547_v60 = vpop.f32.mrb[24].mxu0 }
 0x2f5   :  { %v971_v61 = vadd.f32 %v4547_v60, %v785_v31  ;;  %v962_v62 = vpop.f32.mrb[25].mxu0 }
 0x2f6   :  { %v963_v63 = vadd.f32 %v962_v62, %v775_v9  ;;  %v4548_v0 = vpop.f32.mrb[26].mxu0  ;;  %4291 = vmatmul.mubr.msk.bf16.vlgmr.msra.gmra.mrb[12].mxu1 %vm1109_vm3, %v4604_v57  ;;  %v4606_v9 = vld [vmem:[%s5959_s2 + $0x150] sm:$0xff]   ;;  %v5247_v51 = vpop.permute.xlu1 %1076 }
 0x2f7   :  { %v974_v1 = vadd.f32 %v4548_v0, %v790_v36  ;;  %v965_v3 = vpop.f32.mrb[27].mxu0  ;;  %1164 = vmatprep.mubr.bf16.mxu1 %v4866_v2  ;;  %v991_v5 = vmax.f32 %v971_v61, 0.0 }
 0x2f8   :  { %v966_v4 = vadd.f32 %v965_v3, %v5189_v10  ;;  %v989_v7 = vmax.f32 %v963_v63, 0.0  ;;  %v4607_v10 = vld [vmem:[%s5959_s2 + $0x158] sm:$0xff]   ;;  %v5263_v63 = vpop.permute.xlu0 %1081 }
 0x2f9   :  { %v992_v6 = vmax.f32 %v974_v1, 0.0 }
 0x2fa   :  { %v990_v8 = vmax.f32 %v966_v4, 0.0 }
 0x2fb   :  { %v1032_v12 = vpack.c.bf16 %v992_v6, %v991_v5  ;;  %v5266_v5 = vpop.permute.xlu1 %1086 }
 0x2fc   :  { %v1028_v13 = vpack.c.bf16 %v990_v8, %v989_v7 }
 0x2fe   :  { %4292 = vmatmul.mubr.msk.bf16.gmra.mrb[16].mxu1 %vm1109_vm3, %v4605_v11  ;;  %1195 = vmatprep.subr.bf16.mxu1 %v1028_v13 }
 0x2ff   :  { %1196 = vmatpush1.bf16.msra.mxu1 %v1027_v59  ;;  %1174 = vmatprep.mubr.bf16.mxu1 %v4866_v2 }
 0x300   :  { %1197 = vmatprep.subr.bf16.mxu1 %v1032_v12 }
 0x303   :  { %1198 = vmatpush1.bf16.msra.mxu1 %v1031_v58 }
 0x306   :  { %4293 = vmatmul.mubr.msk.bf16.gmra.mrb[20].mxu1 %vm1109_vm3, %v4606_v9 }
 0x307   :  { %1184 = vmatprep.mubr.bf16.mxu1 %v4866_v2 }
 0x30e   :  { %4294 = vmatmul.mubr.msk.bf16.gmra.mrb[24].mxu1 %vm1109_vm3, %v4607_v10 }
 0x30f   :  { %1227 = vmatprep.mubr.bf16.mxu1 %v4866_v2 }
 0x316   :  { %4295 = vmatmul.mubr.msk.bf16.vlgmr.msra.gmra.mrb[28].mxu1 %vm1109_vm3, %v4604_v57 }
 0x317   :  { %1237 = vmatprep.mubr.bf16.mxu1 %v4866_v2 }
 0x31e   :  { %4296 = vmatmul.mubr.msk.bf16.gmra.mrb[32].mxu1 %vm1109_vm3, %v4605_v11 }
 0x31f   :  { %1247 = vmatprep.mubr.bf16.mxu1 %v4866_v2 }
 0x326   :  { %4297 = vmatmul.mubr.msk.bf16.gmra.mrb[36].mxu1 %vm1109_vm3, %v4606_v9 }
 0x327   :  { %1257 = vmatprep.mubr.bf16.mxu1 %v4866_v2 }
 0x32e   :  { %4298 = vmatmul.mubr.msk.bf16.gmra.mrb[40].mxu1 %vm1109_vm3, %v4607_v10 }
 0x32f   :  { %1457 = vmatprep.mubr.bf16.mxu1 %v4866_v2 }
 0x3c9   :  { %v1156_v15 = vpop.f32.mrb[12].mxu1 }
 0x3ca   :  { %v1157_v16 = vadd.f32 %v1156_v15, %v5220_v14  ;;  %v1158_v17 = vpop.f32.mrb[13].mxu1 }
 0x3cb   :  { %v1159_v19 = vadd.f32 %v1158_v17, %v5220_v14  ;;  %v1160_v20 = vpop.f32.mrb[14].mxu1 }
 0x3cc   :  { %v1161_v21 = vadd.f32 %v1160_v20, %v5223_v18  ;;  %v1162_v23 = vpop.f32.mrb[15].mxu1  ;;  %v1268_v25 = vmax.f32 %v1157_v16, 0.0 }
 0x3cd   :  { %v1163_v24 = vadd.f32 %v1162_v23, %v5223_v18  ;;  %v1269_v27 = vmax.f32 %v1159_v19, 0.0 }
 0x3ce   :  { %v1272_v26 = vmax.f32 %v1161_v21, 0.0 }
 0x3cf   :  { %v1273_v28 = vmax.f32 %v1163_v24, 0.0 }
 0x3d0   :  { %v1364_v29 = vpack.c.bf16 %v1272_v26, %v1268_v25 }
 0x3d1   :  { %v1365_v31 = vpack.c.bf16 %v1273_v28, %v1269_v27  ;;  %v1166_v32 = vpop.f32.mrb[16].mxu1 }
 0x3d2   :  { %v1167_v33 = vadd.f32 %v1166_v32, %v5228_v30  ;;  %v1168_v34 = vpop.f32.mrb[17].mxu1 }
 0x3d3   :  { %v1169_v36 = vadd.f32 %v1168_v34, %v5228_v30  ;;  %v1170_v37 = vpop.f32.mrb[18].mxu1  ;;  %1425 = vmatprep.subr.bf16.mxu1 %v1365_v31 }
 0x3d4   :  { %v1171_v39 = vadd.f32 %v1170_v37, %v5231_v35  ;;  %v1172_v40 = vpop.f32.mrb[19].mxu1  ;;  %1426 = vmatpush1.bf16.msra.mxu1 %v1364_v29  ;;  %v1276_v41 = vmax.f32 %v1167_v33, 0.0 }
 0x3d5   :  { %v1173_v22 = vadd.f32 %v1172_v40, %v5231_v35  ;;  %v1277_v43 = vmax.f32 %v1169_v36, 0.0 }
 0x3d6   :  { %v1280_v42 = vmax.f32 %v1171_v39, 0.0 }
 0x3d7   :  { %v1281_v44 = vmax.f32 %v1173_v22, 0.0  ;;  %4301 = vmatmul.mubr.msk.bf16.vlgmr.msra.gmra.mrb[44].mxu1 %vm1418_vm4, %v5237_v38 }
 0x3d8   :  { %v1368_v45 = vpack.c.bf16 %v1280_v42, %v1276_v41  ;;  %1467 = vmatprep.mubr.bf16.mxu1 %v4866_v2 }
 0x3d9   :  { %v1369_v47 = vpack.c.bf16 %v1281_v44, %v1277_v43  ;;  %v1176_v48 = vpop.f32.mrb[20].mxu1 }
 0x3da   :  { %v1177_v49 = vadd.f32 %v1176_v48, %v5244_v46  ;;  %v1178_v50 = vpop.f32.mrb[21].mxu1 }
 0x3db   :  { %v1179_v52 = vadd.f32 %v1178_v50, %v5244_v46  ;;  %v1180_v53 = vpop.f32.mrb[22].mxu1  ;;  %1531 = vmatprep.subr.bf16.mxu0 %v1369_v47 }
 0x3dc   :  { %v1181_v55 = vadd.f32 %v1180_v53, %v5247_v51  ;;  %v1182_v56 = vpop.f32.mrb[23].mxu1  ;;  %1532 = vmatpush1.bf16.msra.mxu0 %v1368_v45  ;;  %v1284_v58 = vmax.f32 %v1177_v49, 0.0 }
 0x3dd   :  { %v1183_v57 = vadd.f32 %v1182_v56, %v5247_v51  ;;  %v1285_v60 = vmax.f32 %v1179_v52, 0.0 }
 0x3de   :  { %v1288_v59 = vmax.f32 %v1181_v55, 0.0 }
 0x3df   :  { %v1289_v61 = vmax.f32 %v1183_v57, 0.0  ;;  %4302 = vmatmul.mubr.msk.bf16.gmra.mrb[48].mxu1 %vm1418_vm4, %v5253_v54  ;;  %4305 = vmatmul.mubr.msk.bf16.vlgmr.msra.gmra.mrb[28].mxu0 %vm1418_vm4, %v5237_v38 }
 0x3e0   :  { %v1372_v62 = vpack.c.bf16 %v1288_v59, %v1284_v58  ;;  %1573 = vmatprep.mubr.bf16.mxu0 %v4866_v2  ;;  %1510 = vmatprep.mubr.bf16.mxu1 %v4866_v2 }
 0x3e1   :  { %v1373_v0 = vpack.c.bf16 %v1289_v61, %v1285_v60  ;;  %v1186_v1 = vpop.f32.mrb[24].mxu1 }
 0x3e2   :  { %v1187_v3 = vadd.f32 %v1186_v1, %v5263_v63  ;;  %v1188_v4 = vpop.f32.mrb[25].mxu1 }
 0x3e3   :  { %v1189_v6 = vadd.f32 %v1188_v4, %v5263_v63  ;;  %v1190_v7 = vpop.f32.mrb[26].mxu1  ;;  %1637 = vmatprep.subr.bf16.mxu0 %v1373_v0 }
 0x3e4   :  { %v1191_v8 = vadd.f32 %v1190_v7, %v5266_v5  ;;  %v1192_v11 = vpop.f32.mrb[27].mxu1  ;;  %1638 = vmatpush1.bf16.msra.mxu0 %v1372_v62  ;;  %v1292_v13 = vmax.f32 %v1187_v3, 0.0 }
 0x3e5   :  { %v1193_v12 = vadd.f32 %v1192_v11, %v5266_v5  ;;  %v1293_v10 = vmax.f32 %v1189_v6, 0.0 }
 0x3e6   :  { %v1296_v9 = vmax.f32 %v1191_v8, 0.0 }
 0x3e7   :  { %v1297_v15 = vmax.f32 %v1193_v12, 0.0  ;;  %4306 = vmatmul.mubr.msk.bf16.gmra.mrb[32].mxu0 %vm1418_vm4, %v5253_v54 }
 0x3e8   :  { %v1376_v16 = vpack.c.bf16 %v1296_v9, %v1292_v13  ;;  %1669 = vmatprep.mubr.bf16.mxu0 %v4866_v2 }
 0x3e9   :  { %v1377_v17 = vpack.c.bf16 %v1297_v15, %v1293_v10  ;;  %v1229_v19 = vpop.f32.mrb[28].mxu1 }
 0x3ea   :  { %v1230_v20 = vadd.f32 %v1229_v19, %v5220_v14  ;;  %v1231_v21 = vpop.f32.mrb[29].mxu1 }
 0x3eb   :  { %v1232_v23 = vadd.f32 %v1231_v21, %v5220_v14  ;;  %v1233_v24 = vpop.f32.mrb[30].mxu1  ;;  %1743 = vmatprep.subr.bf16.mxu0 %v1377_v17 }
 0x3ec   :  { %v1234_v25 = vadd.f32 %v1233_v24, %v5223_v18  ;;  %v1235_v26 = vpop.f32.mrb[31].mxu1  ;;  %v1270_v28 = vmax.f32 %v1230_v20, 0.0 }
 0x3ed   :  { %v1236_v27 = vadd.f32 %v1235_v26, %v5223_v18  ;;  %v1271_v31 = vmax.f32 %v1232_v23, 0.0 }
 0x3ee   :  { %v1274_v29 = vmax.f32 %v1234_v25, 0.0 }
 0x3ef   :  { %v1275_v32 = vmax.f32 %v1236_v27, 0.0  ;;  %4309 = vmatmul.mubr.msk.bf16.vlgmr.msra.gmra.mrb[36].mxu0 %vm1418_vm4, %v5237_v38 }
 0x3f0   :  { %v1366_v33 = vpack.c.bf16 %v1274_v29, %v1270_v28  ;;  %1744 = vmatpush1.bf16.msra.mxu0 %v1376_v16  ;;  %1679 = vmatprep.mubr.bf16.mxu0 %v4866_v2 }
 0x3f1   :  { %v1367_v34 = vpack.c.bf16 %v1275_v32, %v1271_v31  ;;  %v1239_v14 = vpop.f32.mrb[32].mxu1  ;;  %v5344_v31 = vld [vmem:[%s5959_s2 + $0x170] sm:$0x3] }
 0x3f2   :  { %v1240_v36 = vadd.f32 %v1239_v14, %v5228_v30  ;;  %v1241_v37 = vpop.f32.mrb[33].mxu1 }
 0x3f3   :  { %v1242_v39 = vadd.f32 %v1241_v37, %v5228_v30  ;;  %v1243_v40 = vpop.f32.mrb[34].mxu1  ;;  %1478 = vmatprep.subr.bf16.mxu1 %v1367_v34 }
 0x3f4   :  { %v1244_v18 = vadd.f32 %v1243_v40, %v5231_v35  ;;  %v1245_v22 = vpop.f32.mrb[35].mxu1  ;;  %1479 = vmatpush1.bf16.msra.mxu1 %v1366_v33  ;;  %v1278_v42 = vmax.f32 %v1240_v36, 0.0 }
 0x3f5   :  { %v1246_v41 = vadd.f32 %v1245_v22, %v5231_v35  ;;  %v1279_v44 = vmax.f32 %v1242_v39, 0.0 }
 0x3f6   :  { %v1282_v43 = vmax.f32 %v1244_v18, 0.0 }
 0x3f7   :  { %v1283_v45 = vmax.f32 %v1246_v41, 0.0  ;;  %4303 = vmatmul.mubr.msk.bf16.vlgmr.msra.gmra.mrb[52].mxu1 %vm1418_vm4, %v5237_v38  ;;  %4310 = vmatmul.mubr.msk.bf16.gmra.mrb[40].mxu0 %vm1418_vm4, %v5253_v54 }
 0x3f8   :  { %v1370_v47 = vpack.c.bf16 %v1282_v43, %v1278_v42  ;;  %1520 = vmatprep.mubr.bf16.mxu1 %v4866_v2  ;;  %1775 = vmatprep.mubr.bf16.mxu0 %v4866_v2 }
 0x3f9   :  { %v1371_v30 = vpack.c.bf16 %v1283_v45, %v1279_v44  ;;  %v1249_v48 = vpop.f32.mrb[36].mxu1 }
 0x3fa   :  { %v1250_v49 = vadd.f32 %v1249_v48, %v5244_v46  ;;  %v1251_v35 = vpop.f32.mrb[37].mxu1 }
 0x3fb   :  { %v1252_v50 = vadd.f32 %v1251_v35, %v5244_v46  ;;  %v1253_v52 = vpop.f32.mrb[38].mxu1  ;;  %1584 = vmatprep.subr.bf16.mxu1 %v1371_v30 }
 0x3fc   :  { %v1254_v53 = vadd.f32 %v1253_v52, %v5247_v51  ;;  %v1255_v55 = vpop.f32.mrb[39].mxu1  ;;  %1585 = vmatpush1.bf16.msra.mxu1 %v1370_v47  ;;  %v1286_v57 = vmax.f32 %v1250_v49, 0.0 }
 0x3fd   :  { %v1256_v56 = vadd.f32 %v1255_v55, %v5247_v51  ;;  %v1287_v59 = vmax.f32 %v1252_v50, 0.0 }
 0x3fe   :  { %v1290_v58 = vmax.f32 %v1254_v53, 0.0 }
 0x3ff   :  { %v1291_v60 = vmax.f32 %v1256_v56, 0.0  ;;  %4304 = vmatmul.mubr.msk.bf16.gmra.mrb[56].mxu1 %vm1418_vm4, %v5253_v54  ;;  %4313 = vmatmul.mubr.msk.bf16.vlgmr.msra.gmra.mrb[44].mxu0 %vm1418_vm4, %v5237_v38 }
 0x400   :  { %v1374_v61 = vpack.c.bf16 %v1290_v58, %v1286_v57  ;;  %1616 = vmatprep.mubr.bf16.mxu1 %v4866_v2  ;;  %1785 = vmatprep.mubr.bf16.mxu0 %v4866_v2 }
 0x401   :  { %v1375_v46 = vpack.c.bf16 %v1291_v60, %v1287_v59  ;;  %v1259_v62 = vpop.f32.mrb[40].mxu1 }
 0x402   :  { %v1260_v0 = vadd.f32 %v1259_v62, %v5263_v63  ;;  %v1261_v51 = vpop.f32.mrb[41].mxu1 }
 0x403   :  { %v1262_v1 = vadd.f32 %v1261_v51, %v5263_v63  ;;  %v1263_v3 = vpop.f32.mrb[42].mxu1  ;;  %1690 = vmatprep.subr.bf16.mxu1 %v1375_v46 }
 0x404   :  { %v1264_v4 = vadd.f32 %v1263_v3, %v5266_v5  ;;  %v1265_v6 = vpop.f32.mrb[43].mxu1  ;;  %v1294_v8 = vmax.f32 %v1260_v0, 0.0 }
 0x405   :  { %v1266_v7 = vadd.f32 %v1265_v6, %v5266_v5  ;;  %v1295_v12 = vmax.f32 %v1262_v1, 0.0  ;;  %v5326_v5 = vpop.permute.xlu0 %1390 }
 0x406   :  { %v1298_v11 = vmax.f32 %v1264_v4, 0.0 }
 0x407   :  { %v1299_v13 = vmax.f32 %v1266_v7, 0.0  ;;  %4307 = vmatmul.mubr.msk.bf16.vlgmr.msra.gmra.mrb[60].mxu1 %vm1418_vm4, %v5237_v38  ;;  %4314 = vmatmul.mubr.msk.bf16.gmra.mrb[48].mxu0 %vm1418_vm4, %v5253_v54  ;;  %v5396_v7 = vpop.permute.xlu1 %1395 }
 0x408   :  { %v1378_v9 = vpack.c.bf16 %v1298_v11, %v1294_v8  ;;  %1691 = vmatpush1.bf16.msra.mxu1 %v1374_v61  ;;  %1626 = vmatprep.mubr.bf16.mxu1 %v4866_v2 }
 0x409   :  { %v1379_v63 = vpack.c.bf16 %v1299_v13, %v1295_v12  ;;  %2179 = vmatprep.mubr.bf16.mxu0 %v4866_v2 }
 0x40b   :  { %1796 = vmatprep.subr.bf16.mxu1 %v1379_v63 }
 0x40f   :  { %4308 = vmatmul.mubr.msk.bf16.gmra.mrb[64].mxu1 %vm1418_vm4, %v5253_v54 }
 0x410   :  { %1722 = vmatprep.mubr.bf16.mxu1 %v4866_v2 }
 0x417   :  { %4311 = vmatmul.mubr.msk.bf16.vlgmr.msra.gmra.mrb[68].mxu1 %vm1418_vm4, %v5237_v38 }
 0x418   :  { %1797 = vmatpush1.bf16.msra.mxu1 %v1378_v9  ;;  %1732 = vmatprep.mubr.bf16.mxu1 %v4866_v2 }
 0x41f   :  { %4312 = vmatmul.mubr.msk.bf16.gmra.mrb[72].mxu1 %vm1418_vm4, %v5253_v54 }
 0x420   :  { %1828 = vmatprep.mubr.bf16.mxu1 %v4866_v2 }
 0x427   :  { %4315 = vmatmul.mubr.msk.bf16.vlgmr.msra.gmra.mrb[76].mxu1 %vm1418_vm4, %v5237_v38 }
 0x428   :  { %1838 = vmatprep.mubr.bf16.mxu1 %v4866_v2 }
 0x42f   :  { %4316 = vmatmul.mubr.msk.bf16.gmra.mrb[80].mxu1 %vm1418_vm4, %v5253_v54 }
 0x430   :  { %2261 = vmatprep.mubr.bf16.mxu1 %v4866_v2 }
 0x4aa   :  { %v1459_v10 = vpop.f32.mrb[44].mxu1 }
 0x4ab   :  { %v1460_v15 = vadd.f32 %v1459_v10, %v5326_v5  ;;  %v1461_v16 = vpop.f32.mrb[45].mxu1 }
 0x4ac   :  { %v1462_v17 = vadd.f32 %v1461_v16, %v5326_v5  ;;  %v5330_v19 = vpop.f32.mrb[46].mxu1 }
 0x4ad   :  { %v1849_v20 = vmax.f32 %v1460_v15, 0.0  ;;  %v5332_v21 = vpop.f32.mrb[47].mxu1  ;;  %v1464_v11 = vadd.f32 %v5330_v19, %v5396_v7 }
 0x4ae   :  { %v1850_v38 = vmax.f32 %v1462_v17, 0.0  ;;  %v1466_v13 = vadd.f32 %v5332_v21, %v5396_v7 }
 0x4af   :  { %v2011_v23 = vpack.c.bf16 %v1849_v20, %v1849_v20 }
 0x4b0   :  { %v2012_v24 = vpack.c.bf16 %v1850_v38, %v1850_v38  ;;  %v1865_v38 = vmax.f32 %v1464_v11, 0.0 }
 0x4b1   :  { %v2052_v54 = vsel %vm61_vm0, %v2011_v23, 0 }
 0x4b2   :  { %v5335_v25 = vpop.f32.mrb[48].mxu1  ;;  %v1565_v26 = vpop.f32.mrb[28].mxu0  ;;  %4317 = vmatprep.subr.msk.bf16.mxu0 %vm61_vm0, %v2012_v24 }
 0x4b3   :  { %v1566_v27 = vadd.f32 %v1565_v26, %v5326_v5  ;;  %v5339_v28 = vpop.f32.mrb[49].mxu1  ;;  %v1567_v29 = vpop.f32.mrb[29].mxu0  ;;  %2148 = vmatpush1.bf16.msra.mxu0 %v2052_v54  ;;  %v1866_v54 = vmax.f32 %v1466_v13, 0.0 }
 0x4b4   :  { %v1568_v32 = vadd.f32 %v1567_v29, %v5326_v5  ;;  %v5347_v33 = vpop.f32.mrb[50].mxu1  ;;  %v5349_v34 = vpop.f32.mrb[30].mxu0 }
 0x4b5   :  { %v1853_v14 = vmax.f32 %v1566_v27, 0.0  ;;  %v5351_v36 = vpop.f32.mrb[51].mxu1  ;;  %v5353_v37 = vpop.f32.mrb[31].mxu0 }
 0x4b6   :  { %v1854_v39 = vmax.f32 %v1568_v32, 0.0  ;;  %4318 = vmatmul.mubr.msk.bf16.vlgmr.msra.gmra.mrb[52].mxu0 %vm57_vm1, %v5344_v31  ;;  %v1572_v26 = vadd.f32 %v5353_v37, %v5396_v7 }
 0x4b7   :  { %v2015_v40 = vpack.c.bf16 %v1853_v14, %v1853_v14  ;;  %2220 = vmatprep.mubr.bf16.mxu0 %v4866_v2  ;;  %v2027_v14 = vpack.c.bf16 %v1865_v38, %v1865_v38 }
 0x4b8   :  { %v2016_v18 = vpack.c.bf16 %v1854_v39, %v1854_v39 }
 0x4b9   :  { %v2064_v22 = vsel %vm61_vm0, %v2015_v40, 0  ;;  %v2028_v40 = vpack.c.bf16 %v1866_v54, %v1866_v54 }
 0x4ba   :  { %v5359_v41 = vpop.f32.mrb[32].mxu0  ;;  %4321 = vmatprep.subr.msk.bf16.mxu1 %vm61_vm0, %v2016_v18  ;;  %v1570_v18 = vadd.f32 %v5349_v34, %v5396_v7 }
 0x4bb   :  { %v5362_v42 = vpop.f32.mrb[33].mxu0  ;;  %2230 = vmatpush1.bf16.msra.mxu1 %v2064_v22  ;;  %v1870_v22 = vmax.f32 %v1572_v26, 0.0 }
 0x4bc   :  { %v5364_v43 = vpop.f32.mrb[34].mxu0 }
 0x4bd   :  { %v5366_v44 = vpop.f32.mrb[35].mxu0 }
 0x4be   :  { %4322 = vmatmul.mubr.msk.bf16.vlgmr.msra.gmra.mrb[84].mxu1 %vm57_vm1, %v5344_v31 }
 0x4bf   :  { %2343 = vmatprep.mubr.bf16.mxu1 %v4866_v2 }
 0x4c2   :  { %v1671_v45 = vpop.f32.mrb[36].mxu0 }
 0x4c3   :  { %v1672_v47 = vadd.f32 %v1671_v45, %v5326_v5  ;;  %v1673_v30 = vpop.f32.mrb[37].mxu0 }
 0x4c4   :  { %v1674_v48 = vadd.f32 %v1673_v30, %v5326_v5  ;;  %v5373_v49 = vpop.f32.mrb[38].mxu0 }
 0x4c5   :  { %v1857_v35 = vmax.f32 %v1672_v47, 0.0  ;;  %v5375_v50 = vpop.f32.mrb[39].mxu0 }
 0x4c6   :  { %v1858_v52 = vmax.f32 %v1674_v48, 0.0 }
 0x4c7   :  { %v2019_v53 = vpack.c.bf16 %v1857_v35, %v1857_v35 }
 0x4c8   :  { %v2020_v55 = vpack.c.bf16 %v1858_v52, %v1858_v52 }
 0x4c9   :  { %v2076_v56 = vsel %vm61_vm0, %v2019_v53, 0 }
 0x4ca   :  { %v1512_v57 = vpop.f32.mrb[52].mxu1  ;;  %v5378_v58 = vpop.f32.mrb[40].mxu0  ;;  %4325 = vmatprep.subr.msk.bf16.mxu1 %vm61_vm0, %v2020_v55 }
 0x4cb   :  { %v1513_v59 = vadd.f32 %v1512_v57, %v5326_v5  ;;  %v1514_v60 = vpop.f32.mrb[53].mxu1  ;;  %v5382_v61 = vpop.f32.mrb[41].mxu0  ;;  %2312 = vmatpush1.bf16.msra.mxu1 %v2076_v56  ;;  %v2100_v57 = vsel %vm61_vm0, %v2027_v14, 0 }
 0x4cc   :  { %v1515_v46 = vadd.f32 %v1514_v60, %v5326_v5  ;;  %v5385_v62 = vpop.f32.mrb[54].mxu1  ;;  %v5387_v0 = vpop.f32.mrb[42].mxu0  ;;  %v2032_v60 = vpack.c.bf16 %v1870_v22, %v1870_v22 }
 0x4cd   :  { %v1851_v51 = vmax.f32 %v1513_v59, 0.0  ;;  %v5389_v1 = vpop.f32.mrb[55].mxu1  ;;  %v5391_v3 = vpop.f32.mrb[43].mxu0  ;;  %v1869_v59 = vmax.f32 %v1570_v18, 0.0 }
 0x4ce   :  { %v1852_v4 = vmax.f32 %v1515_v46, 0.0  ;;  %4326 = vmatmul.mubr.msk.bf16.vlgmr.msra.gmra.mrb[88].mxu1 %vm57_vm1, %v5344_v31  ;;  %v1678_v46 = vadd.f32 %v5375_v50, %v5396_v7  ;;  %v5471_v14 = vpop.permute.xlu0 %1400 }
 0x4cf   :  { %v2013_v6 = vpack.c.bf16 %v1851_v51, %v1851_v51  ;;  %2425 = vmatprep.mubr.bf16.mxu1 %v4866_v2  ;;  %v2031_v11 = vpack.c.bf16 %v1869_v59, %v1869_v59  ;;  %v1472_v18 = vadd.f32 %v5339_v28, %v5471_v14 }
 0x4d0   :  { %v2014_v8 = vpack.c.bf16 %v1852_v4, %v1852_v4  ;;  %v1874_v13 = vmax.f32 %v1678_v46, 0.0 }
 0x4d1   :  { %v2058_v12 = vsel %vm61_vm0, %v2013_v6, 0 }
 0x4d2   :  { %v5403_v9 = vpop.f32.mrb[56].mxu1  ;;  %v1777_v63 = vpop.f32.mrb[44].mxu0  ;;  %4319 = vmatprep.subr.msk.bf16.mxu0 %vm61_vm0, %v2014_v8  ;;  %v2036_v38 = vpack.c.bf16 %v1874_v13, %v1874_v13 }
 0x4d3   :  { %v1778_v10 = vadd.f32 %v1777_v63, %v5326_v5  ;;  %v5407_v15 = vpop.f32.mrb[57].mxu1  ;;  %v1779_v16 = vpop.f32.mrb[45].mxu0  ;;  %2189 = vmatpush1.bf16.msra.mxu0 %v2058_v12  ;;  %v1676_v12 = vadd.f32 %v5373_v49, %v5396_v7  ;;  %v2112_v49 = vsel %vm61_vm0, %v2031_v11, 0 }
 0x4d4   :  { %v1780_v17 = vadd.f32 %v1779_v16, %v5326_v5  ;;  %v5410_v20 = vpop.f32.mrb[58].mxu1  ;;  %v5412_v19 = vpop.f32.mrb[46].mxu0 }
 0x4d5   :  { %v1861_v23 = vmax.f32 %v1778_v10, 0.0  ;;  %v5414_v21 = vpop.f32.mrb[59].mxu1  ;;  %v1783_v24 = vpop.f32.mrb[47].mxu0  ;;  %v1782_v26 = vadd.f32 %v5412_v19, %v5396_v7 }
 0x4d6   :  { %v1862_v27 = vmax.f32 %v1780_v17, 0.0  ;;  %4320 = vmatmul.mubr.msk.bf16.vlgmr.msra.gmra.mrb[56].mxu0 %vm57_vm1, %v5344_v31  ;;  %v1873_v17 = vmax.f32 %v1676_v12, 0.0 }
 0x4d7   :  { %v2023_v29 = vpack.c.bf16 %v1861_v23, %v1861_v23  ;;  %2302 = vmatprep.mubr.bf16.mxu0 %v4866_v2  ;;  %v1784_v23 = vadd.f32 %v1783_v24, %v5396_v7 }
 0x4d8   :  { %v2024_v32 = vpack.c.bf16 %v1862_v27, %v1862_v27  ;;  %v2035_v54 = vpack.c.bf16 %v1873_v17, %v1873_v17 }
 0x4d9   :  { %v2088_v39 = vsel %vm61_vm0, %v2023_v29, 0  ;;  %v1878_v24 = vmax.f32 %v1784_v23, 0.0  ;;  %v1517_v23 = vadd.f32 %v5385_v62, %v5396_v7 }
 0x4da   :  { %v1618_v45 = vpop.f32.mrb[60].mxu1  ;;  %v5424_v47 = vpop.f32.mrb[48].mxu0  ;;  %4329 = vmatprep.subr.msk.bf16.mxu1 %vm61_vm0, %v2024_v32 }
 0x4db   :  { %v1619_v37 = vadd.f32 %v1618_v45, %v5326_v5  ;;  %v1620_v30 = vpop.f32.mrb[61].mxu1  ;;  %v5428_v48 = vpop.f32.mrb[49].mxu0  ;;  %2394 = vmatpush1.bf16.msra.mxu1 %v2088_v39 }
 0x4dc   :  { %v1621_v35 = vadd.f32 %v1620_v30, %v5326_v5  ;;  %v5431_v52 = vpop.f32.mrb[62].mxu1  ;;  %v5433_v53 = vpop.f32.mrb[50].mxu0  ;;  %4333 = vmatprep.subr.msk.bf16.mxu1 %vm61_vm0, %v2028_v40  ;;  %v2040_v30 = vpack.c.bf16 %v1878_v24, %v1878_v24 }
 0x4dd   :  { %v1855_v34 = vmax.f32 %v1619_v37, 0.0  ;;  %v5436_v55 = vpop.f32.mrb[63].mxu1  ;;  %v5438_v56 = vpop.f32.mrb[51].mxu0  ;;  %v1877_v37 = vmax.f32 %v1782_v26, 0.0 }
 0x4de   :  { %v1856_v51 = vmax.f32 %v1621_v35, 0.0  ;;  %4330 = vmatmul.mubr.msk.bf16.vlgmr.msra.gmra.mrb[92].mxu1 %vm57_vm1, %v5344_v31  ;;  %v2124_v35 = vsel %vm61_vm0, %v2035_v54, 0 }
 0x4df   :  { %v2017_v4 = vpack.c.bf16 %v1855_v34, %v1855_v34  ;;  %2476 = vmatpush1.bf16.msra.mxu1 %v2100_v57  ;;  %2507 = vmatprep.mubr.bf16.mxu1 %v4866_v2  ;;  %v1470_v57 = vadd.f32 %v5335_v25, %v5471_v14  ;;  %v2039_v46 = vpack.c.bf16 %v1877_v37, %v1877_v37  ;;  %v1867_v37 = vmax.f32 %v1517_v23, 0.0 }
 0x4e0   :  { %v2018_v6 = vpack.c.bf16 %v1856_v51, %v1856_v51  ;;  %4337 = vmatprep.subr.msk.bf16.mxu1 %vm61_vm0, %v2032_v60  ;;  %v1882_v60 = vmax.f32 %v1472_v18, 0.0  ;;  %v1578_v25 = vadd.f32 %v5362_v42, %v5471_v14  ;;  %v1576_v42 = vadd.f32 %v5359_v41, %v5471_v14 }
 0x4e1   :  { %v2070_v8 = vsel %vm61_vm0, %v2017_v4, 0  ;;  %v2136_v13 = vsel %vm61_vm0, %v2039_v46, 0  ;;  %v1684_v41 = vadd.f32 %v5382_v61, %v5471_v14  ;;  %v1682_v61 = vadd.f32 %v5378_v58, %v5471_v14 }
 0x4e2   :  { %v5450_v63 = vpop.f32.mrb[64].mxu1  ;;  %4323 = vmatprep.subr.msk.bf16.mxu0 %vm61_vm0, %v2018_v6  ;;  %v1881_v6 = vmax.f32 %v1470_v57, 0.0  ;;  %v3092_v12 = vpack.c.bf16 %v1882_v60, %v1882_v60  ;;  %v1623_v60 = vadd.f32 %v5431_v52, %v5396_v7 }
 0x4e3   :  { %v5453_v50 = vpop.f32.mrb[65].mxu1  ;;  %2271 = vmatpush1.bf16.msra.mxu0 %v2070_v8  ;;  %v1890_v57 = vmax.f32 %v1684_v41, 0.0  ;;  %v1889_v58 = vmax.f32 %v1682_v61, 0.0 }
 0x4e4   :  { %v5455_v10 = vpop.f32.mrb[66].mxu1  ;;  %v3091_v17 = vpack.c.bf16 %v1881_v6, %v1881_v6 }
 0x4e5   :  { %v5457_v16 = vpop.f32.mrb[67].mxu1 }
 0x4e6   :  { %4324 = vmatmul.mubr.msk.bf16.vlgmr.msra.gmra.mrb[60].mxu0 %vm57_vm1, %v5344_v31  ;;  %4334 = vmatmul.mubr.msk.bf16.vlgmr.msra.gmra.mrb[96].mxu1 %vm57_vm1, %v5344_v31 }
 0x4e7   :  { %2558 = vmatpush1.bf16.msra.mxu1 %v2112_v49  ;;  %2589 = vmatprep.mubr.bf16.mxu1 %v4866_v2  ;;  %v1519_v49 = vadd.f32 %v5389_v1, %v5396_v7  ;;  %v1625_v1 = vadd.f32 %v5436_v55, %v5396_v7 }
 0x4e8   :  { %4341 = vmatprep.subr.msk.bf16.mxu1 %vm61_vm0, %v2036_v38  ;;  %2384 = vmatprep.mubr.bf16.mxu0 %v4866_v2  ;;  %v1886_v38 = vmax.f32 %v1578_v25, 0.0 }
 0x4e9   :  { %v1872_v46 = vmax.f32 %v1625_v1, 0.0 }
 0x4ea   :  { %v1724_v27 = vpop.f32.mrb[68].mxu1  ;;  %v3096_v18 = vpack.c.bf16 %v1886_v38, %v1886_v38  ;;  %v1871_v38 = vmax.f32 %v1623_v60, 0.0 }
 0x4eb   :  { %v1725_v29 = vadd.f32 %v1724_v27, %v5326_v5  ;;  %v1726_v32 = vpop.f32.mrb[69].mxu1  ;;  %v2034_v23 = vpack.c.bf16 %v1872_v46, %v1872_v46  ;;  %v1523_v46 = vadd.f32 %v5403_v9, %v5471_v14 }
 0x4ec   :  { %v1727_v39 = vadd.f32 %v1726_v32, %v5326_v5  ;;  %v5474_v40 = vpop.f32.mrb[70].mxu1  ;;  %v3124_v32 = vsel %vm61_vm0, %v3091_v17, 0  ;;  %v1790_v17 = vadd.f32 %v5428_v48, %v5471_v14  ;;  %v3099_v48 = vpack.c.bf16 %v1889_v58, %v1889_v58 }
 0x4ed   :  { %v1859_v22 = vmax.f32 %v1725_v29, 0.0  ;;  %v5478_v45 = vpop.f32.mrb[71].mxu1 }
 0x4ee   :  { %v1860_v19 = vmax.f32 %v1727_v39, 0.0  ;;  %4338 = vmatmul.mubr.msk.bf16.vlgmr.msra.gmra.mrb[100].mxu1 %vm57_vm1, %v5344_v31  ;;  %v1885_v39 = vmax.f32 %v1576_v42, 0.0 }
 0x4ef   :  { %v2021_v34 = vpack.c.bf16 %v1859_v22, %v1859_v22  ;;  %2640 = vmatpush1.bf16.msra.mxu1 %v2124_v35  ;;  %2671 = vmatprep.mubr.bf16.mxu1 %v4866_v2 }
 0x4f0   :  { %v2022_v59 = vpack.c.bf16 %v1860_v19, %v1860_v19  ;;  %4345 = vmatprep.subr.msk.bf16.mxu1 %vm61_vm0, %v2040_v30  ;;  %v1868_v30 = vmax.f32 %v1519_v49, 0.0  ;;  %v1731_v49 = vadd.f32 %v5478_v45, %v5396_v7  ;;  %v2033_v45 = vpack.c.bf16 %v1871_v38, %v1871_v38 }
 0x4f1   :  { %v2082_v28 = vsel %vm61_vm0, %v2021_v34, 0  ;;  %v3095_v34 = vpack.c.bf16 %v1885_v39, %v1885_v39  ;;  %v5559_v39 = vpop.permute.xlu1 %1405 }
 0x4f2   :  { %v5488_v51 = vpop.f32.mrb[72].mxu1  ;;  %4327 = vmatprep.subr.msk.bf16.mxu0 %vm61_vm0, %v2022_v59  ;;  %v2030_v55 = vpack.c.bf16 %v1868_v30, %v1868_v30  ;;  %v1688_v38 = vadd.f32 %v5391_v3, %v5559_v39  ;;  %v1686_v9 = vadd.f32 %v5387_v0, %v5559_v39 }
 0x4f3   :  { %v5491_v4 = vpop.f32.mrb[73].mxu1  ;;  %2353 = vmatpush1.bf16.msra.mxu0 %v2082_v28  ;;  %v2029_v28 = vpack.c.bf16 %v1867_v37, %v1867_v37  ;;  %v3136_v52 = vsel %vm61_vm0, %v3095_v34, 0  ;;  %v3148_v37 = vsel %vm61_vm0, %v3099_v48, 0 }
 0x4f4   :  { %v5493_v8 = vpop.f32.mrb[74].mxu1  ;;  %v1737_v0 = vadd.f32 %v5491_v4, %v5471_v14 }
 0x4f5   :  { %v5497_v11 = vpop.f32.mrb[75].mxu1 }
 0x4f6   :  { %4328 = vmatmul.mubr.msk.bf16.vlgmr.msra.gmra.mrb[64].mxu0 %vm57_vm1, %v5344_v31  ;;  %4342 = vmatmul.mubr.msk.bf16.vlgmr.msra.gmra.mrb[104].mxu1 %vm57_vm1, %v5344_v31 }
 0x4f7   :  { %2722 = vmatpush1.bf16.msra.mxu1 %v2136_v13  ;;  %2753 = vmatprep.mubr.bf16.mxu1 %v4866_v2  ;;  %v3100_v13 = vpack.c.bf16 %v1890_v57, %v1890_v57 }
 0x4f8   :  { %4349 = vmatprep.subr.msk.bf16.mxu1 %vm61_vm0, %v3092_v12  ;;  %2466 = vmatprep.mubr.bf16.mxu0 %v4866_v2 }
 0x4fa   :  { %v1830_v54 = vpop.f32.mrb[76].mxu1 }
 0x4fb   :  { %v1831_v26 = vadd.f32 %v1830_v54, %v5326_v5  ;;  %v1832_v24 = vpop.f32.mrb[77].mxu1  ;;  %v2106_v54 = vsel %vm61_vm0, %v2029_v28, 0  ;;  %v1525_v28 = vadd.f32 %v5407_v15, %v5471_v14  ;;  %v1580_v15 = vadd.f32 %v5364_v43, %v5559_v39 }
 0x4fc   :  { %v1833_v27 = vadd.f32 %v1832_v24, %v5326_v5  ;;  %v5515_v29 = vpop.f32.mrb[78].mxu1  ;;  %v1894_v24 = vmax.f32 %v1790_v17, 0.0  ;;  %v1631_v43 = vadd.f32 %v5453_v50, %v5471_v14 }
 0x4fd   :  { %v1863_v22 = vmax.f32 %v1831_v26, 0.0  ;;  %v1836_v62 = vpop.f32.mrb[79].mxu1  ;;  %v1788_v26 = vadd.f32 %v5424_v47, %v5471_v14  ;;  %v1884_v58 = vmax.f32 %v1525_v28, 0.0  ;;  %v1901_v17 = vmax.f32 %v1580_v15, 0.0 }
 0x4fe   :  { %v1864_v19 = vmax.f32 %v1833_v27, 0.0  ;;  %4346 = vmatmul.mubr.msk.bf16.vlgmr.msra.gmra.mrb[108].mxu1 %vm57_vm1, %v5344_v31  ;;  %v1729_v27 = vadd.f32 %v5474_v40, %v5396_v7  ;;  %v1837_v1 = vadd.f32 %v1836_v62, %v5396_v7  ;;  %v1635_v15 = vadd.f32 %v5457_v16, %v5559_v39 }
 0x4ff   :  { %v2025_v5 = vpack.c.bf16 %v1863_v22, %v1863_v22  ;;  %3220 = vmatpush1.bf16.msra.mxu1 %v3124_v32  ;;  %3251 = vmatprep.mubr.bf16.mxu1 %v4866_v2  ;;  %v1876_v32 = vmax.f32 %v1731_v49, 0.0  ;;  %v1893_v41 = vmax.f32 %v1788_v26, 0.0  ;;  %v3104_v22 = vpack.c.bf16 %v1894_v24, %v1894_v24 }
 0x500   :  { %v2026_v35 = vpack.c.bf16 %v1864_v19, %v1864_v19  ;;  %4353 = vmatprep.subr.msk.bf16.mxu1 %vm61_vm0, %v3096_v18  ;;  %v1476_v18 = vadd.f32 %v5351_v36, %v5559_v39  ;;  %v1875_v47 = vmax.f32 %v1729_v27, 0.0  ;;  %v2118_v19 = vsel %vm61_vm0, %v2033_v45, 0 }
 0x501   :  { %v2094_v59 = vsel %vm61_vm0, %v2025_v5, 0  ;;  %v2038_v30 = vpack.c.bf16 %v1876_v32, %v1876_v32  ;;  %v1474_v36 = vadd.f32 %v5347_v33, %v5559_v39  ;;  %v3103_v62 = vpack.c.bf16 %v1893_v41, %v1893_v41 }
 0x502   :  { %v5531_v6 = vpop.f32.mrb[80].mxu1  ;;  %4331 = vmatprep.subr.msk.bf16.mxu0 %vm61_vm0, %v2026_v35  ;;  %v1898_v40 = vmax.f32 %v1476_v18, 0.0  ;;  %v2037_v5 = vpack.c.bf16 %v1875_v47, %v1875_v47  ;;  %v1835_v35 = vadd.f32 %v5515_v29, %v5396_v7  ;;  %v1880_v34 = vmax.f32 %v1837_v1, 0.0 }
 0x503   :  { %v5534_v25 = vpop.f32.mrb[81].mxu1  ;;  %2435 = vmatpush1.bf16.msra.mxu0 %v2094_v59  ;;  %v1897_v61 = vmax.f32 %v1474_v36, 0.0  ;;  %v1582_v59 = vadd.f32 %v5366_v44, %v5559_v39  ;;  %v3160_v7 = vsel %vm61_vm0, %v3103_v62, 0  ;;  %v1883_v49 = vmax.f32 %v1523_v46, 0.0 }
 0x504   :  { %v5536_v12 = vpop.f32.mrb[82].mxu1  ;;  %4335 = vmatprep.subr.msk.bf16.mxu0 %vm61_vm0, %v2030_v55  ;;  %v3108_v57 = vpack.c.bf16 %v1898_v40, %v1898_v40  ;;  %v1879_v33 = vmax.f32 %v1835_v35, 0.0  ;;  %v2042_v55 = vpack.c.bf16 %v1880_v34, %v1880_v34  ;;  %v2130_v60 = vsel %vm61_vm0, %v2037_v5, 0 }
 0x505   :  { %v5541_v42 = vpop.f32.mrb[83].mxu1  ;;  %v3107_v44 = vpack.c.bf16 %v1897_v61, %v1897_v61  ;;  %v1902_v29 = vmax.f32 %v1582_v59, 0.0  ;;  %v3111_v3 = vpack.c.bf16 %v1901_v17, %v1901_v17  ;;  %v1906_v26 = vmax.f32 %v1688_v38, 0.0 }
 0x506   :  { %4332 = vmatmul.mubr.msk.bf16.vlgmr.msra.gmra.mrb[68].mxu0 %vm57_vm1, %v5344_v31  ;;  %4350 = vmatmul.mubr.msk.bf16.vlgmr.msra.gmra.mrb[112].mxu1 %vm57_vm1, %v5344_v31  ;;  %v3093_v50 = vpack.c.bf16 %v1883_v49, %v1883_v49  ;;  %v1629_v24 = vadd.f32 %v5450_v63, %v5471_v14  ;;  %v1888_v45 = vmax.f32 %v1631_v43, 0.0  ;;  %v1905_v27 = vmax.f32 %v1686_v9, 0.0 }
 0x507   :  { %3302 = vmatpush1.bf16.msra.mxu1 %v3136_v52  ;;  %2517 = vmatpush1.bf16.msra.mxu0 %v2106_v54  ;;  %v3112_v52 = vpack.c.bf16 %v1902_v29, %v1902_v29  ;;  %v3094_v54 = vpack.c.bf16 %v1884_v58, %v1884_v58  ;;  %v3116_v32 = vpack.c.bf16 %v1906_v26, %v1906_v26  ;;  %v3184_v41 = vsel %vm61_vm0, %v3111_v3, 0 }
 0x508   :  { %4357 = vmatprep.subr.msk.bf16.mxu1 %vm61_vm0, %v3100_v13  ;;  %4339 = vmatprep.subr.msk.bf16.mxu0 %vm61_vm0, %v2034_v23  ;;  %v2041_v13 = vpack.c.bf16 %v1879_v33, %v1879_v33  ;;  %v3172_v23 = vsel %vm61_vm0, %v3107_v44, 0  ;;  %v1794_v18 = vadd.f32 %v5438_v56, %v5559_v39  ;;  %v3130_v47 = vsel %vm61_vm0, %v3093_v50, 0 }
 0x509   :  { %2548 = vmatprep.mubr.bf16.mxu0 %v4866_v2  ;;  %3333 = vmatprep.mubr.bf16.mxu1 %v4866_v2  ;;  %v3115_v56 = vpack.c.bf16 %v1905_v27, %v1905_v27  ;;  %v1792_v63 = vadd.f32 %v5433_v53, %v5559_v39  ;;  %v1735_v1 = vadd.f32 %v5488_v51, %v5471_v14  ;;  %v1904_v58 = vmax.f32 %v1635_v15, 0.0 }
 0x50a   :  { %v2142_v48 = vsel %vm61_vm0, %v2041_v13, 0  ;;  %v1843_v34 = vadd.f32 %v5534_v25, %v5471_v14  ;;  %v1841_v61 = vadd.f32 %v5531_v6, %v5471_v14  ;;  %v1529_v59 = vadd.f32 %v5414_v21, %v5559_v39 }
 0x50b   :  { %v1909_v36 = vmax.f32 %v1792_v63, 0.0  ;;  %v3196_v62 = vsel %vm61_vm0, %v3115_v56, 0  ;;  %v1891_v5 = vmax.f32 %v1735_v1, 0.0  ;;  %v1527_v21 = vadd.f32 %v5410_v20, %v5559_v39 }
 0x50c   :  { %v1895_v28 = vmax.f32 %v1841_v61, 0.0  ;;  %v1900_v14 = vmax.f32 %v1529_v59, 0.0  ;;  %v1633_v46 = vadd.f32 %v5455_v10, %v5559_v39  ;;  %v3114_v16 = vpack.c.bf16 %v1904_v58, %v1904_v58 }
 0x50d   :  { %v3119_v51 = vpack.c.bf16 %v1909_v36, %v1909_v36  ;;  %v3101_v25 = vpack.c.bf16 %v1891_v5, %v1891_v5  ;;  %v1741_v17 = vadd.f32 %v5497_v11, %v5559_v39  ;;  %v1739_v10 = vadd.f32 %v5493_v8, %v5559_v39 }
 0x50e   :  { %4336 = vmatmul.mubr.msk.bf16.vlgmr.msra.gmra.mrb[72].mxu0 %vm57_vm1, %v5344_v31  ;;  %4354 = vmatmul.mubr.msk.bf16.vlgmr.msra.gmra.mrb[116].mxu1 %vm57_vm1, %v5344_v31  ;;  %v3105_v6 = vpack.c.bf16 %v1895_v28, %v1895_v28  ;;  %v3110_v44 = vpack.c.bf16 %v1900_v14, %v1900_v14  ;;  %v1903_v13 = vmax.f32 %v1633_v46, 0.0  ;;  %v1847_v11 = vadd.f32 %v5541_v42, %v5559_v39 }
 0x50f   :  { %2599 = vmatpush1.bf16.msra.mxu0 %v2118_v19  ;;  %3384 = vmatpush1.bf16.msra.mxu1 %v3148_v37  ;;  %v3098_v37 = vpack.c.bf16 %v1888_v45, %v1888_v45  ;;  %v1892_v19 = vmax.f32 %v1737_v0, 0.0  ;;  %v1907_v49 = vmax.f32 %v1739_v10, 0.0  ;;  %v1845_v8 = vadd.f32 %v5536_v12, %v5559_v39  ;;  %v5699_v12 = vpop.permute.xlu0 %2045 }
 0x510   :  { %4343 = vmatprep.subr.msk.bf16.mxu0 %vm61_vm0, %v2038_v30  ;;  %4361 = vmatprep.subr.msk.bf16.mxu1 %vm61_vm0, %v3104_v22  ;;  %v1887_v22 = vmax.f32 %v1629_v24, 0.0  ;;  %v1910_v30 = vmax.f32 %v1794_v18, 0.0  ;;  %v3166_v29 = vsel %vm61_vm0, %v3105_v6, 0  ;;  %v3113_v38 = vpack.c.bf16 %v1903_v13, %v1903_v13 }
 0x511   :  { %2630 = vmatprep.mubr.bf16.mxu0 %v4866_v2  ;;  %3415 = vmatprep.mubr.bf16.mxu1 %v4866_v2  ;;  %v3102_v35 = vpack.c.bf16 %v1892_v19, %v1892_v19  ;;  %v1912_v3 = vmax.f32 %v1847_v11, 0.0  ;;  %v1911_v9 = vmax.f32 %v1845_v8, 0.0 }
 0x512   :  { %v3097_v4 = vpack.c.bf16 %v1887_v22, %v1887_v22  ;;  %v3120_v40 = vpack.c.bf16 %v1910_v30, %v1910_v30  ;;  %v3190_v43 = vsel %vm61_vm0, %v3113_v38, 0 }
 0x513   :  { %v3122_v26 = vpack.c.bf16 %v1912_v3, %v1912_v3  ;;  %v3121_v50 = vpack.c.bf16 %v1911_v9, %v1911_v9 }
 0x514   :  { %v3142_v53 = vsel %vm61_vm0, %v3097_v4, 0 }
 0x515   :  { %v3214_v24 = vsel %vm61_vm0, %v3121_v50, 0 }
 0x516   :  { %4340 = vmatmul.mubr.msk.bf16.vlgmr.msra.gmra.mrb[76].mxu0 %vm57_vm1, %v5344_v31  ;;  %4358 = vmatmul.mubr.msk.bf16.vlgmr.msra.gmra.mrb[120].mxu1 %vm57_vm1, %v5344_v31 }
 0x517   :  { %2681 = vmatpush1.bf16.msra.mxu0 %v2130_v60  ;;  %3466 = vmatpush1.bf16.msra.mxu1 %v3160_v7  ;;  %v3208_v60 = vsel %vm61_vm0, %v3119_v51, 0  ;;  %v1899_v7 = vmax.f32 %v1527_v21, 0.0 }
 0x518   :  { %4347 = vmatprep.subr.msk.bf16.mxu0 %vm61_vm0, %v2042_v55  ;;  %4365 = vmatprep.subr.msk.bf16.mxu1 %vm61_vm0, %v3108_v57  ;;  %v1896_v57 = vmax.f32 %v1843_v34, 0.0  ;;  %v3154_v55 = vsel %vm61_vm0, %v3101_v25, 0 }
 0x519   :  { %2712 = vmatprep.mubr.bf16.mxu0 %v4866_v2  ;;  %3497 = vmatprep.mubr.bf16.mxu1 %v4866_v2  ;;  %v3109_v20 = vpack.c.bf16 %v1899_v7, %v1899_v7 }
 0x51a   :  { %v3106_v33 = vpack.c.bf16 %v1896_v57, %v1896_v57 }
 0x51e   :  { %4344 = vmatmul.mubr.msk.bf16.vlgmr.msra.gmra.mrb[80].mxu0 %vm57_vm1, %v5344_v31  ;;  %4362 = vmatmul.mubr.msk.bf16.vlgmr.msra.gmra.mrb[124].mxu1 %vm57_vm1, %v5344_v31 }
 0x51f   :  { %2763 = vmatpush1.bf16.msra.mxu0 %v2142_v48  ;;  %3548 = vmatpush1.bf16.msra.mxu1 %v3172_v23  ;;  %v1908_v23 = vmax.f32 %v1741_v17, 0.0  ;;  %v3117_v48 = vpack.c.bf16 %v1907_v49, %v1907_v49 }
 0x520   :  { %4351 = vmatprep.subr.msk.bf16.mxu0 %vm61_vm0, %v3094_v54  ;;  %4369 = vmatprep.subr.msk.bf16.mxu1 %vm61_vm0, %v3112_v52  ;;  %v3178_v52 = vsel %vm61_vm0, %v3109_v20, 0 }
 0x521   :  { %2794 = vmatprep.mubr.bf16.mxu0 %v4866_v2  ;;  %3579 = vmatprep.mubr.bf16.mxu1 %v4866_v2  ;;  %v3118_v54 = vpack.c.bf16 %v1908_v23, %v1908_v23  ;;  %v3202_v42 = vsel %vm61_vm0, %v3117_v48, 0 }
 0x526   :  { %4348 = vmatmul.mubr.msk.bf16.vlgmr.msra.gmra.mrb[84].mxu0 %vm57_vm1, %v5344_v31  ;;  %4366 = vmatmul.mubr.msk.bf16.vlgmr.msra.gmra.mrb[128].mxu1 %vm57_vm1, %v5344_v31 }
 0x527   :  { %3261 = vmatpush1.bf16.msra.mxu0 %v3130_v47  ;;  %3630 = vmatpush1.bf16.msra.mxu1 %v3184_v41 }
 0x528   :  { %4355 = vmatprep.subr.msk.bf16.mxu0 %vm61_vm0, %v3098_v37  ;;  %4373 = vmatprep.subr.msk.bf16.mxu1 %vm61_vm0, %v3116_v32 }
 0x529   :  { %3292 = vmatprep.mubr.bf16.mxu0 %v4866_v2  ;;  %3661 = vmatprep.mubr.bf16.mxu1 %v4866_v2 }
 0x52e   :  { %4352 = vmatmul.mubr.msk.bf16.vlgmr.msra.gmra.mrb[88].mxu0 %vm57_vm1, %v5344_v31  ;;  %4370 = vmatmul.mubr.msk.bf16.vlgmr.msra.gmra.mrb[132].mxu1 %vm57_vm1, %v5344_v31 }
 0x52f   :  { %3343 = vmatpush1.bf16.msra.mxu0 %v3142_v53  ;;  %3712 = vmatpush1.bf16.msra.mxu1 %v3196_v62 }
 0x530   :  { %4359 = vmatprep.subr.msk.bf16.mxu0 %vm61_vm0, %v3102_v35  ;;  %4377 = vmatprep.subr.msk.bf16.mxu1 %vm61_vm0, %v3120_v40 }
 0x531   :  { %3374 = vmatprep.mubr.bf16.mxu0 %v4866_v2  ;;  %3743 = vmatprep.mubr.bf16.mxu1 %v4866_v2 }
 0x536   :  { %4356 = vmatmul.mubr.msk.bf16.vlgmr.msra.gmra.mrb[92].mxu0 %vm57_vm1, %v5344_v31  ;;  %4374 = vmatmul.mubr.msk.bf16.vlgmr.msra.gmra.mrb[136].mxu1 %vm57_vm1, %v5344_v31 }
 0x537   :  { %3425 = vmatpush1.bf16.msra.mxu0 %v3154_v55  ;;  %3794 = vmatpush1.bf16.msra.mxu1 %v3208_v60 }
 0x538   :  { %4363 = vmatprep.subr.msk.bf16.mxu0 %vm61_vm0, %v3106_v33  ;;  %3456 = vmatprep.mubr.bf16.mxu0 %v4866_v2 }
 0x539   :  { %3825 = vmatprep.mubr.bf16.mxu1 %v4866_v2 }
 0x53e   :  { %4360 = vmatmul.mubr.msk.bf16.vlgmr.msra.gmra.mrb[96].mxu0 %vm57_vm1, %v5344_v31  ;;  %4378 = vmatmul.mubr.msk.bf16.vlgmr.msra.gmra.mrb[140].mxu1 %vm57_vm1, %v5344_v31 }
 0x53f   :  { %3507 = vmatpush1.bf16.msra.mxu0 %v3166_v29  ;;  %3538 = vmatprep.mubr.bf16.mxu0 %v4866_v2 }
 0x540   :  { %4367 = vmatprep.subr.msk.bf16.mxu0 %vm61_vm0, %v3110_v44 }
 0x546   :  { %4364 = vmatmul.mubr.msk.bf16.vlgmr.msra.gmra.mrb[100].mxu0 %vm57_vm1, %v5344_v31 }
 0x547   :  { %3589 = vmatpush1.bf16.msra.mxu0 %v3178_v52  ;;  %3620 = vmatprep.mubr.bf16.mxu0 %v4866_v2 }
 0x548   :  { %4371 = vmatprep.subr.msk.bf16.mxu0 %vm61_vm0, %v3114_v16 }
 0x54e   :  { %4368 = vmatmul.mubr.msk.bf16.vlgmr.msra.gmra.mrb[104].mxu0 %vm57_vm1, %v5344_v31 }
 0x54f   :  { %3671 = vmatpush1.bf16.msra.mxu0 %v3190_v43  ;;  %3702 = vmatprep.mubr.bf16.mxu0 %v4866_v2 }
 0x550   :  { %4375 = vmatprep.subr.msk.bf16.mxu0 %vm61_vm0, %v3118_v54 }
 0x556   :  { %4372 = vmatmul.mubr.msk.bf16.vlgmr.msra.gmra.mrb[108].mxu0 %vm57_vm1, %v5344_v31 }
 0x557   :  { %3753 = vmatpush1.bf16.msra.mxu0 %v3202_v42  ;;  %3784 = vmatprep.mubr.bf16.mxu0 %v4866_v2 }
 0x558   :  { %4379 = vmatprep.subr.msk.bf16.mxu0 %vm61_vm0, %v3122_v26 }
 0x55e   :  { %4376 = vmatmul.mubr.msk.bf16.vlgmr.msra.gmra.mrb[112].mxu0 %vm57_vm1, %v5344_v31 }
 0x55f   :  { %3835 = vmatpush1.bf16.msra.mxu0 %v3214_v24  ;;  %3866 = vmatprep.mubr.bf16.mxu0 %v4866_v2 }
 0x566   :  { %4380 = vmatmul.mubr.msk.bf16.vlgmr.msra.gmra.mrb[116].mxu0 %vm57_vm1, %v5344_v31 }
 0x589   :  { %v2181_v39 = vpop.f32.mrb[52].mxu0 }
 0x58a   :  { %v2182_v45 = vadd.f32 %v2181_v39, %v5699_v12  ;;  %v2183_v27 = vpop.f32.mrb[53].mxu0 }
 0x58b   :  { %v2184_v32 = vadd.f32 %v2183_v27, %v5699_v12  ;;  %v2185_v18 = vpop.f32.mrb[54].mxu0 }
 0x58c   :  { %v2803_v41 = vsub.f32 0.0, %v2182_v45  ;;  %v2186_v22 = vpop.f32.mrb[55].mxu0 }
 0x58d   :  { %v2804_v37 = vsub.f32 0.0, %v2184_v32 }
 0x58e   :  { %v2835_v0 = vmul.f32 1.442695, %v2803_v41 }
 0x58f   :  { %v2837_v47 = vmul.f32 1.442695, %v2804_v37 }
 0x590   :  { %4610 = vpow2.f32 %v2835_v0 }
 0x591   :  { %4612 = vpow2.f32 %v2837_v47  ;;  %v2263_v2 = vpop.f32.mrb[84].mxu1 }
 0x592   :  { %v2264_v56 = vadd.f32 %v2263_v2, %v5699_v12  ;;  %v2265_v31 = vpop.f32.mrb[85].mxu1 }
 0x593   :  { %v2266_v63 = vadd.f32 %v2265_v31, %v5699_v12  ;;  %v2267_v30 = vpop.f32.mrb[86].mxu1 }
 0x594   :  { %v2807_v4 = vsub.f32 0.0, %v2264_v56  ;;  %v2268_v1 = vpop.f32.mrb[87].mxu1 }
 0x595   :  { %v2808_v19 = vsub.f32 0.0, %v2266_v63 }
 0x596   :  { %v2843_v36 = vmul.f32 1.442695, %v2807_v4 }
 0x597   :  { %v2845_v40 = vmul.f32 1.442695, %v2808_v19 }
 0x598   :  { %4614 = vpow2.f32 %v2843_v36 }
 0x599   :  { %4616 = vpow2.f32 %v2845_v40 }
 0x59a   :  { %v4611_v62 = vpop.eup %4610 }
 0x59b   :  { %v4613_v5 = vpop.eup %4612  ;;  %v2899_v35 = vadd.f32 1.0, %v4611_v62 }
 0x59c   :  { %v2900_v34 = vadd.f32 1.0, %v4613_v5 }
 0x59d   :  { %4618 = vrcp.f32 %v2899_v35 }
 0x59e   :  { %4620 = vrcp.f32 %v2900_v34 }
 0x5a1   :  { %v2345_v53 = vpop.f32.mrb[88].mxu1 }
 0x5a2   :  { %v4615_v51 = vpop.eup %4614  ;;  %v2346_v25 = vadd.f32 %v2345_v53, %v5699_v12  ;;  %v2347_v61 = vpop.f32.mrb[89].mxu1 }
 0x5a3   :  { %v4617_v57 = vpop.eup %4616  ;;  %v2903_v59 = vadd.f32 1.0, %v4615_v51  ;;  %v2348_v28 = vadd.f32 %v2347_v61, %v5699_v12  ;;  %v2349_v33 = vpop.f32.mrb[90].mxu1 }
 0x5a4   :  { %v2904_v55 = vadd.f32 1.0, %v4617_v57  ;;  %v2811_v60 = vsub.f32 0.0, %v2346_v25  ;;  %v2350_v21 = vpop.f32.mrb[91].mxu1 }
 0x5a5   :  { %4622 = vrcp.f32 %v2903_v59  ;;  %v2812_v14 = vsub.f32 0.0, %v2348_v28 }
 0x5a6   :  { %4624 = vrcp.f32 %v2904_v55  ;;  %v2851_v6 = vmul.f32 1.442695, %v2811_v60 }
 0x5a7   :  { %v4619_v7 = vpop.eup %4618  ;;  %v2853_v44 = vmul.f32 1.442695, %v2812_v14 }
 0x5a8   :  { %v4621_v15 = vpop.eup %4620  ;;  %v2963_v29 = vmax.f32 %v4619_v7, 0.0  ;;  %4626 = vpow2.f32 %v2851_v6 }
 0x5a9   :  { %v2964_v20 = vmax.f32 %v4621_v15, 0.0  ;;  %4628 = vpow2.f32 %v2853_v44  ;;  %v2222_v46 = vpop.f32.mrb[56].mxu0 }
 0x5aa   :  { %v2995_v58 = vmin.f32 %v2963_v29, 1.0  ;;  %v2223_v13 = vadd.f32 %v2222_v46, %v5699_v12  ;;  %v2224_v16 = vpop.f32.mrb[57].mxu0 }
 0x5ab   :  { %v2996_v17 = vmin.f32 %v2964_v20, 1.0  ;;  %v2225_v52 = vadd.f32 %v2224_v16, %v5699_v12  ;;  %v2226_v38 = vpop.f32.mrb[58].mxu0 }
 0x5ac   :  { %3027 = vst [vmem:[%s5962_s5] sm:$0xf] %v2995_v58  ;;  %v2805_v10 = vsub.f32 0.0, %v2223_v13  ;;  %v2227_v23 = vpop.f32.mrb[59].mxu0 }
 0x5ad   :  { %3028 = vst [vmem:[%s5962_s5 + $0x8] sm:$0xf] %v2996_v17  ;;  %v2806_v49 = vsub.f32 0.0, %v2225_v52 }
 0x5ae   :  { %v2839_v54 = vmul.f32 1.442695, %v2805_v10 }
 0x5af   :  { %v4623_v11 = vpop.eup %4622  ;;  %v2841_v43 = vmul.f32 1.442695, %v2806_v49 }
 0x5b0   :  { %v4625_v48 = vpop.eup %4624  ;;  %v2967_v8 = vmax.f32 %v4623_v11, 0.0  ;;  %4630 = vpow2.f32 %v2839_v54 }
 0x5b1   :  { %v2968_v3 = vmax.f32 %v4625_v48, 0.0  ;;  %4632 = vpow2.f32 %v2841_v43  ;;  %v2427_v9 = vpop.f32.mrb[92].mxu1 }
 0x5b2   :  { %v4627_v26 = vpop.eup %4626  ;;  %v2999_v42 = vmin.f32 %v2967_v8, 1.0  ;;  %v2428_v50 = vadd.f32 %v2427_v9, %v5699_v12  ;;  %v2429_v24 = vpop.f32.mrb[93].mxu1 }
 0x5b3   :  { %v4629_v39 = vpop.eup %4628  ;;  %v3000_v45 = vmin.f32 %v2968_v3, 1.0  ;;  %v2907_v27 = vadd.f32 1.0, %v4627_v26  ;;  %v2430_v32 = vadd.f32 %v2429_v24, %v5699_v12  ;;  %v2431_v18 = vpop.f32.mrb[94].mxu1 }
 0x5b4   :  { %3031 = vst [vmem:[%s5962_s5 + $0x20] sm:$0xf] %v2999_v42  ;;  %v2908_v41 = vadd.f32 1.0, %v4629_v39  ;;  %v2815_v22 = vsub.f32 0.0, %v2428_v50  ;;  %v2432_v37 = vpop.f32.mrb[95].mxu1 }
 0x5b5   :  { %3032 = vst [vmem:[%s5962_s5 + $0x28] sm:$0xf] %v3000_v45  ;;  %4634 = vrcp.f32 %v2907_v27  ;;  %v2816_v0 = vsub.f32 0.0, %v2430_v32 }
 0x5b6   :  { %4636 = vrcp.f32 %v2908_v41  ;;  %v2859_v47 = vmul.f32 1.442695, %v2815_v22 }
 0x5b7   :  { %v2861_v2 = vmul.f32 1.442695, %v2816_v0 }
 0x5b8   :  { %4638 = vpow2.f32 %v2859_v47 }
 0x5b9   :  { %4640 = vpow2.f32 %v2861_v2  ;;  %v2304_v56 = vpop.f32.mrb[60].mxu0  ;;  %v2509_v31 = vpop.f32.mrb[96].mxu1 }
 0x5ba   :  { %v4631_v63 = vpop.eup %4630  ;;  %v2305_v30 = vadd.f32 %v2304_v56, %v5699_v12  ;;  %v2510_v4 = vadd.f32 %v2509_v31, %v5699_v12  ;;  %v2306_v1 = vpop.f32.mrb[61].mxu0 }
 0x5bb   :  { %v2511_v19 = vpop.f32.mrb[97].mxu1  ;;  %v4633_v36 = vpop.eup %4632  ;;  %v2901_v40 = vadd.f32 1.0, %v4631_v63  ;;  %v2307_v62 = vadd.f32 %v2306_v1, %v5699_v12 }
 0x5bc   :  { %v2512_v5 = vadd.f32 %v2511_v19, %v5699_v12  ;;  %v2513_v35 = vpop.f32.mrb[98].mxu1  ;;  %v2308_v34 = vpop.f32.mrb[62].mxu0  ;;  %v2902_v53 = vadd.f32 1.0, %v4633_v36  ;;  %v2809_v51 = vsub.f32 0.0, %v2305_v30  ;;  %v2819_v25 = vsub.f32 0.0, %v2510_v4 }
 0x5bd   :  { %v2514_v61 = vpop.f32.mrb[99].mxu1  ;;  %v2309_v57 = vpop.f32.mrb[63].mxu0  ;;  %4642 = vrcp.f32 %v2901_v40  ;;  %v2810_v59 = vsub.f32 0.0, %v2307_v62 }
 0x5be   :  { %v2820_v28 = vsub.f32 0.0, %v2512_v5  ;;  %4644 = vrcp.f32 %v2902_v53  ;;  %v2847_v33 = vmul.f32 1.442695, %v2809_v51  ;;  %v2867_v55 = vmul.f32 1.442695, %v2819_v25 }
 0x5bf   :  { %v4635_v60 = vpop.eup %4634  ;;  %v2849_v21 = vmul.f32 1.442695, %v2810_v59 }
 0x5c0   :  { %v2869_v14 = vmul.f32 1.442695, %v2820_v28  ;;  %v4637_v6 = vpop.eup %4636  ;;  %v2971_v7 = vmax.f32 %v4635_v60, 0.0  ;;  %4646 = vpow2.f32 %v2847_v33 }
 0x5c1   :  { %v2972_v44 = vmax.f32 %v4637_v6, 0.0  ;;  %4648 = vpow2.f32 %v2867_v55  ;;  %v2591_v15 = vpop.f32.mrb[100].mxu1 }
 0x5c2   :  { %v4639_v29 = vpop.eup %4638  ;;  %v3003_v20 = vmin.f32 %v2971_v7, 1.0  ;;  %4650 = vpow2.f32 %v2849_v21  ;;  %v2592_v46 = vadd.f32 %v2591_v15, %v5699_v12  ;;  %v2593_v58 = vpop.f32.mrb[101].mxu1 }
 0x5c3   :  { %v4641_v13 = vpop.eup %4640  ;;  %v3004_v16 = vmin.f32 %v2972_v44, 1.0  ;;  %v2911_v17 = vadd.f32 1.0, %v4639_v29  ;;  %4652 = vpow2.f32 %v2869_v14  ;;  %v2594_v52 = vadd.f32 %v2593_v58, %v5699_v12  ;;  %v2595_v38 = vpop.f32.mrb[102].mxu1 }
 0x5c4   :  { %3035 = vst [vmem:[%s5962_s5 + $0x40] sm:$0xf] %v3003_v20  ;;  %v2912_v10 = vadd.f32 1.0, %v4641_v13  ;;  %v2823_v23 = vsub.f32 0.0, %v2592_v46  ;;  %v2596_v49 = vpop.f32.mrb[103].mxu1 }
 0x5c5   :  { %3036 = vst [vmem:[%s5962_s5 + $0x48] sm:$0xf] %v3004_v16  ;;  %4654 = vrcp.f32 %v2911_v17  ;;  %v2824_v54 = vsub.f32 0.0, %v2594_v52 }
 0x5c6   :  { %4656 = vrcp.f32 %v2912_v10  ;;  %v2875_v11 = vmul.f32 1.442695, %v2823_v23 }
 0x5c7   :  { %v4643_v43 = vpop.eup %4642  ;;  %v2877_v48 = vmul.f32 1.442695, %v2824_v54 }
 0x5c8   :  { %v4645_v8 = vpop.eup %4644  ;;  %v2965_v3 = vmax.f32 %v4643_v43, 0.0  ;;  %4658 = vpow2.f32 %v2875_v11 }
 0x5c9   :  { %v2966_v9 = vmax.f32 %v4645_v8, 0.0  ;;  %4660 = vpow2.f32 %v2877_v48  ;;  %v2386_v26 = vpop.f32.mrb[64].mxu0  ;;  %v2673_v42 = vpop.f32.mrb[104].mxu1 }
 0x5ca   :  { %v4647_v50 = vpop.eup %4646  ;;  %v2997_v24 = vmin.f32 %v2965_v3, 1.0  ;;  %v2387_v39 = vadd.f32 %v2386_v26, %v5699_v12  ;;  %v2674_v45 = vadd.f32 %v2673_v42, %v5699_v12  ;;  %v2388_v27 = vpop.f32.mrb[65].mxu0 }
 0x5cb   :  { %v2675_v32 = vpop.f32.mrb[105].mxu1  ;;  %v4649_v18 = vpop.eup %4648  ;;  %v2998_v41 = vmin.f32 %v2966_v9, 1.0  ;;  %v2905_v22 = vadd.f32 1.0, %v4647_v50  ;;  %v2389_v37 = vadd.f32 %v2388_v27, %v5699_v12 }
 0x5cc   :  { %v2676_v0 = vadd.f32 %v2675_v32, %v5699_v12  ;;  %v2677_v47 = vpop.f32.mrb[106].mxu1  ;;  %v2390_v2 = vpop.f32.mrb[66].mxu0  ;;  %3029 = vst [vmem:[%s5962_s5 + $0x10] sm:$0xf] %v2997_v24  ;;  %v2915_v31 = vadd.f32 1.0, %v4649_v18  ;;  %v2813_v63 = vsub.f32 0.0, %v2387_v39 }
 0x5cd   :  { %v4651_v56 = vpop.eup %4650  ;;  %v2827_v30 = vsub.f32 0.0, %v2674_v45  ;;  %v2678_v4 = vpop.f32.mrb[107].mxu1  ;;  %3030 = vst [vmem:[%s5962_s5 + $0x18] sm:$0xf] %v2998_v41  ;;  %4662 = vrcp.f32 %v2905_v22  ;;  %v2814_v40 = vsub.f32 0.0, %v2389_v37 }
 0x5ce   :  { %v2391_v1 = vpop.f32.mrb[67].mxu0  ;;  %v4653_v19 = vpop.eup %4652  ;;  %v2906_v36 = vadd.f32 1.0, %v4651_v56  ;;  %v2828_v62 = vsub.f32 0.0, %v2676_v0  ;;  %4664 = vrcp.f32 %v2915_v31  ;;  %v2855_v35 = vmul.f32 1.442695, %v2813_v63 }
 0x5cf   :  { %v2916_v5 = vadd.f32 1.0, %v4653_v19  ;;  %v2883_v34 = vmul.f32 1.442695, %v2827_v30  ;;  %v4655_v53 = vpop.eup %4654  ;;  %v2857_v51 = vmul.f32 1.442695, %v2814_v40 }
 0x5d0   :  { %4666 = vrcp.f32 %v2906_v36  ;;  %v4657_v25 = vpop.eup %4656  ;;  %v2975_v61 = vmax.f32 %v4655_v53, 0.0  ;;  %v2885_v57 = vmul.f32 1.442695, %v2828_v62 }
 0x5d1   :  { %4668 = vrcp.f32 %v2916_v5  ;;  %v2976_v59 = vmax.f32 %v4657_v25, 0.0  ;;  %v2755_v28 = vpop.f32.mrb[108].mxu1 }
 0x5d2   :  { %4670 = vpow2.f32 %v2855_v35  ;;  %v4659_v33 = vpop.eup %4658  ;;  %v3007_v55 = vmin.f32 %v2975_v61, 1.0  ;;  %v2756_v60 = vadd.f32 %v2755_v28, %v5699_v12  ;;  %v2757_v21 = vpop.f32.mrb[109].mxu1 }
 0x5d3   :  { %4672 = vpow2.f32 %v2883_v34  ;;  %v4661_v14 = vpop.eup %4660  ;;  %v3008_v6 = vmin.f32 %v2976_v59, 1.0  ;;  %v2919_v7 = vadd.f32 1.0, %v4659_v33  ;;  %v2758_v44 = vadd.f32 %v2757_v21, %v5699_v12  ;;  %v2759_v15 = vpop.f32.mrb[110].mxu1 }
 0x5d4   :  { %4674 = vpow2.f32 %v2857_v51  ;;  %3039 = vst [vmem:[%s5962_s5 + $0x60] sm:$0xf] %v3007_v55  ;;  %v2920_v29 = vadd.f32 1.0, %v4661_v14  ;;  %v2831_v20 = vsub.f32 0.0, %v2756_v60  ;;  %v2760_v46 = vpop.f32.mrb[111].mxu1 }
 0x5d5   :  { %4676 = vpow2.f32 %v2885_v57  ;;  %3040 = vst [vmem:[%s5962_s5 + $0x68] sm:$0xf] %v3008_v6  ;;  %v2832_v58 = vsub.f32 0.0, %v2758_v44 }
 0x5d6   :  { %4678 = vrcp.f32 %v2919_v7  ;;  %v2891_v13 = vmul.f32 1.442695, %v2831_v20 }
 0x5d7   :  { %4680 = vrcp.f32 %v2920_v29  ;;  %v4663_v16 = vpop.eup %4662  ;;  %v2893_v17 = vmul.f32 1.442695, %v2832_v58 }
 0x5d8   :  { %v4665_v52 = vpop.eup %4664  ;;  %v2969_v38 = vmax.f32 %v4663_v16, 0.0  ;;  %4682 = vpow2.f32 %v2891_v13 }
 0x5d9   :  { %v2979_v23 = vmax.f32 %v4665_v52, 0.0  ;;  %4684 = vpow2.f32 %v2893_v17  ;;  %v2468_v49 = vpop.f32.mrb[68].mxu0  ;;  %v3253_v54 = vpop.f32.mrb[112].mxu1 }
 0x5da   :  { %v4667_v10 = vpop.eup %4666  ;;  %v3001_v43 = vmin.f32 %v2969_v38, 1.0  ;;  %v2469_v8 = vadd.f32 %v2468_v49, %v5699_v12  ;;  %v3254_v3 = vadd.f32 %v3253_v54, %v5699_v12  ;;  %v2470_v9 = vpop.f32.mrb[69].mxu0 }
 0x5db   :  { %v4669_v11 = vpop.eup %4668  ;;  %v2970_v48 = vmax.f32 %v4667_v10, 0.0  ;;  %v3255_v26 = vpop.f32.mrb[113].mxu1  ;;  %v3011_v50 = vmin.f32 %v2979_v23, 1.0  ;;  %v2471_v39 = vadd.f32 %v2470_v9, %v5699_v12 }
 0x5dc   :  { %v4671_v42 = vpop.eup %4670  ;;  %v2980_v24 = vmax.f32 %v4669_v11, 0.0  ;;  %v3256_v45 = vadd.f32 %v3255_v26, %v5699_v12  ;;  %v2472_v27 = vpop.f32.mrb[70].mxu0  ;;  %3033 = vst [vmem:[%s5962_s5 + $0x30] sm:$0xf] %v3001_v43  ;;  %v2817_v37 = vsub.f32 0.0, %v2469_v8  ;;  %v3875_v0 = vsub.f32 0.0, %v3254_v3 }
 0x5dd   :  { %v3257_v32 = vpop.f32.mrb[114].mxu1  ;;  %v4673_v18 = vpop.eup %4672  ;;  %v3002_v41 = vmin.f32 %v2970_v48, 1.0  ;;  %v2909_v22 = vadd.f32 1.0, %v4671_v42  ;;  %3043 = vst [vmem:[%s5962_s5 + $0x80] sm:$0xf] %v3011_v50  ;;  %v2818_v30 = vsub.f32 0.0, %v2471_v39 }
 0x5de   :  { %v2473_v47 = vpop.f32.mrb[71].mxu0  ;;  %v3258_v2 = vpop.f32.mrb[115].mxu1  ;;  %v3012_v31 = vmin.f32 %v2980_v24, 1.0  ;;  %v2923_v63 = vadd.f32 1.0, %v4673_v18  ;;  %v3876_v4 = vsub.f32 0.0, %v3256_v45 }
 0x5df   :  { %v4675_v56 = vpop.eup %4674  ;;  %3034 = vst [vmem:[%s5962_s5 + $0x38] sm:$0xf] %v3002_v41  ;;  %4686 = vrcp.f32 %v2909_v22  ;;  %v2863_v36 = vmul.f32 1.442695, %v2817_v37  ;;  %v3907_v5 = vmul.f32 1.442695, %v3875_v0 }
 0x5e0   :  { %v4677_v1 = vpop.eup %4676  ;;  %v2910_v19 = vadd.f32 1.0, %v4675_v56  ;;  %3044 = vst [vmem:[%s5962_s5 + $0x88] sm:$0xf] %v3012_v31  ;;  %4688 = vrcp.f32 %v2923_v63  ;;  %v2865_v53 = vmul.f32 1.442695, %v2818_v30 }
 0x5e1   :  { %v4679_v40 = vpop.eup %4678  ;;  %v2924_v62 = vadd.f32 1.0, %v4677_v1  ;;  %v3909_v25 = vmul.f32 1.442695, %v3876_v4  ;;  %v2550_v61 = vpop.f32.mrb[72].mxu0 }
 0x5e2   :  { %v4681_v35 = vpop.eup %4680  ;;  %v2983_v34 = vmax.f32 %v4679_v40, 0.0  ;;  %4690 = vrcp.f32 %v2910_v19  ;;  %v3335_v57 = vpop.f32.mrb[116].mxu1  ;;  %v2551_v33 = vadd.f32 %v2550_v61, %v5699_v12 }
 0x5e3   :  { %v2984_v51 = vmax.f32 %v4681_v35, 0.0  ;;  %4692 = vrcp.f32 %v2924_v62  ;;  %v4683_v59 = vpop.eup %4682  ;;  %v3336_v55 = vadd.f32 %v3335_v57, %v5699_v12  ;;  %v2552_v60 = vpop.f32.mrb[73].mxu0 }
 0x5e4   :  { %v3015_v28 = vmin.f32 %v2983_v34, 1.0  ;;  %4694 = vpow2.f32 %v2863_v36  ;;  %v3337_v21 = vpop.f32.mrb[117].mxu1  ;;  %v4685_v14 = vpop.eup %4684  ;;  %v2927_v7 = vadd.f32 1.0, %v4683_v59  ;;  %v2553_v44 = vadd.f32 %v2552_v60, %v5699_v12 }
 0x5e5   :  { %v3016_v6 = vmin.f32 %v2984_v51, 1.0  ;;  %4696 = vpow2.f32 %v3907_v5  ;;  %v2554_v15 = vpop.f32.mrb[74].mxu0  ;;  %v3339_v29 = vpop.f32.mrb[118].mxu1  ;;  %v2928_v20 = vadd.f32 1.0, %v4685_v14  ;;  %v2821_v46 = vsub.f32 0.0, %v2551_v33 }
 0x5e6   :  { %3047 = vst [vmem:[%s5962_s5 + $0xa0] sm:$0xf] %v3015_v28  ;;  %4698 = vpow2.f32 %v2865_v53  ;;  %v3879_v58 = vsub.f32 0.0, %v3336_v55  ;;  %v2555_v13 = vpop.f32.mrb[75].mxu0  ;;  %v3340_v16 = vpop.f32.mrb[119].mxu1  ;;  %v2822_v17 = vsub.f32 0.0, %v2553_v44  ;;  %v3338_v52 = vadd.f32 %v3337_v21, %v5699_v12 }
 0x5e7   :  { %3048 = vst [vmem:[%s5962_s5 + $0xa8] sm:$0xf] %v3016_v6  ;;  %4700 = vrcp.f32 %v2927_v7  ;;  %v2871_v38 = vmul.f32 1.442695, %v2821_v46 }
 0x5e8   :  { %4702 = vrcp.f32 %v2928_v20  ;;  %v3915_v10 = vmul.f32 1.442695, %v3879_v58  ;;  %v2873_v23 = vmul.f32 1.442695, %v2822_v17  ;;  %v3880_v49 = vsub.f32 0.0, %v3338_v52 }
 0x5e9   :  { %4704 = vpow2.f32 %v3909_v25  ;;  %v4687_v54 = vpop.eup %4686  ;;  %v2632_v8 = vpop.f32.mrb[76].mxu0 }
 0x5ea   :  { %4706 = vpow2.f32 %v2871_v38  ;;  %v4689_v11 = vpop.eup %4688  ;;  %v2973_v43 = vmax.f32 %v4687_v54, 0.0  ;;  %v3917_v48 = vmul.f32 1.442695, %v3880_v49  ;;  %v3417_v3 = vpop.f32.mrb[120].mxu1  ;;  %v2633_v42 = vadd.f32 %v2632_v8, %v5699_v12 }
 0x5eb   :  { %4708 = vpow2.f32 %v3915_v10  ;;  %v2987_v26 = vmax.f32 %v4689_v11, 0.0  ;;  %v3418_v50 = vadd.f32 %v3417_v3, %v5699_v12  ;;  %v2634_v24 = vpop.f32.mrb[77].mxu0  ;;  %v3419_v39 = vpop.f32.mrb[121].mxu1 }
 0x5ec   :  { %v4691_v9 = vpop.eup %4690  ;;  %4710 = vpow2.f32 %v2873_v23  ;;  %v3005_v27 = vmin.f32 %v2973_v43, 1.0  ;;  %v2635_v18 = vadd.f32 %v2634_v24, %v5699_v12  ;;  %v2636_v41 = vpop.f32.mrb[78].mxu0  ;;  %v2825_v2 = vsub.f32 0.0, %v2633_v42 }
 0x5ed   :  { %v4693_v45 = vpop.eup %4692  ;;  %v2974_v32 = vmax.f32 %v4691_v9, 0.0  ;;  %4712 = vpow2.f32 %v3917_v48  ;;  %v3421_v22 = vpop.f32.mrb[122].mxu1  ;;  %v3019_v0 = vmin.f32 %v2987_v26, 1.0  ;;  %v3883_v56 = vsub.f32 0.0, %v3418_v50 }
 0x5ee   :  { %v4695_v37 = vpop.eup %4694  ;;  %v2988_v47 = vmax.f32 %v4693_v45, 0.0  ;;  %v2637_v31 = vpop.f32.mrb[79].mxu0  ;;  %3037 = vst [vmem:[%s5962_s5 + $0x50] sm:$0xf] %v3005_v27  ;;  %v2826_v19 = vsub.f32 0.0, %v2635_v18  ;;  %v3420_v36 = vadd.f32 %v3419_v39, %v5699_v12 }
 0x5ef   :  { %v3422_v63 = vpop.f32.mrb[123].mxu1  ;;  %v4697_v30 = vpop.eup %4696  ;;  %v3006_v4 = vmin.f32 %v2974_v32, 1.0  ;;  %v2913_v1 = vadd.f32 1.0, %v4695_v37  ;;  %3051 = vst [vmem:[%s5962_s5 + $0xc0] sm:$0xf] %v3019_v0 }
 0x5f0   :  { %v4699_v40 = vpop.eup %4698  ;;  %v3020_v62 = vmin.f32 %v2988_v47, 1.0  ;;  %v3971_v5 = vadd.f32 1.0, %v4697_v30  ;;  %v2879_v35 = vmul.f32 1.442695, %v2825_v2  ;;  %v3923_v51 = vmul.f32 1.442695, %v3883_v56 }
 0x5f1   :  { %v4701_v34 = vpop.eup %4700  ;;  %3038 = vst [vmem:[%s5962_s5 + $0x58] sm:$0xf] %v3006_v4  ;;  %4714 = vrcp.f32 %v2913_v1  ;;  %v2914_v53 = vadd.f32 1.0, %v4699_v40  ;;  %v2881_v28 = vmul.f32 1.442695, %v2826_v19  ;;  %v3884_v33 = vsub.f32 0.0, %v3420_v36 }
 0x5f2   :  { %v4703_v25 = vpop.eup %4702  ;;  %3052 = vst [vmem:[%s5962_s5 + $0xc8] sm:$0xf] %v3020_v62  ;;  %v2991_v61 = vmax.f32 %v4701_v34, 0.0  ;;  %4716 = vrcp.f32 %v3971_v5  ;;  %v2714_v55 = vpop.f32.mrb[80].mxu0 }
 0x5f3   :  { %v4705_v57 = vpop.eup %4704  ;;  %v2992_v59 = vmax.f32 %v4703_v25, 0.0  ;;  %4718 = vrcp.f32 %v2914_v53  ;;  %v3499_v60 = vpop.f32.mrb[124].mxu1  ;;  %v2715_v7 = vadd.f32 %v2714_v55, %v5699_v12  ;;  %v3925_v3 = vmul.f32 1.442695, %v3884_v33 }
 0x5f4   :  { %v4707_v21 = vpop.eup %4706  ;;  %v3023_v14 = vmin.f32 %v2991_v61, 1.0  ;;  %v3972_v6 = vadd.f32 1.0, %v4705_v57  ;;  %4720 = vpow2.f32 %v2879_v35  ;;  %v2716_v44 = vpop.f32.mrb[81].mxu0  ;;  %v3500_v58 = vadd.f32 %v3499_v60, %v5699_v12 }
 0x5f5   :  { %v3501_v15 = vpop.f32.mrb[125].mxu1  ;;  %v4709_v29 = vpop.eup %4708  ;;  %v3024_v20 = vmin.f32 %v2992_v59, 1.0  ;;  %v2917_v46 = vadd.f32 1.0, %v4707_v21  ;;  %4722 = vpow2.f32 %v3923_v51  ;;  %v2829_v38 = vsub.f32 0.0, %v2715_v7 }
 0x5f6   :  { %v2718_v13 = vpop.f32.mrb[82].mxu0  ;;  %v3503_v16 = vpop.f32.mrb[126].mxu1  ;;  %3055 = vst [vmem:[%s5962_s5 + $0xe0] sm:$0xf] %v3023_v14  ;;  %4724 = vrcp.f32 %v3972_v6  ;;  %v3975_v52 = vadd.f32 1.0, %v4709_v29  ;;  %v2717_v10 = vadd.f32 %v2716_v44, %v5699_v12  ;;  %v3887_v43 = vsub.f32 0.0, %v3500_v58 }
 0x5f7   :  { %v4711_v17 = vpop.eup %4710  ;;  %v2719_v23 = vpop.f32.mrb[83].mxu0  ;;  %3056 = vst [vmem:[%s5962_s5 + $0xe8] sm:$0xf] %v3024_v20  ;;  %4726 = vrcp.f32 %v2917_v46  ;;  %v3502_v48 = vadd.f32 %v3501_v15, %v5699_v12  ;;  %v2887_v26 = vmul.f32 1.442695, %v2829_v38 }
 0x5f8   :  { %v3504_v49 = vpop.f32.mrb[127].mxu1  ;;  %v4713_v54 = vpop.eup %4712  ;;  %v2918_v11 = vadd.f32 1.0, %v4711_v17  ;;  %4728 = vrcp.f32 %v3975_v52  ;;  %v2830_v9 = vsub.f32 0.0, %v2717_v10  ;;  %v3931_v50 = vmul.f32 1.442695, %v3887_v43 }
 0x5f9   :  { %v3976_v8 = vadd.f32 1.0, %v4713_v54  ;;  %v3888_v42 = vsub.f32 0.0, %v3502_v48  ;;  %v2796_v27 = vpop.f32.mrb[84].mxu0  ;;  %v3581_v32 = vpop.f32.mrb[128].mxu1 }
 0x5fa   :  { %4730 = vrcp.f32 %v2918_v11  ;;  %v2889_v39 = vmul.f32 1.442695, %v2830_v9  ;;  %v2797_v22 = vadd.f32 %v2796_v27, %v5699_v12  ;;  %v3582_v37 = vadd.f32 %v3581_v32, %v5699_v12  ;;  %v2798_v0 = vpop.f32.mrb[85].mxu0  ;;  %v3583_v47 = vpop.f32.mrb[129].mxu1 }
 0x5fb   :  { %4732 = vrcp.f32 %v3976_v8  ;;  %v4715_v24 = vpop.eup %4714  ;;  %v3933_v45 = vmul.f32 1.442695, %v3888_v42  ;;  %v2799_v31 = vadd.f32 %v2798_v0, %v5699_v12  ;;  %v3584_v63 = vadd.f32 %v3583_v47, %v5699_v12  ;;  %v2800_v30 = vpop.f32.mrb[86].mxu0 }
 0x5fc   :  { %4734 = vpow2.f32 %v2881_v28  ;;  %v4717_v18 = vpop.eup %4716  ;;  %v2977_v41 = vmax.f32 %v4715_v24, 0.0  ;;  %v3585_v4 = vpop.f32.mrb[130].mxu1  ;;  %v2833_v40 = vsub.f32 0.0, %v2797_v22  ;;  %v3891_v51 = vsub.f32 0.0, %v3582_v37 }
 0x5fd   :  { %4736 = vpow2.f32 %v3925_v3  ;;  %v4719_v2 = vpop.eup %4718  ;;  %v4035_v56 = vmax.f32 %v4717_v18, 0.0  ;;  %v2801_v62 = vpop.f32.mrb[87].mxu0  ;;  %v2834_v6 = vsub.f32 0.0, %v2799_v31  ;;  %v3892_v7 = vsub.f32 0.0, %v3584_v63 }
 0x5fe   :  { %4738 = vpow2.f32 %v2887_v26  ;;  %v4721_v1 = vpop.eup %4720  ;;  %v3009_v19 = vmin.f32 %v2977_v41, 1.0  ;;  %v2978_v36 = vmax.f32 %v4719_v2, 0.0  ;;  %v3586_v5 = vpop.f32.mrb[131].mxu1  ;;  %v2895_v59 = vmul.f32 1.442695, %v2833_v40 }
 0x5ff   :  { %4740 = vpow2.f32 %v3931_v50  ;;  %v4723_v35 = vpop.eup %4722  ;;  %v4067_v34 = vmin.f32 %v4035_v56, 1.0  ;;  %v2921_v53 = vadd.f32 1.0, %v4721_v1  ;;  %v3939_v60 = vmul.f32 1.442695, %v3891_v51 }
 0x600   :  { %4742 = vpow2.f32 %v2889_v39  ;;  %v4725_v25 = vpop.eup %4724  ;;  %3041 = vst [vmem:[%s5962_s5 + $0x70] sm:$0xf] %v3009_v19  ;;  %v3010_v61 = vmin.f32 %v2978_v36, 1.0  ;;  %v3979_v57 = vadd.f32 1.0, %v4723_v35  ;;  %v2897_v17 = vmul.f32 1.442695, %v2834_v6 }
 0x601   :  { %4744 = vpow2.f32 %v3933_v45  ;;  %v4727_v28 = vpop.eup %4726  ;;  %v4131_v33 = vrot.slane %v4067_v34, 4  ;;  %v4036_v55 = vmax.f32 %v4725_v25, 0.0  ;;  %v3294_v20 = vpop.f32.mrb[88].mxu0  ;;  %v3941_v11 = vmul.f32 1.442695, %v3892_v7 }
 0x602   :  { %4746 = vrcp.f32 %v2921_v53  ;;  %v4729_v21 = vpop.eup %4728  ;;  %3042 = vst [vmem:[%s5962_s5 + $0x78] sm:$0xf] %v3010_v61  ;;  %v2981_v14 = vmax.f32 %v4727_v28, 0.0  ;;  %v3663_v46 = vpop.f32.mrb[132].mxu1  ;;  %v3295_v9 = vadd.f32 %v3294_v20, %v5699_v12 }
 0x603   :  { %4748 = vrcp.f32 %v3979_v57  ;;  %4195 = vst [vmem:[%s5962_s5] sm:$0xf0] %v4131_v33  ;;  %v4068_v15 = vmin.f32 %v4036_v55, 1.0  ;;  %v4039_v29 = vmax.f32 %v4729_v21, 0.0  ;;  %v3296_v52 = vpop.f32.mrb[89].mxu0  ;;  %v3665_v38 = vpop.f32.mrb[133].mxu1  ;;  %v3664_v22 = vadd.f32 %v3663_v46, %v5699_v12 }
 0x604   :  { %v4731_v44 = vpop.eup %4730  ;;  %4750 = vpow2.f32 %v2895_v59  ;;  %v3013_v13 = vmin.f32 %v2981_v14, 1.0  ;;  %v3298_v43 = vpop.f32.mrb[90].mxu0  ;;  %v3877_v41 = vsub.f32 0.0, %v3295_v9  ;;  %v3297_v2 = vadd.f32 %v3296_v52, %v5699_v12 }
 0x605   :  { %v4733_v58 = vpop.eup %4732  ;;  %v2982_v16 = vmax.f32 %v4731_v44, 0.0  ;;  %4752 = vpow2.f32 %v3939_v60  ;;  %v4132_v23 = vrot.slane %v4068_v15, 4  ;;  %v4071_v49 = vmin.f32 %v4039_v29, 1.0  ;;  %v3667_v26 = vpop.f32.mrb[134].mxu1 }
 0x606   :  { %v4735_v10 = vpop.eup %4734  ;;  %v4040_v54 = vmax.f32 %v4733_v58, 0.0  ;;  %3045 = vst [vmem:[%s5962_s5 + $0x90] sm:$0xf] %v3013_v13  ;;  %4754 = vpow2.f32 %v2897_v17  ;;  %v3299_v42 = vpop.f32.mrb[91].mxu0  ;;  %v3911_v63 = vmul.f32 1.442695, %v3877_v41  ;;  %v3666_v36 = vadd.f32 %v3665_v38, %v5699_v12 }
 0x607   :  { %v4737_v48 = vpop.eup %4736  ;;  %v3014_v8 = vmin.f32 %v2982_v16, 1.0  ;;  %v2922_v3 = vadd.f32 1.0, %v4735_v10  ;;  %4196 = vst [vmem:[%s5962_s5 + $0x8] sm:$0xf0] %v4132_v23  ;;  %v4135_v24 = vrot.slane %v4071_v49, 4  ;;  %4756 = vpow2.f32 %v3941_v11  ;;  %v3668_v27 = vpop.f32.mrb[135].mxu1 }
 0x608   :  { %v4739_v50 = vpop.eup %4738  ;;  %v4072_v39 = vmin.f32 %v4040_v54, 1.0  ;;  %v3980_v45 = vadd.f32 1.0, %v4737_v48  ;;  %v3895_v30 = vsub.f32 0.0, %v3664_v22  ;;  %v3878_v19 = vsub.f32 0.0, %v3297_v2 }
 0x609   :  { %v4741_v32 = vpop.eup %4740  ;;  %3046 = vst [vmem:[%s5962_s5 + $0x98] sm:$0xf] %v3014_v8  ;;  %4758 = vrcp.f32 %v2922_v3  ;;  %v2925_v18 = vadd.f32 1.0, %v4739_v50  ;;  %4199 = vst [vmem:[%s5962_s5 + $0x20] sm:$0xf0] %v4135_v24  ;;  %v3376_v40 = vpop.f32.mrb[92].mxu0 }
 0x60a   :  { %v4743_v37 = vpop.eup %4742  ;;  %v4136_v0 = vrot.slane %v4072_v39, 4  ;;  %4760 = vrcp.f32 %v3980_v45  ;;  %v3983_v47 = vadd.f32 1.0, %v4741_v32  ;;  %v3745_v62 = vpop.f32.mrb[136].mxu1  ;;  %v3947_v34 = vmul.f32 1.442695, %v3895_v30 }
 0x60b   :  { %v4745_v56 = vpop.eup %4744  ;;  %4762 = vrcp.f32 %v2925_v18  ;;  %v2926_v31 = vadd.f32 1.0, %v4743_v37  ;;  %v3377_v53 = vadd.f32 %v3376_v40, %v5699_v12  ;;  %v3378_v51 = vpop.f32.mrb[93].mxu0  ;;  %v3913_v59 = vmul.f32 1.442695, %v3878_v19 }
 0x60c   :  { %v4747_v4 = vpop.eup %4746  ;;  %4200 = vst [vmem:[%s5962_s5 + $0x28] sm:$0xf0] %v4136_v0  ;;  %4764 = vrcp.f32 %v3983_v47  ;;  %v3984_v1 = vadd.f32 1.0, %v4745_v56  ;;  %v3747_v25 = vpop.f32.mrb[137].mxu1  ;;  %v3896_v28 = vsub.f32 0.0, %v3666_v36  ;;  %v3746_v13 = vadd.f32 %v3745_v62, %v5699_v12 }
 0x60d   :  { %v4749_v5 = vpop.eup %4748  ;;  %v2985_v35 = vmax.f32 %v4747_v4, 0.0  ;;  %4766 = vrcp.f32 %v2926_v31  ;;  %v3380_v33 = vpop.f32.mrb[94].mxu0  ;;  %v3881_v6 = vsub.f32 0.0, %v3377_v53  ;;  %v3379_v16 = vadd.f32 %v3378_v51, %v5699_v12 }
 0x60e   :  { %v4751_v61 = vpop.eup %4750  ;;  %v4043_v57 = vmax.f32 %v4749_v5, 0.0  ;;  %4768 = vrcp.f32 %v3984_v1  ;;  %v3749_v55 = vpop.f32.mrb[138].mxu1  ;;  %v3949_v20 = vmul.f32 1.442695, %v3896_v28  ;;  %v3748_v10 = vadd.f32 %v3747_v25, %v5699_v12 }
 0x60f   :  { %v4753_v60 = vpop.eup %4752  ;;  %v3017_v21 = vmin.f32 %v2985_v35, 1.0  ;;  %v2929_v14 = vadd.f32 1.0, %v4751_v61  ;;  %4770 = vpow2.f32 %v3911_v63  ;;  %v3381_v7 = vpop.f32.mrb[95].mxu0  ;;  %v3919_v58 = vmul.f32 1.442695, %v3881_v6 }
 0x610   :  { %v3750_v44 = vpop.f32.mrb[139].mxu1  ;;  %v4075_v15 = vmin.f32 %v4043_v57, 1.0  ;;  %v3987_v29 = vadd.f32 1.0, %v4753_v60  ;;  %4772 = vpow2.f32 %v3947_v34  ;;  %v4755_v46 = vpop.eup %4754  ;;  %v3899_v54 = vsub.f32 0.0, %v3746_v13 }
 0x611   :  { %3049 = vst [vmem:[%s5962_s5 + $0xb0] sm:$0xf] %v3017_v21  ;;  %4774 = vrcp.f32 %v2929_v14  ;;  %v4757_v17 = vpop.eup %4756  ;;  %v2930_v38 = vadd.f32 1.0, %v4755_v46  ;;  %v3882_v11 = vsub.f32 0.0, %v3379_v16  ;;  %v3900_v8 = vsub.f32 0.0, %v3748_v10  ;;  %v3458_v3 = vpop.f32.mrb[96].mxu0 }
 0x612   :  { %v4139_v52 = vrot.slane %v4075_v15, 4  ;;  %4776 = vrcp.f32 %v3987_v29  ;;  %v3988_v49 = vadd.f32 1.0, %v4757_v17  ;;  %v3827_v9 = vpop.f32.mrb[140].mxu1  ;;  %v3955_v50 = vmul.f32 1.442695, %v3899_v54  ;;  %v3460_v39 = vpop.f32.mrb[97].mxu0 }
 0x613   :  { %v4759_v23 = vpop.eup %4758  ;;  %4778 = vpow2.f32 %v3913_v59  ;;  %v3921_v24 = vmul.f32 1.442695, %v3882_v11  ;;  %v3957_v18 = vmul.f32 1.442695, %v3900_v8  ;;  %v3829_v41 = vpop.f32.mrb[141].mxu1  ;;  %v3459_v2 = vadd.f32 %v3458_v3, %v5699_v12 }
 0x614   :  { %v4761_v43 = vpop.eup %4760  ;;  %4203 = vst [vmem:[%s5962_s5 + $0x40] sm:$0xf0] %v4139_v52  ;;  %v2986_v48 = vmax.f32 %v4759_v23, 0.0  ;;  %4780 = vrcp.f32 %v2930_v38  ;;  %v3462_v22 = vpop.f32.mrb[98].mxu0  ;;  %v3828_v1 = vadd.f32 %v3827_v9, %v5699_v12  ;;  %v3461_v21 = vadd.f32 %v3460_v39, %v5699_v12 }
 0x615   :  { %v4763_v26 = vpop.eup %4762  ;;  %v4044_v42 = vmax.f32 %v4761_v43, 0.0  ;;  %4782 = vrcp.f32 %v3988_v49  ;;  %v3463_v56 = vpop.f32.mrb[99].mxu0  ;;  %v3885_v51 = vsub.f32 0.0, %v3459_v2  ;;  %v3830_v10 = vadd.f32 %v3829_v41, %v5699_v12 }
 0x616   :  { %v4765_v45 = vpop.eup %4764  ;;  %v3018_v27 = vmin.f32 %v2986_v48, 1.0  ;;  %v2989_v32 = vmax.f32 %v4763_v26, 0.0  ;;  %4784 = vpow2.f32 %v3949_v20  ;;  %v3831_v31 = vpop.f32.mrb[142].mxu1  ;;  %v3903_v28 = vsub.f32 0.0, %v3828_v1 }
 0x617   :  { %v4767_v37 = vpop.eup %4766  ;;  %v4076_v0 = vmin.f32 %v4044_v42, 1.0  ;;  %v4047_v47 = vmax.f32 %v4765_v45, 0.0  ;;  %4786 = vpow2.f32 %v3919_v58  ;;  %v3832_v19 = vpop.f32.mrb[143].mxu1  ;;  %v3927_v60 = vmul.f32 1.442695, %v3885_v51 }
 0x618   :  { %v4769_v63 = vpop.eup %4768  ;;  %3050 = vst [vmem:[%s5962_s5 + $0xb8] sm:$0xf] %v3018_v27  ;;  %v3021_v30 = vmin.f32 %v2989_v32, 1.0  ;;  %v2990_v4 = vmax.f32 %v4767_v37, 0.0  ;;  %4788 = vpow2.f32 %v3955_v50  ;;  %v3963_v15 = vmul.f32 1.442695, %v3903_v28 }
 0x619   :  { %v4771_v36 = vpop.eup %4770  ;;  %v4140_v40 = vrot.slane %v4076_v0, 4  ;;  %v4079_v62 = vmin.f32 %v4047_v47, 1.0  ;;  %v4048_v5 = vmax.f32 %v4769_v63, 0.0  ;;  %4790 = vpow2.f32 %v3921_v24  ;;  %v3540_v14 = vpop.f32.mrb[100].mxu0 }
 0x61a   :  { %v4773_v35 = vpop.eup %4772  ;;  %3053 = vst [vmem:[%s5962_s5 + $0xd0] sm:$0xf] %v3021_v30  ;;  %v3022_v34 = vmin.f32 %v2990_v4, 1.0  ;;  %v3973_v53 = vadd.f32 1.0, %v4771_v36  ;;  %4792 = vpow2.f32 %v3957_v18  ;;  %v3542_v29 = vpop.f32.mrb[101].mxu0  ;;  %v3886_v13 = vsub.f32 0.0, %v3461_v21 }
 0x61b   :  { %v4775_v25 = vpop.eup %4774  ;;  %4204 = vst [vmem:[%s5962_s5 + $0x48] sm:$0xf0] %v4140_v40  ;;  %v4143_v61 = vrot.slane %v4079_v62, 4  ;;  %v4080_v57 = vmin.f32 %v4048_v5, 1.0  ;;  %v3991_v59 = vadd.f32 1.0, %v4773_v35  ;;  %v3544_v16 = vpop.f32.mrb[102].mxu0  ;;  %v3541_v43 = vadd.f32 %v3540_v14, %v5699_v12 }
 0x61c   :  { %v4777_v33 = vpop.eup %4776  ;;  %3054 = vst [vmem:[%s5962_s5 + $0xd8] sm:$0xf] %v3022_v34  ;;  %v2993_v55 = vmax.f32 %v4775_v25, 0.0  ;;  %4794 = vrcp.f32 %v3973_v53  ;;  %v3545_v23 = vpop.f32.mrb[103].mxu0  ;;  %v3929_v11 = vmul.f32 1.442695, %v3886_v13  ;;  %v3543_v18 = vadd.f32 %v3542_v29, %v5699_v12 }
 0x61d   :  { %v4779_v6 = vpop.eup %4778  ;;  %4207 = vst [vmem:[%s5962_s5 + $0x60] sm:$0xf0] %v4143_v61  ;;  %v4144_v7 = vrot.slane %v4080_v57, 4  ;;  %v4051_v44 = vmax.f32 %v4777_v33, 0.0  ;;  %4796 = vrcp.f32 %v3991_v59  ;;  %v3904_v26 = vsub.f32 0.0, %v3830_v10 }
 0x61e   :  { %v4781_v20 = vpop.eup %4780  ;;  %v3025_v46 = vmin.f32 %v2993_v55, 1.0  ;;  %v3974_v58 = vadd.f32 1.0, %v4779_v6  ;;  %4798 = vpow2.f32 %v3927_v60  ;;  %v3889_v39 = vsub.f32 0.0, %v3541_v43 }
 0x61f   :  { %v4783_v17 = vpop.eup %4782  ;;  %4208 = vst [vmem:[%s5962_s5 + $0x68] sm:$0xf0] %v4144_v7  ;;  %v4083_v52 = vmin.f32 %v4051_v44, 1.0  ;;  %v2994_v38 = vmax.f32 %v4781_v20, 0.0  ;;  %4800 = vpow2.f32 %v3963_v15  ;;  %v3965_v32 = vmul.f32 1.442695, %v3904_v26 }
 0x620   :  { %v4785_v49 = vpop.eup %4784  ;;  %3057 = vst [vmem:[%s5962_s5 + $0xf0] sm:$0xf] %v3025_v46  ;;  %v4052_v54 = vmax.f32 %v4783_v17, 0.0  ;;  %4802 = vrcp.f32 %v3974_v58  ;;  %v3935_v0 = vmul.f32 1.442695, %v3889_v39  ;;  %v3890_v56 = vsub.f32 0.0, %v3543_v18 }
 0x621   :  { %v4787_v48 = vpop.eup %4786  ;;  %v4147_v8 = vrot.slane %v4083_v52, 4  ;;  %v3026_v3 = vmin.f32 %v2994_v38, 1.0  ;;  %v3992_v9 = vadd.f32 1.0, %v4785_v49  ;;  %4804 = vpow2.f32 %v3929_v11  ;;  %v3622_v47 = vpop.f32.mrb[104].mxu0 }
 0x622   :  { %v4789_v42 = vpop.eup %4788  ;;  %v4084_v50 = vmin.f32 %v4052_v54, 1.0  ;;  %v3977_v24 = vadd.f32 1.0, %v4787_v48  ;;  %v3623_v31 = vadd.f32 %v3622_v47, %v5699_v12  ;;  %v3624_v63 = vpop.f32.mrb[105].mxu0  ;;  %v3937_v40 = vmul.f32 1.442695, %v3890_v56 }
 0x623   :  { %v4791_v45 = vpop.eup %4790  ;;  %4211 = vst [vmem:[%s5962_s5 + $0x80] sm:$0xf0] %v4147_v8  ;;  %3058 = vst [vmem:[%s5962_s5 + $0xf8] sm:$0xf] %v3026_v3  ;;  %4806 = vrcp.f32 %v3992_v9  ;;  %v3995_v27 = vadd.f32 1.0, %v4789_v42  ;;  %v3625_v4 = vadd.f32 %v3624_v63, %v5699_v12  ;;  %v3626_v1 = vpop.f32.mrb[106].mxu0 }
 0x624   :  { %v4793_v41 = vpop.eup %4792  ;;  %v4148_v22 = vrot.slane %v4084_v50, 4  ;;  %4808 = vrcp.f32 %v3977_v24  ;;  %v3978_v37 = vadd.f32 1.0, %v4791_v45  ;;  %v3893_v62 = vsub.f32 0.0, %v3623_v31  ;;  %v3627_v5 = vpop.f32.mrb[107].mxu0 }
 0x625   :  { %4810 = vrcp.f32 %v3995_v27  ;;  %v3996_v2 = vadd.f32 1.0, %v4793_v41  ;;  %v3894_v53 = vsub.f32 0.0, %v3625_v4 }
 0x626   :  { %v4795_v30 = vpop.eup %4794  ;;  %4212 = vst [vmem:[%s5962_s5 + $0x88] sm:$0xf0] %v4148_v22  ;;  %4812 = vrcp.f32 %v3978_v37  ;;  %v3943_v57 = vmul.f32 1.442695, %v3893_v62 }
 0x627   :  { %v4797_v19 = vpop.eup %4796  ;;  %v4037_v36 = vmax.f32 %v4795_v30, 0.0  ;;  %4814 = vrcp.f32 %v3996_v2  ;;  %v3945_v55 = vmul.f32 1.442695, %v3894_v53 }
 0x628   :  { %v4799_v35 = vpop.eup %4798  ;;  %v4055_v34 = vmax.f32 %v4797_v19, 0.0  ;;  %4816 = vpow2.f32 %v3965_v32 }
 0x629   :  { %v4801_v51 = vpop.eup %4800  ;;  %v4069_v25 = vmin.f32 %v4037_v36, 1.0  ;;  %v3981_v61 = vadd.f32 1.0, %v4799_v35  ;;  %4818 = vpow2.f32 %v3935_v0  ;;  %v3704_v7 = vpop.f32.mrb[108].mxu0 }
 0x62a   :  { %v4803_v59 = vpop.eup %4802  ;;  %v4087_v28 = vmin.f32 %v4055_v34, 1.0  ;;  %v3999_v33 = vadd.f32 1.0, %v4801_v51  ;;  %4820 = vpow2.f32 %v3937_v40  ;;  %v3705_v20 = vadd.f32 %v3704_v7, %v5699_v12  ;;  %v3706_v46 = vpop.f32.mrb[109].mxu0 }
 0x62b   :  { %v4133_v60 = vrot.slane %v4069_v25, 4  ;;  %v4038_v21 = vmax.f32 %v4803_v59, 0.0  ;;  %4822 = vrcp.f32 %v3981_v61  ;;  %v4805_v14 = vpop.eup %4804  ;;  %v3707_v16 = vadd.f32 %v3706_v46, %v5699_v12  ;;  %v3708_v17 = vpop.f32.mrb[110].mxu0 }
 0x62c   :  { %v4151_v6 = vrot.slane %v4087_v28, 4  ;;  %4824 = vrcp.f32 %v3999_v33  ;;  %v3982_v29 = vadd.f32 1.0, %v4805_v14  ;;  %v3897_v23 = vsub.f32 0.0, %v3705_v20  ;;  %v3709_v49 = vpop.f32.mrb[111].mxu0 }
 0x62d   :  { %v4807_v44 = vpop.eup %4806  ;;  %4197 = vst [vmem:[%s5962_s5 + $0x10] sm:$0xf0] %v4133_v60  ;;  %v4070_v15 = vmin.f32 %v4038_v21, 1.0  ;;  %4826 = vpow2.f32 %v3943_v57  ;;  %v3898_v48 = vsub.f32 0.0, %v3707_v16 }
 0x62e   :  { %v4809_v58 = vpop.eup %4808  ;;  %4215 = vst [vmem:[%s5962_s5 + $0xa0] sm:$0xf0] %v4151_v6  ;;  %v4056_v13 = vmax.f32 %v4807_v44, 0.0  ;;  %4828 = vpow2.f32 %v3945_v55  ;;  %v3951_v26 = vmul.f32 1.442695, %v3897_v23 }
 0x62f   :  { %v4811_v52 = vpop.eup %4810  ;;  %v4134_v38 = vrot.slane %v4070_v15, 4  ;;  %v4041_v10 = vmax.f32 %v4809_v58, 0.0  ;;  %4830 = vrcp.f32 %v3982_v29  ;;  %v3953_v45 = vmul.f32 1.442695, %v3898_v48 }
 0x630   :  { %v4813_v54 = vpop.eup %4812  ;;  %v4088_v11 = vmin.f32 %v4056_v13, 1.0  ;;  %v4059_v43 = vmax.f32 %v4811_v52, 0.0  ;;  %4832 = vpow2.f32 %v3951_v26 }
 0x631   :  { %v4815_v8 = vpop.eup %4814  ;;  %4198 = vst [vmem:[%s5962_s5 + $0x18] sm:$0xf0] %v4134_v38  ;;  %v4073_v3 = vmin.f32 %v4041_v10, 1.0  ;;  %v4042_v9 = vmax.f32 %v4813_v54, 0.0  ;;  %4834 = vpow2.f32 %v3953_v45  ;;  %v3786_v2 = vpop.f32.mrb[112].mxu0 }
 0x632   :  { %v4817_v42 = vpop.eup %4816  ;;  %v4152_v50 = vrot.slane %v4088_v11, 4  ;;  %v4091_v24 = vmin.f32 %v4059_v43, 1.0  ;;  %v4060_v39 = vmax.f32 %v4815_v8, 0.0  ;;  %v3787_v30 = vadd.f32 %v3786_v2, %v5699_v12  ;;  %v3788_v4 = vpop.f32.mrb[113].mxu0 }
 0x633   :  { %v4819_v27 = vpop.eup %4818  ;;  %v4137_v32 = vrot.slane %v4073_v3, 4  ;;  %v4074_v18 = vmin.f32 %v4042_v9, 1.0  ;;  %v4000_v41 = vadd.f32 1.0, %v4817_v42  ;;  %v3789_v40 = vadd.f32 %v3788_v4, %v5699_v12  ;;  %v3790_v62 = vpop.f32.mrb[114].mxu0 }
 0x634   :  { %v4821_v22 = vpop.eup %4820  ;;  %4216 = vst [vmem:[%s5962_s5 + $0xa8] sm:$0xf0] %v4152_v50  ;;  %v4155_v37 = vrot.slane %v4091_v24, 4  ;;  %v4092_v0 = vmin.f32 %v4060_v39, 1.0  ;;  %v3985_v47 = vadd.f32 1.0, %v4819_v27  ;;  %v3901_v34 = vsub.f32 0.0, %v3787_v30 }
 0x635   :  { %v4823_v56 = vpop.eup %4822  ;;  %4201 = vst [vmem:[%s5962_s5 + $0x30] sm:$0xf0] %v4137_v32  ;;  %v4138_v31 = vrot.slane %v4074_v18, 4  ;;  %4836 = vrcp.f32 %v4000_v41  ;;  %v3986_v63 = vadd.f32 1.0, %v4821_v22  ;;  %v3791_v53 = vpop.f32.mrb[115].mxu0  ;;  %v3902_v57 = vsub.f32 0.0, %v3789_v40 }
 0x636   :  { %v4825_v1 = vpop.eup %4824  ;;  %4219 = vst [vmem:[%s5962_s5 + $0xc0] sm:$0xf0] %v4155_v37  ;;  %v4156_v19 = vrot.slane %v4092_v0, 4  ;;  %v4045_v36 = vmax.f32 %v4823_v56, 0.0  ;;  %4838 = vrcp.f32 %v3985_v47  ;;  %v3959_v55 = vmul.f32 1.442695, %v3901_v34 }
 0x637   :  { %v4827_v5 = vpop.eup %4826  ;;  %4202 = vst [vmem:[%s5962_s5 + $0x38] sm:$0xf0] %v4138_v31  ;;  %v4063_v35 = vmax.f32 %v4825_v1, 0.0  ;;  %4840 = vrcp.f32 %v3986_v63  ;;  %v3961_v14 = vmul.f32 1.442695, %v3902_v57 }
 0x638   :  { %v4829_v51 = vpop.eup %4828  ;;  %4220 = vst [vmem:[%s5962_s5 + $0xc8] sm:$0xf0] %v4156_v19  ;;  %v4077_v25 = vmin.f32 %v4045_v36, 1.0  ;;  %v3989_v61 = vadd.f32 1.0, %v4827_v5 }
 0x639   :  { %v4831_v59 = vpop.eup %4830  ;;  %v4095_v28 = vmin.f32 %v4063_v35, 1.0  ;;  %v3990_v33 = vadd.f32 1.0, %v4829_v51  ;;  %v3868_v44 = vpop.f32.mrb[116].mxu0 }
 0x63a   :  { %v4141_v60 = vrot.slane %v4077_v25, 4  ;;  %v4046_v21 = vmax.f32 %v4831_v59, 0.0  ;;  %4842 = vrcp.f32 %v3989_v61  ;;  %v4833_v15 = vpop.eup %4832  ;;  %v3869_v29 = vadd.f32 %v3868_v44, %v5699_v12  ;;  %v3870_v20 = vpop.f32.mrb[117].mxu0 }
 0x63b   :  { %v4159_v6 = vrot.slane %v4095_v28, 4  ;;  %4844 = vrcp.f32 %v3990_v33  ;;  %v4835_v46 = vpop.eup %4834  ;;  %v3993_v13 = vadd.f32 1.0, %v4833_v15  ;;  %v3871_v16 = vadd.f32 %v3870_v20, %v5699_v12  ;;  %v3872_v17 = vpop.f32.mrb[118].mxu0 }
 0x63c   :  { %4205 = vst [vmem:[%s5962_s5 + $0x50] sm:$0xf0] %v4141_v60  ;;  %v4078_v7 = vmin.f32 %v4046_v21, 1.0  ;;  %4846 = vpow2.f32 %v3959_v55  ;;  %v3994_v38 = vadd.f32 1.0, %v4835_v46  ;;  %v3905_v10 = vsub.f32 0.0, %v3869_v29  ;;  %v3873_v23 = vpop.f32.mrb[119].mxu0 }
 0x63d   :  { %4223 = vst [vmem:[%s5962_s5 + $0xe0] sm:$0xf0] %v4159_v6  ;;  %4848 = vpow2.f32 %v3961_v14  ;;  %v3906_v11 = vsub.f32 0.0, %v3871_v16 }
 0x63e   :  { %v4142_v58 = vrot.slane %v4078_v7, 4  ;;  %4850 = vrcp.f32 %v3993_v13  ;;  %v3967_v8 = vmul.f32 1.442695, %v3905_v10 }
 0x63f   :  { %v4837_v52 = vpop.eup %4836  ;;  %4852 = vrcp.f32 %v3994_v38  ;;  %v3969_v12 = vmul.f32 1.442695, %v3906_v11 }
 0x640   :  { %v4839_v49 = vpop.eup %4838  ;;  %4206 = vst [vmem:[%s5962_s5 + $0x58] sm:$0xf0] %v4142_v58  ;;  %v4064_v54 = vmax.f32 %v4837_v52, 0.0  ;;  %4854 = vpow2.f32 %v3967_v8 }
 0x641   :  { %v4841_v43 = vpop.eup %4840  ;;  %v4049_v48 = vmax.f32 %v4839_v49, 0.0  ;;  %4856 = vpow2.f32 %v3969_v12 }
 0x642   :  { %v4096_v3 = vmin.f32 %v4064_v54, 1.0  ;;  %v4050_v9 = vmax.f32 %v4841_v43, 0.0 }
 0x643   :  { %v4081_v26 = vmin.f32 %v4049_v48, 1.0 }
 0x644   :  { %v4843_v42 = vpop.eup %4842  ;;  %v4160_v50 = vrot.slane %v4096_v3, 4  ;;  %v4082_v24 = vmin.f32 %v4050_v9, 1.0 }
 0x645   :  { %v4845_v39 = vpop.eup %4844  ;;  %v4145_v45 = vrot.slane %v4081_v26, 4  ;;  %v4053_v27 = vmax.f32 %v4843_v42, 0.0 }
 0x646   :  { %v4847_v32 = vpop.eup %4846  ;;  %4224 = vst [vmem:[%s5962_s5 + $0xe8] sm:$0xf0] %v4160_v50  ;;  %v4146_v18 = vrot.slane %v4082_v24, 4  ;;  %v4054_v41 = vmax.f32 %v4845_v39, 0.0 }
 0x647   :  { %v4849_v22 = vpop.eup %4848  ;;  %4209 = vst [vmem:[%s5962_s5 + $0x70] sm:$0xf0] %v4145_v45  ;;  %v4085_v37 = vmin.f32 %v4053_v27, 1.0  ;;  %v3997_v0 = vadd.f32 1.0, %v4847_v32 }
 0x648   :  { %4210 = vst [vmem:[%s5962_s5 + $0x78] sm:$0xf0] %v4146_v18  ;;  %v4086_v47 = vmin.f32 %v4054_v41, 1.0  ;;  %v3998_v2 = vadd.f32 1.0, %v4849_v22  ;;  %v4851_v31 = vpop.eup %4850 }
 0x649   :  { %v4149_v56 = vrot.slane %v4085_v37, 4  ;;  %4858 = vrcp.f32 %v3997_v0  ;;  %v4853_v30 = vpop.eup %4852  ;;  %v4057_v4 = vmax.f32 %v4851_v31, 0.0 }
 0x64a   :  { %v4150_v63 = vrot.slane %v4086_v47, 4  ;;  %4860 = vrcp.f32 %v3998_v2  ;;  %v4058_v1 = vmax.f32 %v4853_v30, 0.0  ;;  %v4855_v19 = vpop.eup %4854 }
 0x64b   :  { %4213 = vst [vmem:[%s5962_s5 + $0x90] sm:$0xf0] %v4149_v56  ;;  %v4089_v36 = vmin.f32 %v4057_v4, 1.0  ;;  %v4857_v40 = vpop.eup %4856  ;;  %v4001_v5 = vadd.f32 1.0, %v4855_v19 }
 0x64c   :  { %4214 = vst [vmem:[%s5962_s5 + $0x98] sm:$0xf0] %v4150_v63  ;;  %v4090_v62 = vmin.f32 %v4058_v1, 1.0  ;;  %v4002_v34 = vadd.f32 1.0, %v4857_v40 }
 0x64d   :  { %v4153_v35 = vrot.slane %v4089_v36, 4  ;;  %4862 = vrcp.f32 %v4001_v5 }
 0x64e   :  { %v4154_v53 = vrot.slane %v4090_v62, 4  ;;  %4864 = vrcp.f32 %v4002_v34 }
 0x64f   :  { %4217 = vst [vmem:[%s5962_s5 + $0xb0] sm:$0xf0] %v4153_v35 }
 0x650   :  { %4218 = vst [vmem:[%s5962_s5 + $0xb8] sm:$0xf0] %v4154_v53 }
 0x653   :  { %v4859_v51 = vpop.eup %4858 }
 0x654   :  { %v4861_v25 = vpop.eup %4860  ;;  %v4061_v61 = vmax.f32 %v4859_v51, 0.0 }
 0x655   :  { %v4062_v57 = vmax.f32 %v4861_v25, 0.0 }
 0x656   :  { %v4093_v59 = vmin.f32 %v4061_v61, 1.0 }
 0x657   :  { %v4094_v28 = vmin.f32 %v4062_v57, 1.0  ;;  %v4863_v60 = vpop.eup %4862 }
 0x658   :  { %v4157_v33 = vrot.slane %v4093_v59, 4  ;;  %v4865_v21 = vpop.eup %4864  ;;  %v4065_v14 = vmax.f32 %v4863_v60, 0.0 }
 0x659   :  { %v4158_v55 = vrot.slane %v4094_v28, 4  ;;  %v4066_v6 = vmax.f32 %v4865_v21, 0.0 }
 0x65a   :  { %4221 = vst [vmem:[%s5962_s5 + $0xd0] sm:$0xf0] %v4157_v33  ;;  %v4097_v7 = vmin.f32 %v4065_v14, 1.0 }
 0x65b   :  { %4222 = vst [vmem:[%s5962_s5 + $0xd8] sm:$0xf0] %v4158_v55  ;;  %v4098_v44 = vmin.f32 %v4066_v6, 1.0 }
 0x65c   :  { %v4161_v15 = vrot.slane %v4097_v7, 4 }
 0x65d   :  { %v4162_v29 = vrot.slane %v4098_v44, 4 }
 0x65e   :  { %4225 = vst [vmem:[%s5962_s5 + $0xf0] sm:$0xf0] %v4161_v15 }
 0x65f   :  { %4226 = vst [vmem:[%s5962_s5 + $0xf8] sm:$0xf0] %v4162_v29 }

</bundles_post_ra>
